<compile_context>
chip_gen: v6e
topology: v6e:2x2x1
jax: 0.10.0
libtpu: 0.0.40
codegen_flags: <defaults>
</compile_context>

<pallas_src>
import functools

import jax
import jax.numpy as jnp
from jax.experimental import pallas as pl
from jax.experimental.pallas import tpu as pltpu

# Make the plain-JAX reference use true f32 matmuls (kernel already does).
jax.config.update("jax_default_matmul_precision", "highest")


# ----------------------------------------------------------------------------
# Fused Pallas kernel: encoder MLP + latent trajectory + decoder MLP
# One grid step == b_blk batch rows.
# ----------------------------------------------------------------------------
def _fused_kernel(x0_ref, zpoly_ref,
                  we1_ref, be1_ref, we2_ref, be2_ref, we3_ref, be3_ref,
                  wd1_ref, bd1_ref, wd2_ref, bd2_ref, wd3_ref, bd3_ref,
                  out_ref, *, T, L, F, b_blk):
    f32 = jnp.float32
    act = jnp.tanh   # keep on the EUP slot; overlaps MXU work

    # ---- Encoder on the initial states: (b_blk, F) -> (b_blk, L)
    x0 = x0_ref[...]
    h = act(jnp.dot(x0, we1_ref[...], preferred_element_type=f32) + be1_ref[...])
    h = act(jnp.dot(h, we2_ref[...], preferred_element_type=f32) + be2_ref[...])
    z0 = act(jnp.dot(h, we3_ref[...], preferred_element_type=f32) + be3_ref[...])   # (b_blk, L)

    # ---- Latent trajectory: hoisted poly table broadcast over batch,
    #      z0 broadcast over time; flatten to (b_blk*T, L) for big-M decoder dots.
    z = z0[:, None, :] + zpoly_ref[...][None, :, :]                                 # (b_blk, T, L)
    zf = z.reshape(b_blk * T, L)                                                    # (b_blk*T, L)

    # ---- Decoder on the latent trajectory: (b_blk*T, L) -> (b_blk*T, F)
    h = act(jnp.dot(zf, wd1_ref[...], preferred_element_type=f32) + bd1_ref[...])
    h = act(jnp.dot(h, wd2_ref[...], preferred_element_type=f32) + bd2_ref[...])
    y = jnp.dot(h, wd3_ref[...], preferred_element_type=f32) + bd3_ref[...]         # (b_blk*T, F)

    # ---- Single dense block store (no per-timestep concat / relayout).
    out_ref[...] = y


# ----------------------------------------------------------------------------
# Wrapper (glue: x0 slice, poly-table precompute, padding, pallas_call, reshape)
# ----------------------------------------------------------------------------
def _resident_spec(arr):
    """Whole-array block with a constant index_map -> stays VMEM-resident."""
    nd = arr.ndim
    return pl.BlockSpec(arr.shape, lambda *_, _nd=nd: (0,) * _nd)


def polynomial_model_forward(x, t_range, params, *, degree, b_blk=None):
    B, T, F = x.shape
    L = params["w_poly"].shape[1]

    # Batch block: large M for the MXU, but keep >= 2 grid steps so both v7x
    # TensorCores get work.  For large B prefer 256 (v6e/v7x) / 128 (v5e).
    if b_blk is None:
        b_blk = min(256, pl.cdiv(B, 2))
    b_blk = max(8, ((b_blk + 7) // 8) * 8)          # sublane-aligned block
    n_blk = pl.cdiv(B, b_blk)
    b_pad = n_blk * b_blk

    # Initial state (B, F); pad tail rows if B is not divisible by b_blk
    # (garbage tail rows are sliced off after the call).
    x0 = x[:, 0, :].astype(jnp.float32)
    if b_pad != B:
        x0 = jnp.pad(x0, ((0, b_pad - B), (0, 0)))

    # Hoisted, batch-independent polynomial table: (T, L).
    t = t_range.astype(jnp.float32).reshape(T, 1)
    powers = jnp.concatenate([t ** i for i in range(1, degree + 1)], axis=1)  # (T, deg)
    z_poly = powers @ params["w_poly"].astype(jnp.float32)                    # (T, L)

    args = (x0, z_poly,
            params["we1"], params["be1"], params["we2"], params["be2"],
            params["we3"], params["be3"],
            params["wd1"], params["bd1"], params["wd2"], params["bd2"],
            params["wd3"], params["bd3"])

    in_specs = [pl.BlockSpec((b_blk, F), lambda b: (b, 0))]      # x0: one batch block per step
    in_specs += [_resident_spec(a) for a in args[1:]]            # table + weights: resident

    out_specs = pl.BlockSpec((b_blk * T, F), lambda b: (b, 0))   # dense (b_blk*T, F) block

    kernel = functools.partial(_fused_kernel, T=T, L=L, F=F, b_blk=b_blk)

    out_flat = pl.pallas_call(
        kernel,
        out_shape=jax.ShapeDtypeStruct((b_pad * T, F), jnp.float32),
        grid=(n_blk,),
        in_specs=in_specs,
        out_specs=out_specs,
        compiler_params=pltpu.CompilerParams(
            dimension_semantics=("parallel",)),
    )(*args)

    # Free metadata reshape on contiguous data: (B_pad*T, F) -> (B, T, F).
    return out_flat.reshape(b_pad, T, F)[:B]


# ----------------------------------------------------------------------------
# Plain-JAX reference (for correctness check only)
# ----------------------------------------------------------------------------
def reference_forward(x, t_range, p, *, degree):
    act = jnp.tanh
    x0 = x[:, 0, :]
    h = act(x0 @ p["we1"] + p["be1"])
    h = act(h @ p["we2"] + p["be2"])
    z0 = jnp.tanh(h @ p["we3"] + p["be3"])
    B = x.shape[0]
    T = t_range.shape[0]
    t = jnp.broadcast_to(t_range[None, :], (B, T))
    powers = jnp.stack([t ** i for i in range(1, degree + 1)], axis=-1)   # (B, T, deg)
    z = jnp.einsum("btd,dl->btl", powers, p["w_poly"]) + z0[:, None, :]
    zf = z.reshape(B * T, -1)
    h = act(zf @ p["wd1"] + p["bd1"])
    h = act(h @ p["wd2"] + p["bd2"])
    y = h @ p["wd3"] + p["bd3"]
    return y.reshape(B, T, -1)


if __name__ == "__main__":
    # Model config (small, consistent with the module's __init__):
    B, T = 64, 8                   # batch, timesteps (b_blk=32 -> grid of 2, M=256 decoder dots)
    in_features = 16               # config.in_features
    latent = 8                     # config.latent_features
    widths = [32, 16]              # config.coder_layers
    degree = 3                     # config.degree

    key = jax.random.PRNGKey(0)
    ks = jax.random.split(key, 16)

    def init(k, shape, scale=0.2):
        return (scale * jax.random.normal(k, shape)).astype(jnp.float32)

    params = {
        # Polynomial: nn.Linear(degree -> latent, bias=False); stored as W^T (deg, L)
        "w_poly": init(ks[0], (degree, latent)),
        # Encoder: F -> 32 -> 16 -> L
        "we1": init(ks[1], (in_features, widths[0])),
        "be1": init(ks[2], (1, widths[0])),
        "we2": init(ks[3], (widths[0], widths[1])),
        "be2": init(ks[4], (1, widths[1])),
        "we3": init(ks[5], (widths[1], latent)),
        "be3": init(ks[6], (1, latent)),
        # Decoder: L -> 16 -> 32 -> F
        "wd1": init(ks[7], (latent, widths[1])),
        "bd1": init(ks[8], (1, widths[1])),
        "wd2": init(ks[9], (widths[1], widths[0])),
        "bd2": init(ks[10], (1, widths[0])),
        "wd3": init(ks[11], (widths[0], in_features)),
        "bd3": init(ks[12], (1, in_features)),
    }

    # Inputs: trajectory x (B, T, F) and time range t_range (T,)
    x = jax.random.normal(ks[13], (B, T, in_features), dtype=jnp.float32)
    t_range = jnp.linspace(0.0, 1.0, T, dtype=jnp.float32)

    out = polynomial_model_forward(x, t_range, params, degree=degree)
    out = jax.block_until_ready(out)

    ref = reference_forward(x, t_range, params, degree=degree)
    assert out.shape == (B, T, in_features)
    assert jnp.allclose(out, ref, atol=1e-4, rtol=1e-4), "mismatch vs reference"

    print("KERNEL_OK")
</pallas_src>

<mosaic_0001>
module attributes {stable_mosaic.version = 11 : i64} {
  func.func @_fused_kernel(%arg0: i32, %arg1: memref<32x16xf32, #tpu.memory_space<vmem>>, %arg2: memref<8x8xf32, #tpu.memory_space<vmem>>, %arg3: memref<16x32xf32, #tpu.memory_space<vmem>>, %arg4: memref<1x32xf32, #tpu.memory_space<vmem>>, %arg5: memref<32x16xf32, #tpu.memory_space<vmem>>, %arg6: memref<1x16xf32, #tpu.memory_space<vmem>>, %arg7: memref<16x8xf32, #tpu.memory_space<vmem>>, %arg8: memref<1x8xf32, #tpu.memory_space<vmem>>, %arg9: memref<8x16xf32, #tpu.memory_space<vmem>>, %arg10: memref<1x16xf32, #tpu.memory_space<vmem>>, %arg11: memref<16x32xf32, #tpu.memory_space<vmem>>, %arg12: memref<1x32xf32, #tpu.memory_space<vmem>>, %arg13: memref<32x16xf32, #tpu.memory_space<vmem>>, %arg14: memref<1x16xf32, #tpu.memory_space<vmem>>, %arg15: memref<256x16xf32, #tpu.memory_space<vmem>>) attributes {dimension_semantics = [#tpu.dimension_semantics<parallel>], iteration_bounds = array<i64: 2>, scalar_prefetch = 0 : i64, scratch_operands = 0 : i64, tpu.core_type = #tpu.core_type<tc>, window_params = [{transform_indices = @transform_0, window_bounds = array<i64: 32, 16>}, {pipeline_mode = #tpu.pipeline_mode<synchronous>, transform_indices = @transform_1, window_bounds = array<i64: 8, 8>}, {pipeline_mode = #tpu.pipeline_mode<synchronous>, transform_indices = @transform_2, window_bounds = array<i64: 16, 32>}, {pipeline_mode = #tpu.pipeline_mode<synchronous>, transform_indices = @transform_3, window_bounds = array<i64: 1, 32>}, {pipeline_mode = #tpu.pipeline_mode<synchronous>, transform_indices = @transform_4, window_bounds = array<i64: 32, 16>}, {pipeline_mode = #tpu.pipeline_mode<synchronous>, transform_indices = @transform_5, window_bounds = array<i64: 1, 16>}, {pipeline_mode = #tpu.pipeline_mode<synchronous>, transform_indices = @transform_6, window_bounds = array<i64: 16, 8>}, {pipeline_mode = #tpu.pipeline_mode<synchronous>, transform_indices = @transform_7, window_bounds = array<i64: 1, 8>}, {pipeline_mode = #tpu.pipeline_mode<synchronous>, transform_indices = @transform_8, window_bounds = array<i64: 8, 16>}, {pipeline_mode = #tpu.pipeline_mode<synchronous>, transform_indices = @transform_9, window_bounds = array<i64: 1, 16>}, {pipeline_mode = #tpu.pipeline_mode<synchronous>, transform_indices = @transform_10, window_bounds = array<i64: 16, 32>}, {pipeline_mode = #tpu.pipeline_mode<synchronous>, transform_indices = @transform_11, window_bounds = array<i64: 1, 32>}, {pipeline_mode = #tpu.pipeline_mode<synchronous>, transform_indices = @transform_12, window_bounds = array<i64: 32, 16>}, {pipeline_mode = #tpu.pipeline_mode<synchronous>, transform_indices = @transform_13, window_bounds = array<i64: 1, 16>}, {transform_indices = @transform_14, window_bounds = array<i64: 256, 16>}]} {
    %c0 = arith.constant 0 : index
    %c0_0 = arith.constant 0 : index
    %0 = vector.load %arg1[%c0, %c0_0] : memref<32x16xf32, #tpu.memory_space<vmem>>, vector<32x16xf32>
    %c0_1 = arith.constant 0 : index
    %c0_2 = arith.constant 0 : index
    %1 = vector.load %arg3[%c0_1, %c0_2] : memref<16x32xf32, #tpu.memory_space<vmem>>, vector<16x32xf32>
    %cst = arith.constant dense<0.000000e+00> : vector<32x32xf32>
    %2 = tpu.matmul %0, %1, %cst {dimension_numbers = #tpu.dot_dimension_numbers<[1], [0], [0], [1], [0, 0, 1, 1], [], []>, precision = #tpu.contract_precision<fp32>} : vector<32x16xf32>, vector<16x32xf32>, vector<32x32xf32> -> vector<32x32xf32>
    %c0_3 = arith.constant 0 : index
    %c0_4 = arith.constant 0 : index
    %3 = vector.load %arg4[%c0_3, %c0_4] : memref<1x32xf32, #tpu.memory_space<vmem>>, vector<1x32xf32>
    %4 = vector.broadcast %3 : vector<1x32xf32> to vector<32x32xf32>
    %5 = arith.addf %2, %4 : vector<32x32xf32>
    %6 = math.tanh %5 : vector<32x32xf32>
    %c0_5 = arith.constant 0 : index
    %c0_6 = arith.constant 0 : index
    %7 = vector.load %arg5[%c0_5, %c0_6] : memref<32x16xf32, #tpu.memory_space<vmem>>, vector<32x16xf32>
    %cst_7 = arith.constant dense<0.000000e+00> : vector<32x16xf32>
    %8 = tpu.matmul %6, %7, %cst_7 {dimension_numbers = #tpu.dot_dimension_numbers<[1], [0], [0], [1], [0, 0, 1, 1], [], []>, precision = #tpu.contract_precision<fp32>} : vector<32x32xf32>, vector<32x16xf32>, vector<32x16xf32> -> vector<32x16xf32>
    %c0_8 = arith.constant 0 : index
    %c0_9 = arith.constant 0 : index
    %9 = vector.load %arg6[%c0_8, %c0_9] : memref<1x16xf32, #tpu.memory_space<vmem>>, vector<1x16xf32>
    %10 = vector.broadcast %9 : vector<1x16xf32> to vector<32x16xf32>
    %11 = arith.addf %8, %10 : vector<32x16xf32>
    %12 = math.tanh %11 : vector<32x16xf32>
    %c0_10 = arith.constant 0 : index
    %c0_11 = arith.constant 0 : index
    %13 = vector.load %arg7[%c0_10, %c0_11] : memref<16x8xf32, #tpu.memory_space<vmem>>, vector<16x8xf32>
    %cst_12 = arith.constant dense<0.000000e+00> : vector<32x8xf32>
    %14 = tpu.matmul %12, %13, %cst_12 {dimension_numbers = #tpu.dot_dimension_numbers<[1], [0], [0], [1], [0, 0, 1, 1], [], []>, precision = #tpu.contract_precision<fp32>} : vector<32x16xf32>, vector<16x8xf32>, vector<32x8xf32> -> vector<32x8xf32>
    %c0_13 = arith.constant 0 : index
    %c0_14 = arith.constant 0 : index
    %15 = vector.load %arg8[%c0_13, %c0_14] : memref<1x8xf32, #tpu.memory_space<vmem>>, vector<1x8xf32>
    %16 = vector.broadcast %15 : vector<1x8xf32> to vector<32x8xf32>
    %17 = arith.addf %14, %16 : vector<32x8xf32>
    %18 = math.tanh %17 : vector<32x8xf32>
    %19 = vector.shape_cast %18 : vector<32x8xf32> to vector<32x1x8xf32>
    %c0_15 = arith.constant 0 : index
    %c0_16 = arith.constant 0 : index
    %20 = vector.load %arg2[%c0_15, %c0_16] : memref<8x8xf32, #tpu.memory_space<vmem>>, vector<8x8xf32>
    %21 = vector.shape_cast %20 : vector<8x8xf32> to vector<1x8x8xf32>
    %22 = vector.broadcast %19 : vector<32x1x8xf32> to vector<32x8x8xf32>
    %23 = vector.broadcast %21 : vector<1x8x8xf32> to vector<32x8x8xf32>
    %24 = arith.addf %22, %23 : vector<32x8x8xf32>
    %25 = vector.shape_cast %24 : vector<32x8x8xf32> to vector<256x8xf32>
    %c0_17 = arith.constant 0 : index
    %c0_18 = arith.constant 0 : index
    %26 = vector.load %arg9[%c0_17, %c0_18] : memref<8x16xf32, #tpu.memory_space<vmem>>, vector<8x16xf32>
    %cst_19 = arith.constant dense<0.000000e+00> : vector<256x16xf32>
    %27 = tpu.matmul %25, %26, %cst_19 {dimension_numbers = #tpu.dot_dimension_numbers<[1], [0], [0], [1], [0, 0, 1, 1], [], []>, precision = #tpu.contract_precision<fp32>} : vector<256x8xf32>, vector<8x16xf32>, vector<256x16xf32> -> vector<256x16xf32>
    %c0_20 = arith.constant 0 : index
    %c0_21 = arith.constant 0 : index
    %28 = vector.load %arg10[%c0_20, %c0_21] : memref<1x16xf32, #tpu.memory_space<vmem>>, vector<1x16xf32>
    %29 = vector.broadcast %28 : vector<1x16xf32> to vector<256x16xf32>
    %30 = arith.addf %27, %29 : vector<256x16xf32>
    %31 = math.tanh %30 : vector<256x16xf32>
    %c0_22 = arith.constant 0 : index
    %c0_23 = arith.constant 0 : index
    %32 = vector.load %arg11[%c0_22, %c0_23] : memref<16x32xf32, #tpu.memory_space<vmem>>, vector<16x32xf32>
    %cst_24 = arith.constant dense<0.000000e+00> : vector<256x32xf32>
    %33 = tpu.matmul %31, %32, %cst_24 {dimension_numbers = #tpu.dot_dimension_numbers<[1], [0], [0], [1], [0, 0, 1, 1], [], []>, precision = #tpu.contract_precision<fp32>} : vector<256x16xf32>, vector<16x32xf32>, vector<256x32xf32> -> vector<256x32xf32>
    %c0_25 = arith.constant 0 : index
    %c0_26 = arith.constant 0 : index
    %34 = vector.load %arg12[%c0_25, %c0_26] : memref<1x32xf32, #tpu.memory_space<vmem>>, vector<1x32xf32>
    %35 = vector.broadcast %34 : vector<1x32xf32> to vector<256x32xf32>
    %36 = arith.addf %33, %35 : vector<256x32xf32>
    %37 = math.tanh %36 : vector<256x32xf32>
    %c0_27 = arith.constant 0 : index
    %c0_28 = arith.constant 0 : index
    %38 = vector.load %arg13[%c0_27, %c0_28] : memref<32x16xf32, #tpu.memory_space<vmem>>, vector<32x16xf32>
    %cst_29 = arith.constant dense<0.000000e+00> : vector<256x16xf32>
    %39 = tpu.matmul %37, %38, %cst_29 {dimension_numbers = #tpu.dot_dimension_numbers<[1], [0], [0], [1], [0, 0, 1, 1], [], []>, precision = #tpu.contract_precision<fp32>} : vector<256x32xf32>, vector<32x16xf32>, vector<256x16xf32> -> vector<256x16xf32>
    %c0_30 = arith.constant 0 : index
    %c0_31 = arith.constant 0 : index
    %40 = vector.load %arg14[%c0_30, %c0_31] : memref<1x16xf32, #tpu.memory_space<vmem>>, vector<1x16xf32>
    %41 = vector.broadcast %40 : vector<1x16xf32> to vector<256x16xf32>
    %42 = arith.addf %39, %41 : vector<256x16xf32>
    %c0_32 = arith.constant 0 : index
    %c0_33 = arith.constant 0 : index
    %43 = vector.load %arg15[%c0_32, %c0_33] : memref<256x16xf32, #tpu.memory_space<vmem>>, vector<256x16xf32>
    tpu.vector_store %arg15[%c0_32, %c0_33], %42 {strides = array<i32>} : memref<256x16xf32, #tpu.memory_space<vmem>>, vector<256x16xf32>,
    return
  }
  func.func @transform_0(%arg0: i32) -> (i32, i32) {
    %c0_i32 = arith.constant 0 : i32
    %c0_i32_0 = arith.constant 0 : i32
    return %arg0, %c0_i32 : i32, i32
  }
  func.func @transform_1(%arg0: i32) -> (i32, i32) {
    %c0_i32 = arith.constant 0 : i32
    %c0_i32_0 = arith.constant 0 : i32
    %c0_i32_1 = arith.constant 0 : i32
    return %c0_i32, %c0_i32_0 : i32, i32
  }
  func.func @transform_2(%arg0: i32) -> (i32, i32) {
    %c0_i32 = arith.constant 0 : i32
    %c0_i32_0 = arith.constant 0 : i32
    %c0_i32_1 = arith.constant 0 : i32
    return %c0_i32, %c0_i32_0 : i32, i32
  }
  func.func @transform_3(%arg0: i32) -> (i32, i32) {
    %c0_i32 = arith.constant 0 : i32
    %c0_i32_0 = arith.constant 0 : i32
    %c0_i32_1 = arith.constant 0 : i32
    return %c0_i32, %c0_i32_0 : i32, i32
  }
  func.func @transform_4(%arg0: i32) -> (i32, i32) {
    %c0_i32 = arith.constant 0 : i32
    %c0_i32_0 = arith.constant 0 : i32
    %c0_i32_1 = arith.constant 0 : i32
    return %c0_i32, %c0_i32_0 : i32, i32
  }
  func.func @transform_5(%arg0: i32) -> (i32, i32) {
    %c0_i32 = arith.constant 0 : i32
    %c0_i32_0 = arith.constant 0 : i32
    %c0_i32_1 = arith.constant 0 : i32
    return %c0_i32, %c0_i32_0 : i32, i32
  }
  func.func @transform_6(%arg0: i32) -> (i32, i32) {
    %c0_i32 = arith.constant 0 : i32
    %c0_i32_0 = arith.constant 0 : i32
    %c0_i32_1 = arith.constant 0 : i32
    return %c0_i32, %c0_i32_0 : i32, i32
  }
  func.func @transform_7(%arg0: i32) -> (i32, i32) {
    %c0_i32 = arith.constant 0 : i32
    %c0_i32_0 = arith.constant 0 : i32
    %c0_i32_1 = arith.constant 0 : i32
    return %c0_i32, %c0_i32_0 : i32, i32
  }
  func.func @transform_8(%arg0: i32) -> (i32, i32) {
    %c0_i32 = arith.constant 0 : i32
    %c0_i32_0 = arith.constant 0 : i32
    %c0_i32_1 = arith.constant 0 : i32
    return %c0_i32, %c0_i32_0 : i32, i32
  }
  func.func @transform_9(%arg0: i32) -> (i32, i32) {
    %c0_i32 = arith.constant 0 : i32
    %c0_i32_0 = arith.constant 0 : i32
    %c0_i32_1 = arith.constant 0 : i32
    return %c0_i32, %c0_i32_0 : i32, i32
  }
  func.func @transform_10(%arg0: i32) -> (i32, i32) {
    %c0_i32 = arith.constant 0 : i32
    %c0_i32_0 = arith.constant 0 : i32
    %c0_i32_1 = arith.constant 0 : i32
    return %c0_i32, %c0_i32_0 : i32, i32
  }
  func.func @transform_11(%arg0: i32) -> (i32, i32) {
    %c0_i32 = arith.constant 0 : i32
    %c0_i32_0 = arith.constant 0 : i32
    %c0_i32_1 = arith.constant 0 : i32
    return %c0_i32, %c0_i32_0 : i32, i32
  }
  func.func @transform_12(%arg0: i32) -> (i32, i32) {
    %c0_i32 = arith.constant 0 : i32
    %c0_i32_0 = arith.constant 0 : i32
    %c0_i32_1 = arith.constant 0 : i32
    return %c0_i32, %c0_i32_0 : i32, i32
  }
  func.func @transform_13(%arg0: i32) -> (i32, i32) {
    %c0_i32 = arith.constant 0 : i32
    %c0_i32_0 = arith.constant 0 : i32
    %c0_i32_1 = arith.constant 0 : i32
    return %c0_i32, %c0_i32_0 : i32, i32
  }
  func.func @transform_14(%arg0: i32) -> (i32, i32) {
    %c0_i32 = arith.constant 0 : i32
    %c0_i32_0 = arith.constant 0 : i32
    return %arg0, %c0_i32 : i32, i32
  }
}

</mosaic_0001>

<bundles_post_ra>
// kernel: tpu_custom_call.1
= control target key start
LH: loop header
LB: loop body
LE: loop exit
PB: predicated region body
PF: predicated region fallthrough
CT: control target
= control target key end

     0   :  { %s10747_s29 = smov 0   ;;  %s14045_s0 = inlined_call_operand.vmem [shape: f32[64,16], index: 0, kind: input, shape index: {}]   ;;  %s14046_s1 = inlined_call_operand.vmem [shape: f32[8,8], index: 1, kind: input, shape index: {}]   ;;  %s14047_s2 = inlined_call_operand.vmem [shape: f32[16,32], index: 2, kind: input, shape index: {}]   ;;  %s14048_s3 = inlined_call_operand.vmem [shape: f32[1,32], index: 3, kind: input, shape index: {}]   ;;  %s14049_s4 = inlined_call_operand.vmem [shape: f32[32,16], index: 4, kind: input, shape index: {}]   ;;  %s14050_s5 = inlined_call_operand.vmem [shape: f32[1,16], index: 5, kind: input, shape index: {}]   ;;  %s14051_s6 = inlined_call_operand.vmem [shape: f32[16,8], index: 6, kind: input, shape index: {}]   ;;  %s14052_s7 = inlined_call_operand.vmem [shape: f32[1,8], index: 7, kind: input, shape index: {}]   ;;  %s14053_s8 = inlined_call_operand.vmem [shape: f32[8,16], index: 8, kind: input, shape index: {}]   ;;  %s14054_s9 = inlined_call_operand.vmem [shape: f32[1,16], index: 9, kind: input, shape index: {}]   ;;  %s14055_s10 = inlined_call_operand.vmem [shape: f32[16,32], index: 10, kind: input, shape index: {}]   ;;  %s14056_s11 = inlined_call_operand.vmem [shape: f32[1,32], index: 11, kind: input, shape index: {}]   ;;  %s14057_s12 = inlined_call_operand.vmem [shape: f32[32,16], index: 12, kind: input, shape index: {}]   ;;  %s14058_s13 = inlined_call_operand.vmem [shape: f32[1,16], index: 13, kind: input, shape index: {}]   ;;  %s14059_s14 = inlined_call_operand.vmem [shape: f32[512,16], index: 14, kind: output, shape index: {}]  }
   0x1 LB: > { %s8595_s30 = sadd.s32 4294967295, %s10669_s29   ;;  %p8599_p0 = scmp.ge.s32.totalorder %s10669_s29, 1  ;;  %s10669_s29 = sphi %s10747_s29, %s24_s29  }
   0x2   : > { %p413_p1 = scmp.lt.s32.totalorder %s10669_s29, 3 }
   0x4   : > { %p414_p2 = pnand %p8599_p0, %p413_p1 }
   0x6   : > { %417 = sbr.rel (%p414_p2) target bundleno = 1879 (0x757), region = 76 }
   0xb   : > { %v476_v0 = vld [vmem:[%s14047_s2 + $0x8] sm:$0xff]  ;;  %v475_v1 = vld [vmem:[%s14047_s2] sm:$0xff]  ;;  %s8600_s19 = sshll.u32 %s8595_s30, 2  ;;  %vm484_vm0 = vcmask 130048   ;;  %v1092_v40 = vld [vmem:[%s14049_s4 + $0x18] sm:$0xff]  ;;  %vm1100_vm1 = vcmask 261120  }
   0xc   : > { %v10763_v2 = vand.u32 4294901760, %v476_v0  ;;  %v10765_v3 = vand.u32 4294901760, %v475_v1  ;;  %p460_p3 = scmp.lt.s32.totalorder %s8600_s19, 7  ;;  %v10801_v41 = vand.u32 4294901760, %v1092_v40  ;;  %v1091_v42 = vld [vmem:[%s14049_s4 + $0x10] sm:$0xff]  ;;  %v1090_v45 = vld [vmem:[%s14049_s4 + $0x8] sm:$0xff] }
   0xd   : > { %v10809_v44 = vand.u32 4294901760, %v1091_v42  ;;  %v10822_v48 = vand.u32 4294901760, %v1090_v45  ;;  %v1089_v49 = vld [vmem:[%s14049_s4] sm:$0xff]  ;;  %vm2745_vm2 = vcmask 64512   ;;  %s8602_s22 = sshll.u32 %s8595_s30, 5 }
   0xe   : > { %9350 = vmatprep.subr.mxu0 %v10763_v2  ;;  %v634_v4 = vsub.f32 %v476_v0, %v10763_v2  ;;  %v641_v5 = vsub.f32 %v475_v1, %v10765_v3  ;;  %s14737_s19 = smov (!%p460_p3, %s8600_s19), 7  ;;  %v10807_v43 = vsub.f32 %v1092_v40, %v10801_v41  ;;  %v10828_v50 = vand.u32 4294901760, %v1089_v49  ;;  %p466_p4 = scmp.lt.s32.totalorder %s8602_s22, 63 }
   0xf   : > { %9351 = vmatpush3.msra.mxu0 %v10763_v2  ;;  %s8601_s20 = sshll.u32 %s14737_s19, 3  ;;  %v10820_v47 = vsub.f32 %v1091_v42, %v10809_v44  ;;  %v10837_v53 = vsub.f32 %v1090_v45, %v10822_v48 }
  0x10   : > { %v10771_v6 = vand.u32 4294901760, %v634_v4  ;;  %9352 = vmatprep.subr.mxu0 %v10765_v3  ;;  %v10774_v7 = vand.u32 4294901760, %v641_v5  ;;  %s463_s23 = scalar_lea.vmem %s14045_s0, %s8601_s20  ;;  %v10817_v46 = vand.u32 4294901760, %v10807_v43  ;;  %v10841_v54 = vsub.f32 %v1089_v49, %v10828_v50  ;;  %s14739_s22 = smov (!%p466_p4, %s8602_s22), 63 }
  0x11   : > { %9353 = vmatpush3.msra.mxu0 %v10765_v3  ;;  %v471_v10 = vld [vmem:[%s463_s23] sm:$0xff]  ;;  %v472_v11 = vld [vmem:[%s463_s23 + $0x8] sm:$0xff]  ;;  %v473_v12 = vld [vmem:[%s463_s23 + $0x10] sm:$0xff]  ;;  %v10834_v52 = vand.u32 4294901760, %v10820_v47  ;;  %v10847_v57 = vand.u32 4294901760, %v10837_v53  ;;  %s8603_s30 = sshll.u32 %s14739_s22, 3 }
  0x12   : > { %v636_v8 = vsub.f32 %v634_v4, %v10771_v6  ;;  %v643_v9 = vsub.f32 %v641_v5, %v10774_v7  ;;  %9370 = vmatprep.subr.mxu0 %v634_v4  ;;  %v486_v13 = vsel %vm484_vm0, %v471_v10, 0  ;;  %v489_v14 = vsel %vm484_vm0, %v472_v11, 0  ;;  %v474_v16 = vld [vmem:[%s463_s23 + $0x18] sm:$0xff]  ;;  %s13890_s25 = scalar_lea.vmem %s14059_s14, %s8603_s30 }
  0x13   : > { %v492_v15 = vsel %vm484_vm0, %v473_v12, 0  ;;  %v564_v19 = vand.u32 4294901760, %v486_v13  ;;  %v574_v20 = vand.u32 4294901760, %v489_v14  ;;  %v495_v22 = vsel %vm484_vm0, %v474_v16, 0 }
  0x14   : > { %v637_v17 = vand.u32 4294901760, %v636_v8  ;;  %v644_v18 = vand.u32 4294901760, %v643_v9  ;;  %v584_v21 = vand.u32 4294901760, %v492_v15  ;;  %v594_v25 = vand.u32 4294901760, %v495_v22 }
  0x15   : > { %v565_v23 = vsub.f32 %v486_v13, %v564_v19  ;;  %9364 = vmatprep.mubr.f32.mxu1 %v564_v19  ;;  %v575_v24 = vsub.f32 %v489_v14, %v574_v20  ;;  %v1250_v51 = vsub.f32 %v10807_v43, %v10817_v46  ;;  %v1257_v56 = vsub.f32 %v10820_v47, %v10834_v52 }
  0x16   : > { %9360 = vmatprep.subr.mxu1 %v637_v17  ;;  %v585_v26 = vsub.f32 %v492_v15, %v584_v21  ;;  %v595_v29 = vsub.f32 %v495_v22, %v594_v25  ;;  %v10851_v58 = vand.u32 4294901760, %v10841_v54  ;;  %v1264_v60 = vsub.f32 %v10837_v53, %v10847_v57 }
  0x17   : > { %9361 = vmatpush3.msra.mxu1 %v637_v17  ;;  %v566_v27 = vand.u32 4294901760, %v565_v23  ;;  %v576_v28 = vand.u32 4294901760, %v575_v24  ;;  %v1251_v55 = vand.u32 4294901760, %v1250_v51  ;;  %v1258_v59 = vand.u32 4294901760, %v1257_v56 }
  0x18   : > { %9362 = vmatprep.subr.mxu1 %v644_v18  ;;  %v586_v30 = vand.u32 4294901760, %v585_v26  ;;  %v596_v33 = vand.u32 4294901760, %v595_v29  ;;  %v1271_v61 = vsub.f32 %v10841_v54, %v10851_v58  ;;  %v1265_v62 = vand.u32 4294901760, %v1264_v60 }
  0x19   : > { %9363 = vmatpush3.msra.mxu1 %v644_v18  ;;  %v567_v31 = vsub.f32 %v565_v23, %v566_v27  ;;  %v577_v32 = vsub.f32 %v575_v24, %v576_v28 }
  0x1a   : > { %9365 = vmatmul.mubr.f32.vlgmr.msra.gmra.mxu1 %v574_v20  ;;  %9380 = vmatprep.subr.mxu1 %v10763_v2  ;;  %v587_v34 = vsub.f32 %v585_v26, %v586_v30  ;;  %v597_v37 = vsub.f32 %v595_v29, %v596_v33  ;;  %v1272_v63 = vand.u32 4294901760, %v1271_v61 }
  0x1b   : > { %9381 = vmatpush3.msra.mxu1 %v10763_v2  ;;  %9367 = vmatprep.mubr.f32.mxu1 %v584_v21  ;;  %v568_v35 = vand.u32 4294901760, %v567_v31  ;;  %v578_v36 = vand.u32 4294901760, %v577_v32 }
  0x1c   : > { %9382 = vmatprep.subr.mxu1 %v10765_v3  ;;  %v588_v38 = vand.u32 4294901760, %v587_v34  ;;  %v598_v39 = vand.u32 4294901760, %v597_v37 }
  0x1d   : > { %9383 = vmatpush3.msra.mxu1 %v10765_v3  ;;  %9354 = vmatprep.mubr.f32.mxu0 %v568_v35 }
  0x1e   : > { %9368 = vmatmul.mubr.f32.gmra.mxu1 %v594_v25  ;;  %9355 = vmatmul.mubr.f32.vlgmr.msra.gmra.mxu0 %v578_v36 }
  0x1f   : > { %9384 = vmatprep.mubr.f32.mxu1 %v566_v27  ;;  %9371 = vmatpush3.msra.mxu0 %v634_v4 }
  0x20   : > { %9357 = vmatprep.mubr.f32.mxu0 %v588_v38  ;;  %9372 = vmatprep.subr.mxu0 %v641_v5 }
  0x21   : > { %9400 = vmatprep.subr.mxu1 %v10763_v2  ;;  %9373 = vmatpush3.msra.mxu0 %v641_v5  ;;  %v8604_v5 = vld [vmem:[%s14048_s3] ss:$0 sm:$0xff] }
  0x22   : > { %9385 = vmatmul.mubr.f32.vlgmr.msra.gmra.mxu1 %v576_v28  ;;  %9358 = vmatmul.mubr.f32.gmra.mxu0 %v598_v39 }
  0x23   : > { %9390 = vmatprep.subr.mxu0 %v10771_v6  ;;  %9374 = vmatprep.mubr.f32.mxu0 %v565_v23 }
  0x24   : > { %9401 = vmatpush3.msra.mxu1 %v10763_v2  ;;  %9387 = vmatprep.mubr.f32.mxu1 %v586_v30 }
  0x25   : > { %9402 = vmatprep.subr.mxu1 %v10765_v3 }
  0x26   : > { %9388 = vmatmul.mubr.f32.gmra.mxu1 %v596_v33  ;;  %9375 = vmatmul.mubr.f32.vlgmr.msra.gmra.mxu0 %v575_v24 }
  0x27   : > { %9403 = vmatpush3.msra.mxu1 %v10765_v3  ;;  %9391 = vmatpush3.msra.mxu0 %v10771_v6 }
  0x28   : > { %9377 = vmatprep.mubr.f32.mxu0 %v585_v26  ;;  %9392 = vmatprep.subr.mxu0 %v10774_v7 }
  0x29   : > { %9404 = vmatprep.mubr.f32.mxu1 %v564_v19  ;;  %9393 = vmatpush3.msra.mxu0 %v10774_v7 }
  0x2a   : > { %9405 = vmatmul.mubr.f32.vlgmr.msra.gmra.mxu1 %v574_v20  ;;  %9378 = vmatmul.mubr.f32.gmra.mxu0 %v595_v29 }
  0x2b   : > { %9407 = vmatprep.mubr.f32.mxu1 %v584_v21  ;;  %9394 = vmatprep.mubr.f32.mxu0 %v564_v19 }
  0x2c   : > { %9410 = vmatprep.subr.mxu0 %v10801_v41  ;;  %9424 = vmatprep.subr.mxu1 %v1251_v55 }
  0x2d   : > { %9425 = vmatpush3.msra.mxu1 %v1251_v55 }
  0x2e   : > { %9408 = vmatmul.mubr.f32.gmra.mxu1 %v594_v25  ;;  %9395 = vmatmul.mubr.f32.vlgmr.msra.gmra.mxu0 %v574_v20 }
  0x2f   : > { %9397 = vmatprep.mubr.f32.mxu0 %v584_v21  ;;  %9411 = vmatpush3.msra.mxu0 %v10801_v41 }
  0x30   : > { %9412 = vmatprep.subr.mxu0 %v10809_v44  ;;  %9426 = vmatprep.subr.mxu1 %v1258_v59 }
  0x31   : > { %9413 = vmatpush3.msra.mxu0 %v10809_v44  ;;  %9427 = vmatpush3.msra.mxu1 %v1258_v59 }
  0x32   : > { %9398 = vmatmul.mubr.f32.gmra.mxu0 %v594_v25  ;;  %9414 = vmatprep.subr.mxu0 %v10822_v48 }
  0x33   : > { %9415 = vmatpush3.msra.mxu0 %v10822_v48  ;;  %9428 = vmatprep.subr.mxu1 %v1265_v62 }
  0x34   : > { %9416 = vmatprep.subr.mxu0 %v10828_v50  ;;  %9429 = vmatpush3.msra.mxu1 %v1265_v62 }
  0x35   : > { %9417 = vmatpush3.msra.mxu0 %v10828_v50  ;;  %9430 = vmatprep.subr.mxu1 %v1272_v63 }
  0x36   : > { %9438 = vmatprep.subr.mxu0 %v10807_v43  ;;  %9431 = vmatpush3.msra.mxu1 %v1272_v63 }
  0x37   : > { %9452 = vmatprep.subr.mxu1 %v10801_v41 }
  0xda   : > { %v9366_v0 = vpop.f32.mrf.mxu1 }
  0xdc   : > { %v681_v1 = vpop.f32.mrf.mxu1 }
  0xde   : > { %v9369_v2 = vpop.f32.mrf.mxu1  ;;  %v9356_v3 = vpop.f32.mrf.mxu0 }
  0xdf   : > { %v581_v9 = vadd.f32 %v9356_v3, %v8604_v5 }
  0xe0   : > { %v693_v4 = vpop.f32.mrf.mxu1  ;;  %v570_v6 = vpop.f32.mrf.mxu0 }
  0xe1   : > { %v571_v12 = vadd.f32 %v8604_v5, %v570_v6  ;;  %v688_v15 = vadd.f32 %v9366_v0, %v581_v9 }
  0xe2   : > { %v9386_v7 = vpop.f32.mrf.mxu1  ;;  %v9359_v8 = vpop.f32.mrf.mxu0 }
  0xe3   : > { %v601_v16 = vadd.f32 %v9359_v8, %v8604_v5  ;;  %v682_v19 = vadd.f32 %v681_v1, %v571_v12 }
  0xe4   : > { %v871_v10 = vpop.f32.mrf.mxu1  ;;  %v590_v11 = vpop.f32.mrf.mxu0 }
  0xe5   : > { %v591_v20 = vadd.f32 %v8604_v5, %v590_v11  ;;  %v700_v24 = vadd.f32 %v9369_v2, %v601_v16 }
  0xe6   : > { %v9389_v13 = vpop.f32.mrf.mxu1  ;;  %v9376_v14 = vpop.f32.mrf.mxu0 }
  0xe7   : > { %v783_v21 = vadd.f32 %v9376_v14, %v688_v15  ;;  %v694_v27 = vadd.f32 %v693_v4, %v591_v20 }
  0xe8   : > { %v887_v17 = vpop.f32.mrf.mxu1  ;;  %v775_v18 = vpop.f32.mrf.mxu0 }
  0xe9   : > { %v776_v25 = vadd.f32 %v775_v18, %v682_v19  ;;  %v880_v28 = vadd.f32 %v9386_v7, %v783_v21 }
  0xea   : > { %v9379_v22 = vpop.f32.mrf.mxu0  ;;  %v9406_v23 = vpop.f32.mrf.mxu1 }
  0xeb   : > { %v797_v29 = vadd.f32 %v9379_v22, %v700_v24  ;;  %v872_v32 = vadd.f32 %v871_v10, %v776_v25 }
  0xec   : > { %v789_v26 = vpop.f32.mrf.mxu0  ;;  %v1063_v31 = vpop.f32.mrf.mxu1 }
  0xed   : > { %v790_v33 = vadd.f32 %v789_v26, %v694_v27  ;;  %v896_v36 = vadd.f32 %v9389_v13, %v797_v29 }
  0xee   : > { %v9396_v30 = vpop.f32.mrf.mxu0  ;;  %v9409_v40 = vpop.f32.mrf.mxu1 }
  0xef   : > { %v979_v34 = vadd.f32 %v9396_v30, %v880_v28  ;;  %v888_v42 = vadd.f32 %v887_v17, %v790_v33  ;;  %v8605_v33 = vld [vmem:[%s14050_s5] ss:$0 sm:$0xff] }
  0xf0   : > { %v972_v35 = vpop.f32.mrf.mxu0  ;;  %v1075_v59 = vpop.f32.mrf.mxu1 }
  0xf1   : > { %v1070_v37 = vadd.f32 %v9406_v23, %v979_v34  ;;  %v973_v38 = vadd.f32 %v972_v35, %v872_v32 }
  0xf2   : > { %v9399_v39 = vpop.f32.mrf.mxu0 }
  0xf3   : > { %10511 = vtanh.f32 %v1070_v37  ;;  %v1064_v45 = vadd.f32 %v1063_v31, %v973_v38  ;;  %v991_v49 = vadd.f32 %v9399_v39, %v896_v36 }
  0xf4   : > { %v984_v51 = vpop.f32.mrf.mxu0 }
  0xf5   : > { %10513 = vtanh.f32 %v1064_v45  ;;  %v1082_v55 = vadd.f32 %v9409_v40, %v991_v49  ;;  %v985_v56 = vadd.f32 %v984_v51, %v888_v42 }
  0xf7   : > { %10515 = vtanh.f32 %v1082_v55  ;;  %v1076_v60 = vadd.f32 %v1075_v59, %v985_v56 }
  0xf9   : > { %10517 = vtanh.f32 %v1076_v60 }
 0x100   : > { %v10512_v61 = vpop.eup %10511 }
 0x101   : > { %v1105_v62 = vsel %vm1100_vm1, %v10512_v61, 0 }
 0x102   : > { %v10514_v63 = vpop.eup %10513  ;;  %v10864_v0 = vand.u32 4294901760, %v1105_v62 }
 0x103   : > { %v1102_v1 = vsel %vm1100_vm1, %v10514_v63, 0 }
 0x104   : > { %v10516_v2 = vpop.eup %10515  ;;  %v10867_v3 = vand.u32 4294901760, %v1102_v1  ;;  %v1193_v4 = vsub.f32 %v1105_v62, %v10864_v0 }
 0x105   : > { %v1111_v5 = vsel %vm1100_vm1, %v10516_v2, 0 }
 0x106   : > { %v10518_v6 = vpop.eup %10517  ;;  %9432 = vmatprep.mubr.f32.mxu1 %v10867_v3  ;;  %v10872_v7 = vand.u32 4294901760, %v1111_v5  ;;  %v1183_v8 = vsub.f32 %v1102_v1, %v10867_v3  ;;  %v1194_v9 = vand.u32 4294901760, %v1193_v4 }
 0x107   : > { %9433 = vmatmul.mubr.f32.vlgmr.msra.gmra.mxu1 %v10864_v0  ;;  %v1108_v10 = vsel %vm1100_vm1, %v10518_v6, 0 }
 0x108   : > { %9453 = vmatpush3.msra.mxu1 %v10801_v41  ;;  %v1202_v11 = vand.u32 4294901760, %v1108_v10  ;;  %v1184_v12 = vand.u32 4294901760, %v1183_v8  ;;  %v1213_v13 = vsub.f32 %v1111_v5, %v10872_v7  ;;  %v1195_v14 = vsub.f32 %v1193_v4, %v1194_v9 }
 0x109   : > { %9454 = vmatprep.subr.mxu1 %v10809_v44 }
 0x10a   : > { %9435 = vmatprep.mubr.f32.mxu1 %v1202_v11  ;;  %9455 = vmatpush3.msra.mxu1 %v10809_v44  ;;  %v1185_v15 = vsub.f32 %v1183_v8, %v1184_v12  ;;  %v1203_v16 = vsub.f32 %v1108_v10, %v1202_v11  ;;  %v1214_v17 = vand.u32 4294901760, %v1213_v13  ;;  %v1196_v20 = vand.u32 4294901760, %v1195_v14 }
 0x10b   : > { %9436 = vmatmul.mubr.f32.gmra.mxu1 %v10872_v7  ;;  %9456 = vmatprep.subr.mxu1 %v10822_v48 }
 0x10c   : > { %9457 = vmatpush3.msra.mxu1 %v10822_v48  ;;  %9460 = vmatprep.mubr.f32.mxu1 %v1184_v12  ;;  %v1186_v18 = vand.u32 4294901760, %v1185_v15  ;;  %v1204_v19 = vand.u32 4294901760, %v1203_v16  ;;  %v1215_v22 = vsub.f32 %v1213_v13, %v1214_v17 }
 0x10d   : > { %9458 = vmatprep.subr.mxu1 %v10828_v50 }
 0x10e   : > { %9418 = vmatprep.mubr.f32.mxu0 %v1186_v18  ;;  %9459 = vmatpush3.msra.mxu1 %v10828_v50  ;;  %v1205_v21 = vsub.f32 %v1203_v16, %v1204_v19  ;;  %v1216_v24 = vand.u32 4294901760, %v1215_v22 }
 0x10f   : > { %9419 = vmatmul.mubr.f32.vlgmr.msra.gmra.mxu0 %v1196_v20  ;;  %9461 = vmatmul.mubr.f32.vlgmr.msra.gmra.mxu1 %v1194_v9 }
 0x110   : > { %9439 = vmatpush3.msra.mxu0 %v10807_v43  ;;  %9480 = vmatprep.subr.mxu1 %v10801_v41  ;;  %v1206_v23 = vand.u32 4294901760, %v1205_v21  ;;  %v1731_v43 = vld [vmem:[%s14051_s6] sm:$0xff] }
 0x111   : > { %9440 = vmatprep.subr.mxu0 %v10820_v47  ;;  %9463 = vmatprep.mubr.f32.mxu1 %v1204_v19 }
 0x112   : > { %9481 = vmatpush3.msra.mxu1 %v10801_v41  ;;  %9441 = vmatpush3.msra.mxu0 %v10820_v47  ;;  %v1732_v41 = vld [vmem:[%s14051_s6 + $0x8] sm:$0xff] }
 0x113   : > { %9482 = vmatprep.subr.mxu1 %v10809_v44  ;;  %9421 = vmatprep.mubr.f32.mxu0 %v1206_v23 }
 0x114   : > { %9442 = vmatprep.subr.mxu0 %v10837_v53  ;;  %9483 = vmatpush3.msra.mxu1 %v10809_v44  ;;  %v10921_v44 = vand.u32 4294901760, %v1732_v41 }
 0x115   : > { %9422 = vmatmul.mubr.f32.gmra.mxu0 %v1216_v24  ;;  %9464 = vmatmul.mubr.f32.gmra.mxu1 %v1214_v17 }
 0x116   : > { %9443 = vmatpush3.msra.mxu0 %v10837_v53  ;;  %9484 = vmatprep.subr.mxu1 %v10822_v48  ;;  %v10926_v47 = vsub.f32 %v1732_v41, %v10921_v44 }
 0x117   : > { %9444 = vmatprep.subr.mxu0 %v10841_v54  ;;  %9446 = vmatprep.mubr.f32.mxu0 %v1183_v8 }
 0x118   : > { %9485 = vmatpush3.msra.mxu1 %v10822_v48  ;;  %9488 = vmatprep.mubr.f32.mxu1 %v10867_v3 }
 0x119   : > { %9445 = vmatpush3.msra.mxu0 %v10841_v54  ;;  %9486 = vmatprep.subr.mxu1 %v10828_v50 }
 0x11a   : > { %9466 = vmatprep.subr.mxu0 %v10817_v46  ;;  %9487 = vmatpush3.msra.mxu1 %v10828_v50  ;;  %v10934_v50 = vand.u32 4294901760, %v10926_v47 }
 0x11b   : > { %9447 = vmatmul.mubr.f32.vlgmr.msra.gmra.mxu0 %v1193_v4  ;;  %9489 = vmatmul.mubr.f32.vlgmr.msra.gmra.mxu1 %v10864_v0 }
 0x11c   : > { %9467 = vmatpush3.msra.mxu0 %v10817_v46  ;;  %9449 = vmatprep.mubr.f32.mxu0 %v1203_v16  ;;  %v10923_v46 = vand.u32 4294901760, %v1731_v43  ;;  %v1891_v53 = vsub.f32 %v10926_v47, %v10934_v50 }
 0x11d   : > { %9468 = vmatprep.subr.mxu0 %v10834_v52  ;;  %9491 = vmatprep.mubr.f32.mxu1 %v1202_v11 }
 0x11e   : > { %9469 = vmatpush3.msra.mxu0 %v10834_v52  ;;  %v10929_v48 = vsub.f32 %v1731_v43, %v10923_v46 }
 0x11f   : > { %9470 = vmatprep.subr.mxu0 %v10847_v57  ;;  %9450 = vmatmul.mubr.f32.gmra.mxu0 %v1213_v13 }
 0x120   : > { %9471 = vmatpush3.msra.mxu0 %v10847_v57  ;;  %9492 = vmatmul.mubr.f32.gmra.mxu1 %v10872_v7  ;;  %v10937_v52 = vand.u32 4294901760, %v10929_v48  ;;  %v1892_v57 = vand.u32 4294901760, %v1891_v53 }
 0x121   : > { %9472 = vmatprep.subr.mxu0 %v10851_v58  ;;  %9474 = vmatprep.mubr.f32.mxu0 %v10867_v3 }
 0x122   : > { %9473 = vmatpush3.msra.mxu0 %v10851_v58  ;;  %v1898_v54 = vsub.f32 %v10929_v48, %v10937_v52  ;;  %9504 = vmatprep.subr.mxu1 %v1892_v57 }
 0x123   : > { %9475 = vmatmul.mubr.f32.vlgmr.msra.gmra.mxu0 %v10864_v0  ;;  %9494 = vmatprep.subr.mxu0 %v10921_v44 }
 0x124   : > { %9477 = vmatprep.mubr.f32.mxu0 %v1202_v11  ;;  %9495 = vmatpush3.msra.mxu0 %v10921_v44  ;;  %v1899_v58 = vand.u32 4294901760, %v1898_v54 }
 0x125   : > { %9496 = vmatprep.subr.mxu0 %v10923_v46  ;;  %9505 = vmatpush3.msra.mxu1 %v1892_v57 }
 0x126   : > { %9497 = vmatpush3.msra.mxu0 %v10923_v46  ;;  %9506 = vmatprep.subr.mxu1 %v1899_v58 }
 0x127   : > { %9478 = vmatmul.mubr.f32.gmra.mxu0 %v10872_v7  ;;  %9514 = vmatprep.subr.mxu0 %v10926_v47 }
 0x128   : > { %9507 = vmatpush3.msra.mxu1 %v1899_v58 }
 0x129   : > { %9524 = vmatprep.subr.mxu1 %v10921_v44 }
 0x1c7   : > { %v9434_v25 = vpop.f32.mrf.mxu1 }
 0x1c9   : > { %v1309_v26 = vpop.f32.mrf.mxu1 }
 0x1cb   : > { %v9437_v27 = vpop.f32.mrf.mxu1 }
 0x1cd   : > { %v1321_v28 = vpop.f32.mrf.mxu1 }
 0x1cf   : > { %v9420_v29 = vpop.f32.mrf.mxu0  ;;  %v9462_v30 = vpop.f32.mrf.mxu1 }
 0x1d0   : > { %v1199_v37 = vadd.f32 %v9420_v29, %v8605_v33 }
 0x1d1   : > { %v1188_v31 = vpop.f32.mrf.mxu0  ;;  %v1505_v32 = vpop.f32.mrf.mxu1 }
 0x1d2   : > { %v1189_v38 = vadd.f32 %v8605_v33, %v1188_v31  ;;  %v1316_v45 = vadd.f32 %v9434_v25, %v1199_v37 }
 0x1d4   : > { %v1310_v56 = vadd.f32 %v1309_v26, %v1189_v38 }
 0x1d5   : > { %v9423_v34 = vpop.f32.mrf.mxu0  ;;  %v9465_v35 = vpop.f32.mrf.mxu1 }
 0x1d6   : > { %v1219_v42 = vadd.f32 %v9423_v34, %v8605_v33 }
 0x1d7   : > { %v1208_v36 = vpop.f32.mrf.mxu0  ;;  %v1521_v39 = vpop.f32.mrf.mxu1 }
 0x1d8   : > { %v1209_v51 = vadd.f32 %v8605_v33, %v1208_v36  ;;  %v1328_v62 = vadd.f32 %v9437_v27, %v1219_v42 }
 0x1da   : > { %v1322_v1 = vadd.f32 %v1321_v28, %v1209_v51 }
 0x1db   : > { %v9448_v40 = vpop.f32.mrf.mxu0  ;;  %v9490_v59 = vpop.f32.mrf.mxu1 }
 0x1dc   : > { %v1415_v55 = vadd.f32 %v9448_v40, %v1316_v45 }
 0x1dd   : > { %v1407_v49 = vpop.f32.mrf.mxu0  ;;  %v1705_v3 = vpop.f32.mrf.mxu1 }
 0x1de   : > { %v1408_v61 = vadd.f32 %v1407_v49, %v1310_v56  ;;  %v1514_v2 = vadd.f32 %v9462_v30, %v1415_v55 }
 0x1df   : > { %v9451_v60 = vpop.f32.mrf.mxu0 }
 0x1e0   : > { %v1429_v0 = vadd.f32 %v9451_v60, %v1328_v62  ;;  %v1506_v7 = vadd.f32 %v1505_v32, %v1408_v61  ;;  %v9493_v12 = vpop.f32.mrf.mxu1  ;;  %v8606_v62 = vld [vmem:[%s14052_s7] ss:$0 sm:$0xff] }
 0x1e1   : > { %v1421_v63 = vpop.f32.mrf.mxu0 }
 0x1e2   : > { %v1422_v5 = vadd.f32 %v1421_v63, %v1322_v1  ;;  %v1530_v11 = vadd.f32 %v9465_v35, %v1429_v0  ;;  %v1717_v20 = vpop.f32.mrf.mxu1 }
 0x1e3   : > { %v9476_v4 = vpop.f32.mrf.mxu0 }
 0x1e4   : > { %v1619_v6 = vadd.f32 %v9476_v4, %v1514_v2  ;;  %v1522_v16 = vadd.f32 %v1521_v39, %v1422_v5 }
 0x1e5   : > { %v1612_v8 = vpop.f32.mrf.mxu0 }
 0x1e6   : > { %v1712_v9 = vadd.f32 %v9490_v59, %v1619_v6  ;;  %v1613_v10 = vadd.f32 %v1612_v8, %v1506_v7 }
 0x1e7   : > { %v9479_v13 = vpop.f32.mrf.mxu0 }
 0x1e8   : > { %10519 = vtanh.f32 %v1712_v9  ;;  %v1706_v14 = vadd.f32 %v1705_v3, %v1613_v10  ;;  %v1631_v15 = vadd.f32 %v9479_v13, %v1530_v11 }
 0x1e9   : > { %v1624_v17 = vpop.f32.mrf.mxu0 }
 0x1ea   : > { %10521 = vtanh.f32 %v1706_v14  ;;  %v1724_v18 = vadd.f32 %v9493_v12, %v1631_v15  ;;  %v1625_v19 = vadd.f32 %v1624_v17, %v1522_v16 }
 0x1ec   : > { %10523 = vtanh.f32 %v1724_v18  ;;  %v1718_v21 = vadd.f32 %v1717_v20, %v1625_v19 }
 0x1ee   : > { %10525 = vtanh.f32 %v1718_v21 }
 0x1f5   : > { %v10520_v22 = vpop.eup %10519 }
 0x1f6   : > { %v1744_v23 = vsel %vm484_vm0, %v10520_v22, 0 }
 0x1f7   : > { %v10522_v24 = vpop.eup %10521  ;;  %v1829_v41 = vand.u32 4294901760, %v1744_v23 }
 0x1f8   : > { %v1741_v43 = vsel %vm484_vm0, %v10522_v24, 0 }
 0x1f9   : > { %v10524_v53 = vpop.eup %10523  ;;  %v1819_v54 = vand.u32 4294901760, %v1741_v43  ;;  %v1830_v57 = vsub.f32 %v1744_v23, %v1829_v41 }
 0x1fa   : > { %v1750_v58 = vsel %vm484_vm0, %v10524_v53, 0 }
 0x1fb   : > { %v10526_v25 = vpop.eup %10525  ;;  %9508 = vmatprep.mubr.f32.mxu1 %v1819_v54  ;;  %v1849_v26 = vand.u32 4294901760, %v1750_v58  ;;  %v1820_v27 = vsub.f32 %v1741_v43, %v1819_v54  ;;  %v1831_v28 = vand.u32 4294901760, %v1830_v57 }
 0x1fc   : > { %9509 = vmatmul.mubr.f32.vlgmr.msra.gmra.mxu1 %v1829_v41  ;;  %v1747_v29 = vsel %vm484_vm0, %v10526_v25, 0 }
 0x1fd   : > { %v1839_v30 = vand.u32 4294901760, %v1747_v29  ;;  %9525 = vmatpush3.msra.mxu1 %v10921_v44  ;;  %v1821_v31 = vand.u32 4294901760, %v1820_v27  ;;  %v1850_v32 = vsub.f32 %v1750_v58, %v1849_v26  ;;  %v1832_v33 = vsub.f32 %v1830_v57, %v1831_v28 }
 0x1fe   : > { %9526 = vmatprep.subr.mxu1 %v10923_v46 }
 0x1ff   : > { %9511 = vmatprep.mubr.f32.mxu1 %v1839_v30  ;;  %v1822_v34 = vsub.f32 %v1820_v27, %v1821_v31  ;;  %9527 = vmatpush3.msra.mxu1 %v10923_v46  ;;  %v1840_v35 = vsub.f32 %v1747_v29, %v1839_v30  ;;  %v1851_v36 = vand.u32 4294901760, %v1850_v32  ;;  %v1833_v39 = vand.u32 4294901760, %v1832_v33 }
 0x200   : > { %9512 = vmatmul.mubr.f32.gmra.mxu1 %v1849_v26  ;;  %9544 = vmatprep.subr.mxu1 %v10921_v44 }
 0x201   : > { %9528 = vmatprep.mubr.f32.mxu1 %v1821_v31  ;;  %v1823_v37 = vand.u32 4294901760, %v1822_v34  ;;  %v1841_v38 = vand.u32 4294901760, %v1840_v35  ;;  %v1852_v40 = vsub.f32 %v1850_v32, %v1851_v36  ;;  %v10671_v31 = vmov 1966171168  }
 0x203   : > { %9498 = vmatprep.mubr.f32.mxu0 %v1823_v37  ;;  %v1842_v42 = vsub.f32 %v1840_v35, %v1841_v38  ;;  %v1853_v49 = vand.u32 4294901760, %v1852_v40 }
 0x204   : > { %9499 = vmatmul.mubr.f32.vlgmr.msra.gmra.mxu0 %v1833_v39  ;;  %9529 = vmatmul.mubr.f32.vlgmr.msra.gmra.mxu1 %v1831_v28 }
 0x205   : > { %9515 = vmatpush3.msra.mxu0 %v10926_v47  ;;  %9531 = vmatprep.mubr.f32.mxu1 %v1841_v38  ;;  %v1843_v45 = vand.u32 4294901760, %v1842_v42 }
 0x206   : > { %9516 = vmatprep.subr.mxu0 %v10929_v48  ;;  %9545 = vmatpush3.msra.mxu1 %v10921_v44  ;;  %v2737_v44 = vld [vmem:[%s14053_s8] sm:$0xff] }
 0x207   : > { %9501 = vmatprep.mubr.f32.mxu0 %v1843_v45  ;;  %9517 = vmatpush3.msra.mxu0 %v10929_v48 }
 0x208   : > { %9502 = vmatmul.mubr.f32.gmra.mxu0 %v1853_v49  ;;  %9532 = vmatmul.mubr.f32.gmra.mxu1 %v1851_v36 }
 0x209   : > { %9518 = vmatprep.mubr.f32.mxu0 %v1820_v27  ;;  %9548 = vmatprep.mubr.f32.mxu1 %v1819_v54 }
 0x20a   : > { %9546 = vmatprep.subr.mxu1 %v10923_v46  ;;  %9534 = vmatprep.subr.mxu0 %v10934_v50 }
 0x20b   : > { %9547 = vmatpush3.msra.mxu1 %v10923_v46  ;;  %v10971_v46 = vand.u32 4294901760, %v2737_v44 }
 0x20c   : > { %9519 = vmatmul.mubr.f32.vlgmr.msra.gmra.mxu0 %v1830_v57  ;;  %9549 = vmatmul.mubr.f32.vlgmr.msra.gmra.mxu1 %v1829_v41 }
 0x20d   : > { %9535 = vmatpush3.msra.mxu0 %v10934_v50  ;;  %9521 = vmatprep.mubr.f32.mxu0 %v1840_v35  ;;  %v10974_v47 = vsub.f32 %v2737_v44, %v10971_v46  ;;  %v2352_v35 = vlaneseq }
 0x20e   : > { %9551 = vmatprep.mubr.f32.mxu1 %v1839_v30  ;;  %9536 = vmatprep.subr.mxu0 %v10937_v52 }
 0x20f   : > { %9537 = vmatpush3.msra.mxu0 %v10937_v52  ;;  %v10979_v48 = vand.u32 4294901760, %v10974_v47  ;;  %v2353_v39 = vshrl.u32 %v2352_v35, 7 }
 0x210   : > { %9522 = vmatmul.mubr.f32.gmra.mxu0 %v1850_v32  ;;  %9552 = vmatmul.mubr.f32.gmra.mxu1 %v1849_v26  ;;  %v2350_v32 = vunpack.c.l.s4 %v10671_v31 }
 0x211   : > { %9538 = vmatprep.mubr.f32.mxu0 %v1819_v54  ;;  %9554 = vmatprep.subr.mxu0 %v10971_v46  ;;  %v3262_v50 = vsub.f32 %v10974_v47, %v10979_v48 }
 0x212   : > { %v2351_v38 = vunpack.c.0.s8 %v2350_v32 }
 0x213   : > { %v3263_v52 = vand.u32 4294901760, %v3262_v50  ;;  %v10991_v50 = vsub.s32 0, %v2353_v39 }
 0x214   : > { %9539 = vmatmul.mubr.f32.vlgmr.msra.gmra.mxu0 %v1829_v41  ;;  %v10988_v40 = vsub.s32 %v2351_v38, %v2353_v39 }
 0x215   : > { %9541 = vmatprep.mubr.f32.mxu0 %v1839_v30  ;;  %9555 = vmatpush3.msra.mxu0 %v10971_v46 }
 0x216   : > { %9654 = vmatprep.subr.mxu0 %v10974_v47  ;;  %9604 = vmatprep.subr.mxu1 %v3263_v52 }
 0x217   : > { %9605 = vmatpush3.msra.mxu1 %v3263_v52 }
 0x218   : > { %9542 = vmatmul.mubr.f32.gmra.mxu0 %v1849_v26  ;;  %9704 = vmatprep.subr.mxu1 %v10971_v46 }
 0x2bc   : > { %v9510_v51 = vpop.f32.mrf.mxu1 }
 0x2be   : > { %v1936_v55 = vpop.f32.mrf.mxu1 }
 0x2c0   : > { %v9513_v56 = vpop.f32.mrf.mxu1 }
 0x2c2   : > { %v1948_v59 = vpop.f32.mrf.mxu1 }
 0x2c4   : > { %v9500_v60 = vpop.f32.mrf.mxu0  ;;  %v9530_v61 = vpop.f32.mrf.mxu1 }
 0x2c5   : > { %v1836_v3 = vadd.f32 %v9500_v60, %v8606_v62 }
 0x2c6   : > { %v1825_v63 = vpop.f32.mrf.mxu0  ;;  %v2126_v0 = vpop.f32.mrf.mxu1 }
 0x2c7   : > { %v1826_v5 = vadd.f32 %v8606_v62, %v1825_v63  ;;  %v1943_v9 = vadd.f32 %v9510_v51, %v1836_v3 }
 0x2c8   : > { %v9503_v1 = vpop.f32.mrf.mxu0  ;;  %v9533_v2 = vpop.f32.mrf.mxu1 }
 0x2c9   : > { %v1856_v8 = vadd.f32 %v9503_v1, %v8606_v62  ;;  %v1937_v13 = vadd.f32 %v1936_v55, %v1826_v5 }
 0x2ca   : > { %v1845_v4 = vpop.f32.mrf.mxu0  ;;  %v2142_v6 = vpop.f32.mrf.mxu1 }
 0x2cb   : > { %v1846_v11 = vadd.f32 %v8606_v62, %v1845_v4  ;;  %v1955_v17 = vadd.f32 %v9513_v56, %v1856_v8 }
 0x2cc   : > { %v9520_v7 = vpop.f32.mrf.mxu0  ;;  %v9550_v14 = vpop.f32.mrf.mxu1 }
 0x2cd   : > { %v2038_v12 = vadd.f32 %v9520_v7, %v1943_v9  ;;  %v1949_v20 = vadd.f32 %v1948_v59, %v1846_v11 }
 0x2ce   : > { %v2030_v10 = vpop.f32.mrf.mxu0  ;;  %v2318_v22 = vpop.f32.mrf.mxu1 }
 0x2cf   : > { %v2031_v16 = vadd.f32 %v2030_v10, %v1937_v13  ;;  %v2135_v21 = vadd.f32 %v9530_v61, %v2038_v12 }
 0x2d0   : > { %v9523_v15 = vpop.f32.mrf.mxu0  ;;  %v9553_v25 = vpop.f32.mrf.mxu1 }
 0x2d1   : > { %v2052_v19 = vadd.f32 %v9523_v15, %v1955_v17  ;;  %v2127_v43 = vadd.f32 %v2126_v0, %v2031_v16  ;;  %v11008_v0 = vld [vmem:[%s14046_s1] sm:$0xff] }
 0x2d2   : > { %v2044_v18 = vpop.f32.mrf.mxu0  ;;  %v2330_v36 = vpop.f32.mrf.mxu1 }
 0x2d3   : > { %v2045_v24 = vadd.f32 %v2044_v18, %v1949_v20  ;;  %v2151_v58 = vadd.f32 %v9533_v2, %v2052_v19 }
 0x2d4   : > { %v9540_v23 = vpop.f32.mrf.mxu0 }
 0x2d5   : > { %v2234_v41 = vadd.f32 %v9540_v23, %v2135_v21  ;;  %v2143_v29 = vadd.f32 %v2142_v6, %v2045_v24 }
 0x2d6   : > { %v2227_v53 = vpop.f32.mrf.mxu0 }
 0x2d7   : > { %v2325_v54 = vadd.f32 %v9550_v14, %v2234_v41  ;;  %v2228_v57 = vadd.f32 %v2227_v53, %v2127_v43 }
 0x2d8   : > { %v9543_v26 = vpop.f32.mrf.mxu0 }
 0x2d9   : > { %10527 = vtanh.f32 %v2325_v54  ;;  %v2319_v27 = vadd.f32 %v2318_v22, %v2228_v57  ;;  %v2246_v28 = vadd.f32 %v9543_v26, %v2151_v58 }
 0x2da   : > { %v2239_v30 = vpop.f32.mrf.mxu0 }
 0x2db   : > { %10529 = vtanh.f32 %v2319_v27  ;;  %v2337_v33 = vadd.f32 %v9553_v25, %v2246_v28  ;;  %v2240_v34 = vadd.f32 %v2239_v30, %v2143_v29 }
 0x2dd   : > { %10531 = vtanh.f32 %v2337_v33  ;;  %v2331_v37 = vadd.f32 %v2330_v36, %v2240_v34 }
 0x2df   : > { %10533 = vtanh.f32 %v2331_v37 }
 0x2e6   : > { %v10528_v42 = vpop.eup %10527 }
 0x2e7   : > { %v2397_v45 = vcombine.high %v10528_v42, %v10528_v42  ;;  %v2404_v49 = vrot.slane %v10528_v42, %v10988_v40 }
 0x2e8   : > { %v10530_v44 = vpop.eup %10529 }
 0x2e9   : > { %v2348_v52 = vcombine.high %v10530_v44, %v10530_v44  ;;  %v2355_v51 = vrot.slane %v10530_v44, %v10988_v40  ;;  %v10995_v55 = vrot.slane %v2404_v49, %v10988_v40  ;;  %v2412_v56 = vcombine.high %v2404_v49, %v2404_v49 }
 0x2ea   : > { %v10997_v59 = vpop.eup %10531  ;;  %v11000_v60 = vrot.slane %v2397_v45, %v10988_v40 }
 0x2eb   : > { %v2495_v61 = vcombine.high %v10997_v59, %v10997_v59  ;;  %v2363_v62 = vcombine.high %v2355_v51, %v2355_v51  ;;  %v2371_v63 = vrot.slane %v2355_v51, %v10988_v40  ;;  %v2362_v1 = vrot.slane %v2348_v52, %v10988_v40 }
 0x2ec   : > { %v11011_v2 = vpop.eup %10533  ;;  %v2580_v3 = vrot.slane %v10995_v55, %v10991_v50  ;;  %v11016_v4 = vrot.slane %v2412_v56, %v10988_v40  ;;  %v2442_v5 = vcombine.high %v10995_v55, %v10995_v55  ;;  %v11022_v6 = vrot.slane %v11000_v60, %v10988_v40 }
 0x2ed   : > { %v2446_v7 = vcombine.high %v11011_v2, %v11011_v2  ;;  %v2548_v8 = vrot.slane %v2371_v63, %v10991_v50  ;;  %v2385_v9 = vrot.slane %v2363_v62, %v10988_v40  ;;  %v2393_v10 = vcombine.high %v2371_v63, %v2371_v63 }
 0x2ee   : > { %v2378_v11 = vrot.slane %v2362_v1, %v10988_v40  ;;  %v2364_v12 = vcombine.high %v2362_v1, %v2362_v1  ;;  %v2713_v13 = vadd.f32 %v2580_v3, %v11008_v0  ;;  %v2584_v14 = vrot.slane %v11016_v4, %v10991_v50 }
 0x2ef   : > { %v2705_v15 = vadd.f32 %v2548_v8, %v11008_v0  ;;  %v2552_v16 = vrot.slane %v2385_v9, %v10991_v50  ;;  %v2556_v17 = vrot.slane %v2393_v10, %v10991_v50  ;;  %v2395_v18 = vcombine.high %v2385_v9, %v2385_v9 }
 0x2f0   : > { %v2564_v19 = vrot.slane %v2378_v11, %v10991_v50  ;;  %v2392_v20 = vrot.slane %v2364_v12, %v10988_v40  ;;  %v2394_v21 = vcombine.high %v2378_v11, %v2378_v11  ;;  %v11038_v22 = vsel %vm2745_vm2, %v2713_v13, 0 }
 0x2f1   : > { %v2747_v23 = vsel %vm2745_vm2, %v2705_v15, 0  ;;  %v2706_v24 = vadd.f32 %v2552_v16, %v11008_v0  ;;  %v2707_v41 = vadd.f32 %v2556_v17, %v11008_v0  ;;  %v2560_v43 = vrot.slane %v2395_v18, %v10991_v50 }
 0x2f2   : > { %v11044_v53 = vand.u32 4294901760, %v2747_v23  ;;  %v2709_v54 = vadd.f32 %v2564_v19, %v11008_v0  ;;  %v2568_v57 = vrot.slane %v2392_v20, %v10991_v50  ;;  %v2572_v58 = vrot.slane %v2394_v21, %v10991_v50 }
 0x2f3   : > { %v2750_v25 = vsel %vm2745_vm2, %v2706_v24, 0  ;;  %v2753_v26 = vsel %vm2745_vm2, %v2707_v41, 0  ;;  %v2708_v27 = vadd.f32 %v2560_v43, %v11008_v0  ;;  %v2396_v28 = vcombine.high %v2392_v20, %v2392_v20 }
 0x2f4   : > { %9606 = vmatprep.mubr.f32.mxu1 %v11044_v53  ;;  %v11053_v29 = vand.u32 4294901760, %v2750_v25  ;;  %v11055_v30 = vand.u32 4294901760, %v2753_v26  ;;  %v2759_v31 = vsel %vm2745_vm2, %v2709_v54, 0  ;;  %v11059_v32 = vsub.f32 %v2747_v23, %v11044_v53 }
 0x2f5   : > { %v2756_v33 = vsel %vm2745_vm2, %v2708_v27, 0  ;;  %v11062_v34 = vand.u32 4294901760, %v2759_v31  ;;  %v2710_v35 = vadd.f32 %v2568_v57, %v11008_v0  ;;  %v2711_v36 = vadd.f32 %v2572_v58, %v11008_v0 }
 0x2f6   : > { %v11067_v37 = vsub.f32 %v2750_v25, %v11053_v29  ;;  %9607 = vmatmul.mubr.f32.vlgmr.msra.gmra.mxu1 %v11053_v29  ;;  %v11070_v38 = vand.u32 4294901760, %v2756_v33  ;;  %v14077_v39 = vand.u32 4294901760, %v11059_v32  ;;  %v11074_v42 = vsub.f32 %v2753_v26, %v11055_v30 }
 0x2f7   : > { %9609 = vmatprep.mubr.f32.mxu1 %v11055_v30  ;;  %v2762_v45 = vsel %vm2745_vm2, %v2710_v35, 0  ;;  %v2765_v49 = vsel %vm2745_vm2, %v2711_v36, 0  ;;  %9705 = vmatpush3.msra.mxu1 %v10971_v46  ;;  %v2576_v44 = vrot.slane %v2396_v28, %v10991_v50  ;;  %v11082_v52 = vsub.f32 %v2759_v31, %v11062_v34 }
 0x2f8   : > { %v2911_v51 = vsub.f32 %v11059_v32, %v14077_v39  ;;  %v14076_v56 = vand.u32 4294901760, %v11067_v37  ;;  %v11088_v62 = vand.u32 4294901760, %v2762_v45  ;;  %v14074_v63 = vand.u32 4294901760, %v11074_v42  ;;  %9804 = vmatprep.subr.mxu1 %v10971_v46 }
 0x2f9   : > { %v11092_v1 = vand.u32 4294901760, %v2765_v49  ;;  %v11095_v3 = vsub.f32 %v2756_v33, %v11070_v38  ;;  %v2712_v8 = vadd.f32 %v2576_v44, %v11008_v0  ;;  %v14070_v9 = vand.u32 4294901760, %v11082_v52 }
 0x2fa   : > { %9610 = vmatmul.mubr.f32.gmra.mxu1 %v11070_v38  ;;  %v2912_v10 = vand.u32 4294901760, %v2911_v51  ;;  %v2921_v11 = vsub.f32 %v11067_v37, %v14076_v56  ;;  %v2931_v12 = vsub.f32 %v11074_v42, %v14074_v63  ;;  %v11107_v13 = vand.u32 4294901760, %v11038_v22 }
 0x2fb   : > { %9612 = vmatprep.mubr.f32.mxu1 %v11062_v34  ;;  %v14073_v15 = vand.u32 4294901760, %v11095_v3  ;;  %v2768_v16 = vsel %vm2745_vm2, %v2712_v8, 0  ;;  %v2951_v17 = vsub.f32 %v11082_v52, %v14070_v9  ;;  %v11116_v18 = vsub.f32 %v2762_v45, %v11088_v62 }
 0x2fc   : > { %9556 = vmatprep.mubr.f32.mxu0 %v2912_v10  ;;  %v2922_v19 = vand.u32 4294901760, %v2921_v11  ;;  %v2932_v20 = vand.u32 4294901760, %v2931_v12  ;;  %v11118_v21 = vand.u32 4294901760, %v2768_v16  ;;  %v2714_v23 = vadd.f32 %v2584_v14, %v11008_v0 }
 0x2fd   : > { %v2941_v24 = vsub.f32 %v11095_v3, %v14073_v15  ;;  %v2952_v41 = vand.u32 4294901760, %v2951_v17  ;;  %v14069_v43 = vand.u32 4294901760, %v11116_v18  ;;  %v11129_v54 = vsub.f32 %v2765_v49, %v11092_v1 }
 0x2fe   : > { %9557 = vmatmul.mubr.f32.vlgmr.msra.gmra.mxu0 %v2922_v19  ;;  %9613 = vmatmul.mubr.f32.gmra.mxu1 %v11088_v62  ;;  %v2774_v57 = vsel %vm2745_vm2, %v2714_v23, 0  ;;  %v2588_v14 = vrot.slane %v2442_v5, %v10991_v50  ;;  %v11138_v58 = vsub.f32 %v2768_v16, %v11118_v21  ;;  %v2444_v25 = vcombine.high %v11016_v4, %v11016_v4 }
 0x2ff   : > { %9655 = vmatpush3.msra.mxu0 %v10974_v47  ;;  %9559 = vmatprep.mubr.f32.mxu0 %v2932_v20  ;;  %v2942_v26 = vand.u32 4294901760, %v2941_v24  ;;  %v2961_v27 = vsub.f32 %v11116_v18, %v14069_v43  ;;  %v11146_v28 = vand.u32 4294901760, %v2774_v57  ;;  %v14068_v31 = vand.u32 4294901760, %v11129_v54 }
 0x300   : > { %9615 = vmatprep.mubr.f32.mxu1 %v11092_v1  ;;  %v2715_v55 = vadd.f32 %v2588_v14, %v11008_v0  ;;  %v14065_v5 = vand.u32 4294901760, %v11138_v58  ;;  %v2592_v4 = vrot.slane %v2444_v25, %v10991_v50  ;;  %v11155_v47 = vsub.f32 %v11038_v22, %v11107_v13  ;;  %9754 = vmatprep.subr.mxu0 %v10979_v48 }
 0x301   : > { %v2962_v33 = vand.u32 4294901760, %v2961_v27  ;;  %v2971_v35 = vsub.f32 %v11129_v54, %v14068_v31  ;;  %v2596_v36 = vrot.slane %v11022_v6, %v10991_v50  ;;  %v11164_v45 = vsub.f32 %v2774_v57, %v11146_v28 }
 0x302   : > { %9560 = vmatmul.mubr.f32.gmra.mxu0 %v2942_v26  ;;  %9616 = vmatmul.mubr.f32.gmra.mxu1 %v11118_v21  ;;  %v2777_v49 = vsel %vm2745_vm2, %v2715_v55, 0  ;;  %v2981_v22 = vsub.f32 %v11138_v58, %v14065_v5  ;;  %v2716_v44 = vadd.f32 %v2592_v4, %v11008_v0  ;;  %v14064_v51 = vand.u32 4294901760, %v11155_v47 }
 0x303   : > { %9562 = vmatprep.mubr.f32.mxu0 %v2952_v41  ;;  %9618 = vmatprep.mubr.f32.mxu1 %v11107_v13  ;;  %v2972_v8 = vand.u32 4294901760, %v2971_v35  ;;  %v11174_v10 = vand.u32 4294901760, %v2777_v49  ;;  %v2717_v11 = vadd.f32 %v2596_v36, %v11008_v0  ;;  %v14062_v12 = vand.u32 4294901760, %v11164_v45 }
 0x304   : > { %v2982_v16 = vand.u32 4294901760, %v2981_v22  ;;  %v2780_v17 = vsel %vm2745_vm2, %v2716_v44, 0  ;;  %v2991_v19 = vsub.f32 %v11155_v47, %v14064_v51  ;;  %v2413_v20 = vcombine.high %v11000_v60, %v11000_v60 }
 0x305   : > { %v11184_v23 = vand.u32 4294901760, %v2780_v17  ;;  %v2783_v24 = vsel %vm2745_vm2, %v2717_v11, 0  ;;  %v3001_v41 = vsub.f32 %v11164_v45, %v14062_v12  ;;  %v11191_v57 = vsub.f32 %v2777_v49, %v11174_v10 }
 0x306   : > { %9563 = vmatmul.mubr.f32.gmra.mxu0 %v2962_v33  ;;  %9619 = vmatmul.mubr.f32.gmra.mxu1 %v11146_v28  ;;  %v2992_v14 = vand.u32 4294901760, %v2991_v19  ;;  %v11194_v25 = vand.u32 4294901760, %v2783_v24  ;;  %v2441_v26 = vrot.slane %v2413_v20, %v10988_v40  ;;  %v2443_v60 = vcombine.high %v11022_v6, %v11022_v6 }
 0x307   : > { %9565 = vmatprep.mubr.f32.mxu0 %v2972_v8  ;;  %9621 = vmatprep.mubr.f32.mxu1 %v11174_v10  ;;  %v3002_v27 = vand.u32 4294901760, %v3001_v41  ;;  %v14060_v55 = vand.u32 4294901760, %v11191_v57  ;;  %v11202_v4 = vsub.f32 %v2780_v17, %v11184_v23  ;;  %v2453_v33 = vrot.slane %v11011_v2, %v10988_v40 }
 0x308   : > { %v2600_v35 = vrot.slane %v2441_v26, %v10991_v50  ;;  %v2604_v36 = vrot.slane %v2443_v60, %v10991_v50  ;;  %v2445_v49 = vcombine.high %v2441_v26, %v2441_v26  ;;  %v11209_v22 = vsub.f32 %v2783_v24, %v11194_v25 }
 0x309   : > { %v3011_v6 = vsub.f32 %v11191_v57, %v14060_v55  ;;  %v14061_v44 = vand.u32 4294901760, %v11202_v4  ;;  %v2469_v8 = vrot.slane %v2453_v33, %v10988_v40  ;;  %v2461_v11 = vcombine.high %v2453_v33, %v2453_v33 }
 0x30a   : > { %9566 = vmatmul.mubr.f32.gmra.mxu0 %v2982_v16  ;;  %9622 = vmatmul.mubr.f32.gmra.mxu1 %v11184_v23  ;;  %v2718_v17 = vadd.f32 %v2600_v35, %v11008_v0  ;;  %v2719_v19 = vadd.f32 %v2604_v36, %v11008_v0  ;;  %v2608_v20 = vrot.slane %v2445_v49, %v10991_v50  ;;  %v14063_v24 = vand.u32 4294901760, %v11209_v22 }
 0x30b   : > { %9568 = vmatprep.mubr.f32.mxu0 %v2992_v14  ;;  %9624 = vmatprep.mubr.f32.mxu1 %v11194_v25  ;;  %v3012_v41 = vand.u32 4294901760, %v3011_v6  ;;  %v3021_v26 = vsub.f32 %v11202_v4, %v14061_v44  ;;  %v2612_v16 = vrot.slane %v2469_v8, %v10991_v50  ;;  %v2483_v60 = vrot.slane %v2461_v11, %v10988_v40 }
 0x30c   : > { %v2786_v33 = vsel %vm2745_vm2, %v2718_v17, 0  ;;  %v2789_v35 = vsel %vm2745_vm2, %v2719_v19, 0  ;;  %v2720_v36 = vadd.f32 %v2608_v20, %v11008_v0  ;;  %v3031_v14 = vsub.f32 %v11209_v22, %v14063_v24 }
 0x30d   : > { %v11233_v49 = vand.u32 4294901760, %v2786_v33  ;;  %v11235_v6 = vand.u32 4294901760, %v2789_v35  ;;  %v3022_v55 = vand.u32 4294901760, %v3021_v26  ;;  %v2721_v44 = vadd.f32 %v2612_v16, %v11008_v0 }
 0x30e   : > { %9569 = vmatmul.mubr.f32.gmra.mxu0 %v3002_v27  ;;  %v2792_v11 = vsel %vm2745_vm2, %v2720_v36, 0  ;;  %v3032_v12 = vand.u32 4294901760, %v3031_v14  ;;  %v2616_v17 = vrot.slane %v2483_v60, %v10991_v50  ;;  %v2491_v19 = vcombine.high %v2469_v8, %v2469_v8 }
 0x30f   : > { %14272 = vst [vmem:[#allocation2_spill] sm:$0xff] %v11235_v6  ;;  %9625 = vmatmul.mubr.f32.gmra.mxu1 %v11233_v49  ;;  %9571 = vmatprep.mubr.f32.mxu0 %v3012_v41  ;;  %v11241_v20 = vand.u32 4294901760, %v2792_v11  ;;  %v2795_v24 = vsel %vm2745_vm2, %v2721_v44, 0  ;;  %v11245_v51 = vsub.f32 %v2786_v33, %v11233_v49  ;;  %v11248_v26 = vsub.f32 %v2789_v35, %v11235_v6 }
 0x310   : > { %9627 = vmatprep.mubr.f32.mxu1 %v11235_v6  ;;  %v11251_v27 = vand.u32 4294901760, %v2795_v24  ;;  %v2722_v16 = vadd.f32 %v2616_v17, %v11008_v0  ;;  %v2620_v8 = vrot.slane %v2491_v19, %v10991_v50  ;;  %v2493_v36 = vcombine.high %v2483_v60, %v2483_v60 }
 0x311   : > { %14273 = vst [vmem:[#allocation3_spill] sm:$0xff] %v11241_v20  ;;  %v14066_v41 = vand.u32 4294901760, %v11245_v51  ;;  %v14067_v14 = vand.u32 4294901760, %v11248_v26  ;;  %v11258_v44 = vsub.f32 %v2792_v11, %v11241_v20  ;;  %v2460_v33 = vrot.slane %v2446_v7, %v10988_v40 }
 0x312   : > { %14274 = vst [vmem:[#allocation4_spill] sm:$0xff] %v11251_v27  ;;  %9572 = vmatmul.mubr.f32.gmra.mxu0 %v3022_v55  ;;  %v2798_v35 = vsel %vm2745_vm2, %v2722_v16, 0  ;;  %v2723_v17 = vadd.f32 %v2620_v8, %v11008_v0  ;;  %v2624_v19 = vrot.slane %v2493_v36, %v10991_v50  ;;  %v11268_v60 = vsub.f32 %v2795_v24, %v11251_v27 }
 0x313   : > { %9628 = vmatmul.mubr.f32.gmra.mxu1 %v11241_v20  ;;  %9574 = vmatprep.mubr.f32.mxu0 %v3032_v12  ;;  %v3041_v11 = vsub.f32 %v11245_v51, %v14066_v41  ;;  %v11274_v5 = vand.u32 4294901760, %v2798_v35  ;;  %v3051_v2 = vsub.f32 %v11248_v26, %v14067_v14  ;;  %v14071_v7 = vand.u32 4294901760, %v11258_v44 }
 0x314   : > { %9630 = vmatprep.mubr.f32.mxu1 %v11251_v27  ;;  %v2801_v55 = vsel %vm2745_vm2, %v2723_v17, 0  ;;  %v2724_v24 = vadd.f32 %v2624_v19, %v11008_v0  ;;  %v14072_v12 = vand.u32 4294901760, %v11268_v60  ;;  %v2476_v16 = vrot.slane %v2460_v33, %v10988_v40 }
 0x315   : > { %14275 = vst [vmem:[#allocation5_spill] sm:$0xff] %v11274_v5  ;;  %v3042_v8 = vand.u32 4294901760, %v3041_v11  ;;  %v3052_v36 = vand.u32 4294901760, %v3051_v2  ;;  %v11285_v41 = vand.u32 4294901760, %v2801_v55  ;;  %v3061_v14 = vsub.f32 %v11258_v44, %v14071_v7 }
 0x316   : > { %v2804_v31 = vsel %vm2745_vm2, %v2724_v24, 0  ;;  %v3071_v17 = vsub.f32 %v11268_v60, %v14072_v12  ;;  %v2628_v19 = vrot.slane %v2476_v16, %v10991_v50  ;;  %v11296_v43 = vsub.f32 %v2798_v35, %v11274_v5 }
 0x317   : > { %14276 = vst [vmem:[#allocation6_spill] sm:$0xff] %v11285_v41  ;;  %9575 = vmatmul.mubr.f32.gmra.mxu0 %v3042_v8  ;;  %9631 = vmatmul.mubr.f32.gmra.mxu1 %v11274_v5  ;;  %v3062_v11 = vand.u32 4294901760, %v3061_v14  ;;  %v11299_v2 = vand.u32 4294901760, %v2804_v31  ;;  %v2462_v9 = vcombine.high %v2460_v33, %v2460_v33  ;;  %v11302_v7 = vsub.f32 %v2801_v55, %v11285_v41 }
 0x318   : > { %9577 = vmatprep.mubr.f32.mxu0 %v3052_v36  ;;  %9633 = vmatprep.mubr.f32.mxu1 %v11285_v41  ;;  %v3072_v24 = vand.u32 4294901760, %v3071_v17  ;;  %v2725_v12 = vadd.f32 %v2628_v19, %v11008_v0  ;;  %v14075_v15 = vand.u32 4294901760, %v11296_v43  ;;  %v2492_v35 = vcombine.high %v2476_v16, %v2476_v16 }
 0x319   : > { %14277 = vst [vmem:[#allocation7_spill] sm:$0xff] %v11299_v2  ;;  %v2490_v8 = vrot.slane %v2462_v9, %v10988_v40  ;;  %v14078_v63 = vand.u32 4294901760, %v11302_v7  ;;  %v11310_v14 = vsub.f32 %v2804_v31, %v11299_v2  ;;  %v2502_v33 = vrot.slane %v10997_v59, %v10988_v40 }
 0x31a   : > { %v2807_v55 = vsel %vm2745_vm2, %v2725_v12, 0  ;;  %v3081_v36 = vsub.f32 %v11296_v43, %v14075_v15  ;;  %v2636_v17 = vrot.slane %v2492_v35, %v10991_v50  ;;  %v11323_v9 = vrot.slane %v2495_v61, %v10988_v40 }
 0x31b   : > { %9578 = vmatmul.mubr.f32.gmra.mxu0 %v3062_v11  ;;  %9634 = vmatmul.mubr.f32.gmra.mxu1 %v11299_v2  ;;  %v11326_v31 = vand.u32 4294901760, %v2807_v55  ;;  %v2632_v16 = vrot.slane %v2490_v8, %v10991_v50  ;;  %v3091_v12 = vsub.f32 %v11302_v7, %v14078_v63  ;;  %v14086_v19 = vand.u32 4294901760, %v11310_v14 }
 0x31c   : > { %9580 = vmatprep.mubr.f32.mxu0 %v3072_v24  ;;  %v3082_v35 = vand.u32 4294901760, %v3081_v36  ;;  %v2727_v15 = vadd.f32 %v2636_v17, %v11008_v0  ;;  %v2494_v59 = vcombine.high %v2490_v8, %v2490_v8  ;;  %v2518_v61 = vrot.slane %v2502_v33, %v10988_v40 }
 0x31d   : > { %14278 = vst [vmem:[#allocation8_spill] sm:$0xff] %v11326_v31  ;;  %9636 = vmatprep.mubr.f32.mxu1 %v11326_v31  ;;  %v2726_v11 = vadd.f32 %v2632_v16, %v11008_v0  ;;  %v3092_v56 = vand.u32 4294901760, %v3091_v12  ;;  %v3101_v39 = vsub.f32 %v11310_v14, %v14086_v19  ;;  %v11341_v63 = vsub.f32 %v2807_v55, %v11326_v31 }
 0x31e   : > { %v2813_v24 = vsel %vm2745_vm2, %v2727_v15, 0  ;;  %v2640_v36 = vrot.slane %v2494_v59, %v10991_v50  ;;  %v2644_v8 = vrot.slane %v2518_v61, %v10991_v50  ;;  %v2510_v17 = vcombine.high %v2502_v33, %v2502_v33 }
 0x31f   : > { %9581 = vmatmul.mubr.f32.gmra.mxu0 %v3082_v35  ;;  %v2810_v2 = vsel %vm2745_vm2, %v2726_v11, 0  ;;  %v11347_v41 = vand.u32 4294901760, %v2813_v24  ;;  %v3102_v16 = vand.u32 4294901760, %v3101_v39  ;;  %v14085_v12 = vand.u32 4294901760, %v11341_v63 }
 0x320   : > { %v11350_v5 = vand.u32 4294901760, %v2810_v2  ;;  %9583 = vmatprep.mubr.f32.mxu0 %v3092_v56  ;;  %v2728_v55 = vadd.f32 %v2640_v36, %v11008_v0  ;;  %v2729_v15 = vadd.f32 %v2644_v8, %v11008_v0  ;;  %v2532_v59 = vrot.slane %v2510_v17, %v10988_v40 }
 0x321   : > { %14279 = vst [vmem:[#allocation9_spill] sm:$0xff] %v11347_v41  ;;  %v3111_v33 = vsub.f32 %v11341_v63, %v14085_v12  ;;  %v11359_v35 = vsub.f32 %v2813_v24, %v11347_v41  ;;  %v2540_v11 = vcombine.high %v2518_v61, %v2518_v61  ;;  %v2525_v39 = vrot.slane %v11323_v9, %v10988_v40 }
 0x322   : > { %14280 = vst [vmem:[#allocation10_spill] sm:$0xff] %v11350_v5  ;;  %9637 = vmatmul.mubr.f32.gmra.mxu1 %v11350_v5  ;;  %v2816_v56 = vsel %vm2745_vm2, %v2728_v55, 0  ;;  %v2819_v36 = vsel %vm2745_vm2, %v2729_v15, 0  ;;  %v11367_v8 = vsub.f32 %v2810_v2, %v11350_v5  ;;  %v2648_v17 = vrot.slane %v2532_v59, %v10991_v50 }
 0x323   : > { %9639 = vmatprep.mubr.f32.mxu1 %v11347_v41  ;;  %9584 = vmatmul.mubr.f32.gmra.mxu0 %v3102_v16  ;;  %v11371_v24 = vand.u32 4294901760, %v2816_v56  ;;  %v3112_v61 = vand.u32 4294901760, %v3111_v33  ;;  %v11373_v12 = vand.u32 4294901760, %v2819_v36  ;;  %v14093_v19 = vand.u32 4294901760, %v11359_v35 }
 0x324   : > { %v14100_v31 = vand.u32 4294901760, %v11367_v8  ;;  %v2730_v55 = vadd.f32 %v2648_v17, %v11008_v0  ;;  %v2652_v15 = vrot.slane %v2540_v11, %v10991_v50  ;;  %v2542_v2 = vcombine.high %v2532_v59, %v2532_v59 }
 0x325   : > { %14281 = vst [vmem:[#allocation11_spill] sm:$0xff] %v11371_v24  ;;  %14282 = vst [vmem:[#allocation12_spill] sm:$0xff] %v11373_v12  ;;  %9586 = vmatprep.mubr.f32.mxu0 %v3112_v61  ;;  %v3131_v41 = vsub.f32 %v11359_v35, %v14093_v19  ;;  %v11383_v16 = vsub.f32 %v2816_v56, %v11371_v24  ;;  %v11386_v33 = vsub.f32 %v2819_v36, %v11373_v12 }
 0x326   : > { %v2660_v5 = vrot.slane %v2525_v39, %v10991_v50  ;;  %9640 = vmatmul.mubr.f32.gmra.mxu1 %v11371_v24  ;;  %v3121_v11 = vsub.f32 %v11367_v8, %v14100_v31  ;;  %v2822_v59 = vsel %vm2745_vm2, %v2730_v55, 0  ;;  %v2731_v17 = vadd.f32 %v2652_v15, %v11008_v0 }
 0x327   : > { %v2656_v61 = vrot.slane %v2542_v2, %v10991_v50  ;;  %9642 = vmatprep.mubr.f32.mxu1 %v11373_v12  ;;  %v11397_v56 = vand.u32 4294901760, %v2822_v59  ;;  %v3132_v36 = vand.u32 4294901760, %v3131_v41  ;;  %v14103_v19 = vand.u32 4294901760, %v11383_v16 }
 0x328   : > { %v14106_v27 = vand.u32 4294901760, %v11386_v33  ;;  %v3122_v24 = vand.u32 4294901760, %v3121_v11  ;;  %v2825_v20 = vsel %vm2745_vm2, %v2731_v17, 0  ;;  %v2733_v55 = vadd.f32 %v2660_v5, %v11008_v0 }
 0x329   : > { %14283 = vst [vmem:[#allocation13_spill] sm:$0xff] %v11397_v56  ;;  %v2732_v31 = vadd.f32 %v2656_v61, %v11008_v0  ;;  %v11404_v6 = vand.u32 4294901760, %v2825_v20  ;;  %v3141_v15 = vsub.f32 %v11383_v16, %v14103_v19  ;;  %v11413_v2 = vsub.f32 %v2822_v59, %v11397_v56 }
 0x32a   : > { %v3151_v41 = vsub.f32 %v11386_v33, %v14106_v27  ;;  %9587 = vmatmul.mubr.f32.gmra.mxu0 %v3122_v24  ;;  %9643 = vmatmul.mubr.f32.gmra.mxu1 %v11397_v56  ;;  %v2831_v5 = vsel %vm2745_vm2, %v2733_v55, 0  ;;  %v2511_v17 = vcombine.high %v11323_v9, %v11323_v9  ;;  %v2541_v61 = vcombine.high %v2525_v39, %v2525_v39 }
 0x32b   : > { %14284 = vst [vmem:[#allocation14_spill] sm:$0xff] %v11404_v6  ;;  %v2828_v11 = vsel %vm2745_vm2, %v2732_v31, 0  ;;  %9589 = vmatprep.mubr.f32.mxu0 %v3132_v36  ;;  %9645 = vmatprep.mubr.f32.mxu1 %v11404_v6  ;;  %v3142_v19 = vand.u32 4294901760, %v3141_v15  ;;  %v11423_v27 = vand.u32 4294901760, %v2831_v5  ;;  %v14109_v24 = vand.u32 4294901760, %v11413_v2 }
 0x32c   : > { %v11421_v12 = vand.u32 4294901760, %v2828_v11  ;;  %v2539_v59 = vrot.slane %v2511_v17, %v10988_v40  ;;  %v11428_v31 = vsub.f32 %v2825_v20, %v11404_v6  ;;  %v2668_v55 = vrot.slane %v2541_v61, %v10991_v50 }
 0x32d   : > { %14286 = vst [vmem:[#allocation16_spill] sm:$0xff] %v11423_v27  ;;  %v3152_v56 = vand.u32 4294901760, %v3151_v41  ;;  %v11435_v39 = vsub.f32 %v2831_v5, %v11423_v27  ;;  %v3161_v36 = vsub.f32 %v11413_v2, %v14109_v24 }
 0x32e   : > { %14285 = vst [vmem:[#allocation15_spill] sm:$0xff] %v11421_v12  ;;  %v11432_v9 = vsub.f32 %v2828_v11, %v11421_v12  ;;  %9590 = vmatmul.mubr.f32.gmra.mxu0 %v3142_v19  ;;  %9646 = vmatmul.mubr.f32.gmra.mxu1 %v11421_v12  ;;  %v2664_v40 = vrot.slane %v2539_v59, %v10991_v50  ;;  %v14114_v20 = vand.u32 4294901760, %v11428_v31 }
 0x32f   : > { %v2735_v15 = vadd.f32 %v2668_v55, %v11008_v0  ;;  %9592 = vmatprep.mubr.f32.mxu0 %v3152_v56  ;;  %9648 = vmatprep.mubr.f32.mxu1 %v11423_v27  ;;  %v2543_v11 = vcombine.high %v2539_v59, %v2539_v59  ;;  %v14117_v19 = vand.u32 4294901760, %v11435_v39  ;;  %v3162_v5 = vand.u32 4294901760, %v3161_v36 }
 0x330   : > { %v3180_v41 = vand.u32 4294901760, %v11432_v9  ;;  %v2734_v17 = vadd.f32 %v2664_v40, %v11008_v0  ;;  %v3171_v61 = vsub.f32 %v11428_v31, %v14114_v20 }
 0x331   : > { %v2837_v24 = vsel %vm2745_vm2, %v2735_v15, 0  ;;  %v2672_v55 = vrot.slane %v2543_v11, %v10991_v50  ;;  %v3191_v59 = vsub.f32 %v11435_v39, %v14117_v19 }
 0x332   : > { %v11452_v12 = vand.u32 4294901760, %v2837_v24  ;;  %v3181_v56 = vsub.f32 %v11432_v9, %v3180_v41  ;;  %9593 = vmatmul.mubr.f32.gmra.mxu0 %v3162_v5  ;;  %v2834_v36 = vsel %vm2745_vm2, %v2734_v17, 0  ;;  %v3172_v40 = vand.u32 4294901760, %v3171_v61 }
 0x333   : > { %v11462_v27 = vand.u32 4294901760, %v2834_v36  ;;  %v2736_v15 = vadd.f32 %v2672_v55, %v11008_v0  ;;  %v3192_v11 = vand.u32 4294901760, %v3191_v59 }
 0x334   : > { %9595 = vmatprep.mubr.f32.mxu0 %v3172_v40  ;;  %v3182_v20 = vand.u32 4294901760, %v3181_v56  ;;  %v11466_v6 = vsub.f32 %v2837_v24, %v11452_v12  ;;  %v14287_v56 = vand.u32 4294901760, %v11059_v32 }
 0x335   : > { %9649 = vmatmul.mubr.f32.gmra.mxu1 %v11462_v27  ;;  %v2840_v50 = vsel %vm2745_vm2, %v2736_v15, 0  ;;  %v11471_v19 = vsub.f32 %v2834_v36, %v11462_v27  ;;  %v14288_v15 = vand.u32 4294901760, %v11067_v37 }
 0x336   : > { %9651 = vmatprep.mubr.f32.mxu1 %v11452_v12  ;;  %9596 = vmatmul.mubr.f32.gmra.mxu0 %v3182_v20  ;;  %v11474_v5 = vand.u32 4294901760, %v2840_v50  ;;  %v3210_v0 = vand.u32 4294901760, %v11466_v6 }
 0x337   : > { %9598 = vmatprep.mubr.f32.mxu0 %v3192_v11  ;;  %v3200_v17 = vand.u32 4294901760, %v11471_v19 }
 0x338   : > { %v3211_v24 = vsub.f32 %v11466_v6, %v3210_v0  ;;  %v11482_v61 = vsub.f32 %v2840_v50, %v11474_v5  ;;  %v14289_v50 = vand.u32 4294901760, %v11074_v42 }
 0x339   : > { %9652 = vmatmul.mubr.f32.gmra.mxu1 %v11474_v5  ;;  %v3201_v20 = vsub.f32 %v11471_v19, %v3200_v17 }
 0x33a   : > { %9706 = vmatprep.mubr.f32.mxu1 %v14287_v56  ;;  %v3220_v55 = vand.u32 4294901760, %v11482_v61  ;;  %v3212_v36 = vand.u32 4294901760, %v3211_v24  ;;  %v14290_v56 = vand.u32 4294901760, %v11095_v3  ;;  %v14291_v24 = vand.u32 4294901760, %v11082_v52 }
 0x33b   : > { %v3202_v59 = vand.u32 4294901760, %v3201_v20  ;;  %v14292_v20 = vand.u32 4294901760, %v11116_v18 }
 0x33c   : > { %v3221_v40 = vsub.f32 %v11482_v61, %v3220_v55 }
 0x33d   : > { %9599 = vmatmul.mubr.f32.gmra.mxu0 %v3202_v59  ;;  %9707 = vmatmul.mubr.f32.vlgmr.msra.gmra.mxu1 %v14288_v15  ;;  %v14294_v59 = vand.u32 4294901760, %v11138_v58 }
 0x33e   : > { %9601 = vmatprep.mubr.f32.mxu0 %v3212_v36  ;;  %9709 = vmatprep.mubr.f32.mxu1 %v14289_v50  ;;  %v3222_v11 = vand.u32 4294901760, %v3221_v40 }
 0x33f   : > { %9805 = vmatpush3.msra.mxu1 %v10971_v46  ;;  %v14293_v46 = vand.u32 4294901760, %v11129_v54 }
 0x341   : > { %9602 = vmatmul.mubr.f32.gmra.mxu0 %v3222_v11  ;;  %9710 = vmatmul.mubr.f32.gmra.mxu1 %v14290_v56 }
 0x342   : > { %9656 = vmatprep.mubr.f32.mxu0 %v11059_v32  ;;  %9712 = vmatprep.mubr.f32.mxu1 %v14291_v24  ;;  %v14295_v32 = vand.u32 4294901760, %v11155_v47 }
 0x345   : > { %9657 = vmatmul.mubr.f32.vlgmr.msra.gmra.mxu0 %v11067_v37  ;;  %9713 = vmatmul.mubr.f32.gmra.mxu1 %v14292_v20  ;;  %v14296_v37 = vand.u32 4294901760, %v11164_v45 }
 0x346   : > { %9755 = vmatpush3.msra.mxu0 %v10979_v48  ;;  %9659 = vmatprep.mubr.f32.mxu0 %v11074_v42  ;;  %v14297_v48 = vand.u32 4294901760, %v11191_v57  ;;  %v14298_v42 = vand.u32 4294901760, %v11202_v4 }
 0x347   : > { %9715 = vmatprep.mubr.f32.mxu1 %v14293_v46 }
 0x349   : > { %9660 = vmatmul.mubr.f32.gmra.mxu0 %v11095_v3  ;;  %9716 = vmatmul.mubr.f32.gmra.mxu1 %v14294_v59  ;;  %v14300_v3 = vand.u32 4294901760, %v11245_v51 }
 0x34a   : > { %9662 = vmatprep.mubr.f32.mxu0 %v11082_v52  ;;  %9718 = vmatprep.mubr.f32.mxu1 %v14295_v32  ;;  %v14299_v52 = vand.u32 4294901760, %v11209_v22 }
 0x34d   : > { %9663 = vmatmul.mubr.f32.gmra.mxu0 %v11116_v18  ;;  %9719 = vmatmul.mubr.f32.gmra.mxu1 %v14296_v37  ;;  %v14301_v18 = vand.u32 4294901760, %v11248_v26 }
 0x34e   : > { %9665 = vmatprep.mubr.f32.mxu0 %v11129_v54  ;;  %9721 = vmatprep.mubr.f32.mxu1 %v14297_v48  ;;  %v14302_v54 = vand.u32 4294901760, %v11258_v44 }
 0x351   : > { %9666 = vmatmul.mubr.f32.gmra.mxu0 %v11138_v58  ;;  %9722 = vmatmul.mubr.f32.gmra.mxu1 %v14298_v42  ;;  %v14303_v58 = vand.u32 4294901760, %v11268_v60 }
 0x352   : > { %9668 = vmatprep.mubr.f32.mxu0 %v11155_v47  ;;  %9724 = vmatprep.mubr.f32.mxu1 %v14299_v52  ;;  %v14304_v47 = vand.u32 4294901760, %v11296_v43 }
 0x355   : > { %9669 = vmatmul.mubr.f32.gmra.mxu0 %v11164_v45  ;;  %9725 = vmatmul.mubr.f32.gmra.mxu1 %v14300_v3  ;;  %v14305_v45 = vand.u32 4294901760, %v11302_v7 }
 0x356   : > { %9671 = vmatprep.mubr.f32.mxu0 %v11191_v57  ;;  %9727 = vmatprep.mubr.f32.mxu1 %v14301_v18  ;;  %v14306_v57 = vand.u32 4294901760, %v11310_v14 }
 0x359   : > { %9672 = vmatmul.mubr.f32.gmra.mxu0 %v11202_v4  ;;  %9728 = vmatmul.mubr.f32.gmra.mxu1 %v14302_v54  ;;  %v14307_v4 = vand.u32 4294901760, %v11341_v63 }
 0x35a   : > { %9674 = vmatprep.mubr.f32.mxu0 %v11209_v22  ;;  %9730 = vmatprep.mubr.f32.mxu1 %v14303_v58  ;;  %v14309_v22 = vand.u32 4294901760, %v11359_v35 }
 0x35d   : > { %9675 = vmatmul.mubr.f32.gmra.mxu0 %v11245_v51  ;;  %9731 = vmatmul.mubr.f32.gmra.mxu1 %v14304_v47  ;;  %v14308_v51 = vand.u32 4294901760, %v11367_v8 }
 0x35e   : > { %9677 = vmatprep.mubr.f32.mxu0 %v11248_v26  ;;  %9733 = vmatprep.mubr.f32.mxu1 %v14305_v45  ;;  %v14310_v26 = vand.u32 4294901760, %v11383_v16 }
 0x361   : > { %9678 = vmatmul.mubr.f32.gmra.mxu0 %v11258_v44  ;;  %9734 = vmatmul.mubr.f32.gmra.mxu1 %v14306_v57  ;;  %v14311_v44 = vand.u32 4294901760, %v11386_v33 }
 0x362   : > { %9680 = vmatprep.mubr.f32.mxu0 %v11268_v60  ;;  %9736 = vmatprep.mubr.f32.mxu1 %v14307_v4  ;;  %v14313_v60 = vand.u32 4294901760, %v11428_v31 }
 0x365   : > { %9681 = vmatmul.mubr.f32.gmra.mxu0 %v11296_v43  ;;  %9737 = vmatmul.mubr.f32.gmra.mxu1 %v14308_v51  ;;  %v14312_v43 = vand.u32 4294901760, %v11413_v2 }
 0x366   : > { %9683 = vmatprep.mubr.f32.mxu0 %v11302_v7  ;;  %9739 = vmatprep.mubr.f32.mxu1 %v14309_v22  ;;  %v14329_v7 = vld [vmem:[#allocation13_spill] sm:$0xff] }
 0x369   : > { %9684 = vmatmul.mubr.f32.gmra.mxu0 %v11310_v14  ;;  %9740 = vmatmul.mubr.f32.gmra.mxu1 %v14310_v26 }
 0x36a   : > { %9686 = vmatprep.mubr.f32.mxu0 %v11341_v63  ;;  %9742 = vmatprep.mubr.f32.mxu1 %v14311_v44  ;;  %v14314_v63 = vand.u32 4294901760, %v11435_v39 }
 0x36d   : > { %9687 = vmatmul.mubr.f32.gmra.mxu0 %v11367_v8  ;;  %9743 = vmatmul.mubr.f32.gmra.mxu1 %v14312_v43 }
 0x36e   : > { %9689 = vmatprep.mubr.f32.mxu0 %v11359_v35  ;;  %9745 = vmatprep.mubr.f32.mxu1 %v14313_v60  ;;  %v14330_v35 = vld [vmem:[#allocation14_spill] sm:$0xff] }
 0x371   : > { %9690 = vmatmul.mubr.f32.gmra.mxu0 %v11383_v16  ;;  %9746 = vmatmul.mubr.f32.gmra.mxu1 %v3180_v41  ;;  %v14331_v16 = vld [vmem:[#allocation15_spill] sm:$0xff]  ;;  %v11673_v41 = vld [vmem:[%s14054_s9] ss:$0 sm:$0xff] }
 0x372   : > { %9692 = vmatprep.mubr.f32.mxu0 %v11386_v33  ;;  %9748 = vmatprep.mubr.f32.mxu1 %v14314_v63  ;;  %v14332_v33 = vld [vmem:[#allocation16_spill] sm:$0xff] }
 0x375   : > { %9693 = vmatmul.mubr.f32.gmra.mxu0 %v11413_v2  ;;  %9749 = vmatmul.mubr.f32.gmra.mxu1 %v3200_v17 }
 0x376   : > { %9695 = vmatprep.mubr.f32.mxu0 %v11428_v31  ;;  %9751 = vmatprep.mubr.f32.mxu1 %v3210_v0 }
 0x379   : > { %9696 = vmatmul.mubr.f32.gmra.mxu0 %v11432_v9  ;;  %9752 = vmatmul.mubr.f32.gmra.mxu1 %v3220_v55 }
 0x37a   : > { %9698 = vmatprep.mubr.f32.mxu0 %v11435_v39  ;;  %9806 = vmatprep.mubr.f32.mxu1 %v11044_v53 }
 0x37d   : > { %9699 = vmatmul.mubr.f32.gmra.mxu0 %v11471_v19  ;;  %9807 = vmatmul.mubr.f32.vlgmr.msra.gmra.mxu1 %v11053_v29 }
 0x37e   : > { %9701 = vmatprep.mubr.f32.mxu0 %v11466_v6  ;;  %9809 = vmatprep.mubr.f32.mxu1 %v11055_v30 }
 0x381   : > { %9702 = vmatmul.mubr.f32.gmra.mxu0 %v11482_v61  ;;  %9810 = vmatmul.mubr.f32.gmra.mxu1 %v11070_v38 }
 0x382   : > { %9756 = vmatprep.mubr.f32.mxu0 %v11044_v53  ;;  %9812 = vmatprep.mubr.f32.mxu1 %v11062_v34  ;;  %v14315_v53 = vld [vmem:[#allocation2_spill] sm:$0xff] }
 0x385   : > { %9757 = vmatmul.mubr.f32.vlgmr.msra.gmra.mxu0 %v11053_v29  ;;  %9813 = vmatmul.mubr.f32.gmra.mxu1 %v11088_v62  ;;  %v14316_v29 = vld [vmem:[#allocation3_spill] sm:$0xff] }
 0x386   : > { %9759 = vmatprep.mubr.f32.mxu0 %v11055_v30  ;;  %9815 = vmatprep.mubr.f32.mxu1 %v11092_v1  ;;  %v14317_v30 = vld [vmem:[#allocation4_spill] sm:$0xff] }
 0x389   : > { %9760 = vmatmul.mubr.f32.gmra.mxu0 %v11070_v38  ;;  %9816 = vmatmul.mubr.f32.gmra.mxu1 %v11118_v21  ;;  %v14319_v38 = vld [vmem:[#allocation6_spill] sm:$0xff] }
 0x38a   : > { %9762 = vmatprep.mubr.f32.mxu0 %v11062_v34  ;;  %9818 = vmatprep.mubr.f32.mxu1 %v11107_v13  ;;  %v14318_v34 = vld [vmem:[#allocation5_spill] sm:$0xff] }
 0x38d   : > { %9763 = vmatmul.mubr.f32.gmra.mxu0 %v11088_v62  ;;  %9819 = vmatmul.mubr.f32.gmra.mxu1 %v11146_v28  ;;  %v14320_v62 = vld [vmem:[#allocation7_spill] sm:$0xff] }
 0x38e   : > { %9765 = vmatprep.mubr.f32.mxu0 %v11092_v1  ;;  %9821 = vmatprep.mubr.f32.mxu1 %v11174_v10  ;;  %v14321_v1 = vld [vmem:[#allocation8_spill] sm:$0xff] }
 0x391   : > { %9766 = vmatmul.mubr.f32.gmra.mxu0 %v11118_v21  ;;  %9822 = vmatmul.mubr.f32.gmra.mxu1 %v11184_v23  ;;  %v14323_v21 = vld [vmem:[#allocation9_spill] sm:$0xff] }
 0x392   : > { %9768 = vmatprep.mubr.f32.mxu0 %v11107_v13  ;;  %9824 = vmatprep.mubr.f32.mxu1 %v11194_v25  ;;  %v14322_v13 = vld [vmem:[#allocation10_spill] sm:$0xff] }
 0x395   : > { %9769 = vmatmul.mubr.f32.gmra.mxu0 %v11146_v28  ;;  %9825 = vmatmul.mubr.f32.gmra.mxu1 %v11233_v49  ;;  %v4654_v28 = vld [vmem:[%s14055_s10 + $0x8] sm:$0xff] }
 0x396   : > { %9771 = vmatprep.mubr.f32.mxu0 %v11174_v10  ;;  %9827 = vmatprep.mubr.f32.mxu1 %v14315_v53  ;;  %v11635_v10 = vand.u32 4294901760, %v4654_v28 }
 0x398   : > { %14324 = vst [vmem:[#allocation2_spill] sm:$0xff] %v11635_v10  ;;  %9854 = vmatprep.subr.mxu0 %v11635_v10 }
 0x399   : > { %9772 = vmatmul.mubr.f32.gmra.mxu0 %v11184_v23  ;;  %9828 = vmatmul.mubr.f32.gmra.mxu1 %v14316_v29  ;;  %v14325_v23 = vld [vmem:[#allocation11_spill] sm:$0xff] }
 0x39a   : > { %9774 = vmatprep.mubr.f32.mxu0 %v11194_v25  ;;  %9830 = vmatprep.mubr.f32.mxu1 %v14317_v30  ;;  %v11640_v25 = vsub.f32 %v4654_v28, %v11635_v10 }
 0x39b   : > { %9855 = vmatpush3.msra.mxu0 %v11635_v10 }
 0x39c   : > { %14326 = vst [vmem:[#allocation3_spill] sm:$0xff] %v11640_v25  ;;  %v11646_v6 = vand.u32 4294901760, %v11640_v25 }
 0x39d   : > { %9775 = vmatmul.mubr.f32.gmra.mxu0 %v11233_v49  ;;  %9831 = vmatmul.mubr.f32.gmra.mxu1 %v14318_v34  ;;  %v14327_v49 = vld [vmem:[#allocation12_spill] sm:$0xff] }
 0x39e   : > { %9777 = vmatprep.mubr.f32.mxu0 %v14315_v53  ;;  %9833 = vmatprep.mubr.f32.mxu1 %v14319_v38  ;;  %14328 = vst [vmem:[#allocation4_spill] sm:$0xff] %v11646_v6  ;;  %v5177_v14 = vsub.f32 %v11640_v25, %v11646_v6 }
 0x3a0   : > { %v5178_v8 = vand.u32 4294901760, %v5177_v14 }
 0x3a1   : > { %9778 = vmatmul.mubr.f32.gmra.mxu0 %v14316_v29  ;;  %9834 = vmatmul.mubr.f32.gmra.mxu1 %v14320_v62  ;;  %v4653_v29 = vld [vmem:[%s14055_s10] sm:$0xff] }
 0x3a2   : > { %9780 = vmatprep.mubr.f32.mxu0 %v14317_v30  ;;  %9836 = vmatprep.mubr.f32.mxu1 %v14321_v1 }
 0x3a3   : > { %9906 = vmatprep.subr.mxu1 %v5178_v8 }
 0x3a4   : > { %9907 = vmatpush3.msra.mxu1 %v5178_v8 }
 0x3a5   : > { %9781 = vmatmul.mubr.f32.gmra.mxu0 %v14318_v34  ;;  %9837 = vmatmul.mubr.f32.gmra.mxu1 %v14322_v13 }
 0x3a6   : > { %9783 = vmatprep.mubr.f32.mxu0 %v14319_v38  ;;  %9839 = vmatprep.mubr.f32.mxu1 %v14323_v21  ;;  %v11728_v38 = vand.u32 4294901760, %v4653_v29 }
 0x3a8   : > { %14334 = vst [vmem:[#allocation6_spill] sm:$0xff] %v11728_v38  ;;  %9856 = vmatprep.subr.mxu0 %v11728_v38 }
 0x3a9   : > { %9784 = vmatmul.mubr.f32.gmra.mxu0 %v14320_v62  ;;  %9840 = vmatmul.mubr.f32.gmra.mxu1 %v14325_v23 }
 0x3aa   : > { %9786 = vmatprep.mubr.f32.mxu0 %v14321_v1  ;;  %9842 = vmatprep.mubr.f32.mxu1 %v14327_v49 }
 0x3ab   : > { %9857 = vmatpush3.msra.mxu0 %v11728_v38 }
 0x3ac   : > { %9958 = vmatprep.subr.mxu0 %v11640_v25 }
 0x3ad   : > { %9787 = vmatmul.mubr.f32.gmra.mxu0 %v14322_v13  ;;  %9843 = vmatmul.mubr.f32.gmra.mxu1 %v14329_v7 }
 0x3ae   : > { %9789 = vmatprep.mubr.f32.mxu0 %v14323_v21  ;;  %9845 = vmatprep.mubr.f32.mxu1 %v14330_v35  ;;  %v11734_v21 = vsub.f32 %v4653_v29, %v11728_v38 }
 0x3b0   : > { %14335 = vst [vmem:[#allocation7_spill] sm:$0xff] %v11734_v21 }
 0x3b1   : > { %9790 = vmatmul.mubr.f32.gmra.mxu0 %v14325_v23  ;;  %9846 = vmatmul.mubr.f32.gmra.mxu1 %v14331_v16 }
 0x3b2   : > { %9792 = vmatprep.mubr.f32.mxu0 %v14327_v49  ;;  %9848 = vmatprep.mubr.f32.mxu1 %v14332_v33  ;;  %v11741_v49 = vand.u32 4294901760, %v11734_v21 }
 0x3b4   : > { %14336 = vst [vmem:[#allocation8_spill] sm:$0xff] %v11741_v49  ;;  %v5184_v8 = vsub.f32 %v11734_v21, %v11741_v49 }
 0x3b5   : > { %9793 = vmatmul.mubr.f32.gmra.mxu0 %v14329_v7  ;;  %9849 = vmatmul.mubr.f32.gmra.mxu1 %v11462_v27 }
 0x3b6   : > { %9795 = vmatprep.mubr.f32.mxu0 %v14330_v35  ;;  %9851 = vmatprep.mubr.f32.mxu1 %v11452_v12  ;;  %v9608_v2 = vpop.f32.mrf.mxu1 }
 0x3b8   : > { %v11663_v31 = vpop.f32.mrf.mxu1 }
 0x3b9   : > { %9796 = vmatmul.mubr.f32.gmra.mxu0 %v14331_v16  ;;  %9852 = vmatmul.mubr.f32.gmra.mxu1 %v11474_v5 }
 0x3ba   : > { %9798 = vmatprep.mubr.f32.mxu0 %v14332_v33  ;;  %v9611_v9 = vpop.f32.mrf.mxu1 }
 0x3bc   : > { %v11668_v39 = vpop.f32.mrf.mxu1 }
 0x3bd   : > { %9799 = vmatmul.mubr.f32.gmra.mxu0 %v11462_v27 }
 0x3be   : > { %9801 = vmatprep.mubr.f32.mxu0 %v11452_v12  ;;  %v9558_v19 = vpop.f32.mrf.mxu0  ;;  %v9614_v0 = vpop.f32.mrf.mxu1 }
 0x3bf   : > { %v2925_v17 = vadd.f32 %v9558_v19, %v11673_v41 }
 0x3c0   : > { %v11678_v61 = vpop.f32.mrf.mxu0  ;;  %v11680_v55 = vpop.f32.mrf.mxu1 }
 0x3c1   : > { %9802 = vmatmul.mubr.f32.gmra.mxu0 %v11474_v5  ;;  %v11683_v36 = vadd.f32 %v9608_v2, %v2925_v17  ;;  %v5185_v2 = vand.u32 4294901760, %v5184_v8 }
 0x3c2   : > { %v9561_v40 = vpop.f32.mrf.mxu0  ;;  %v9617_v15 = vpop.f32.mrf.mxu1 }
 0x3c3   : > { %v2945_v50 = vadd.f32 %v9561_v40, %v11673_v41  ;;  %9908 = vmatprep.subr.mxu1 %v5185_v2 }
 0x3c4   : > { %v11686_v11 = vpop.f32.mrf.mxu0  ;;  %v11688_v27 = vpop.f32.mrf.mxu1  ;;  %9909 = vmatpush3.msra.mxu1 %v5185_v2 }
 0x3c5   : > { %v11690_v12 = vadd.f32 %v9611_v9, %v2945_v50  ;;  %10010 = vmatprep.subr.mxu1 %v11635_v10 }
 0x3c6   : > { %v9564_v56 = vpop.f32.mrf.mxu0  ;;  %v9620_v24 = vpop.f32.mrf.mxu1 }
 0x3c7   : > { %v2965_v20 = vadd.f32 %v9564_v56, %v11673_v41 }
 0x3c8   : > { %v11693_v46 = vpop.f32.mrf.mxu0  ;;  %v11695_v59 = vpop.f32.mrf.mxu1 }
 0x3c9   : > { %v11697_v5 = vadd.f32 %v9614_v0, %v2965_v20 }
 0x3ca   : > { %v9567_v32 = vpop.f32.mrf.mxu0  ;;  %v9623_v37 = vpop.f32.mrf.mxu1 }
 0x3cb   : > { %v2985_v48 = vadd.f32 %v9567_v32, %v11673_v41 }
 0x3cc   : > { %v11700_v42 = vpop.f32.mrf.mxu0  ;;  %v11702_v52 = vpop.f32.mrf.mxu1 }
 0x3cd   : > { %v11704_v3 = vadd.f32 %v9617_v15, %v2985_v48 }
 0x3ce   : > { %v9570_v18 = vpop.f32.mrf.mxu0 }
 0x3cf   : > { %14333 = vst [vmem:[#allocation5_spill] sm:$0xff] %v11704_v3  ;;  %v3005_v54 = vadd.f32 %v9570_v18, %v11673_v41  ;;  %v9626_v58 = vpop.f32.mrf.mxu1 }
 0x3d0   : > { %v11707_v47 = vpop.f32.mrf.mxu0 }
 0x3d1   : > { %v11709_v45 = vpop.f32.mrf.mxu1  ;;  %v11711_v57 = vadd.f32 %v9620_v24, %v3005_v54 }
 0x3d2   : > { %v9573_v4 = vpop.f32.mrf.mxu0 }
 0x3d3   : > { %v3025_v51 = vadd.f32 %v9573_v4, %v11673_v41  ;;  %v9629_v22 = vpop.f32.mrf.mxu1 }
 0x3d4   : > { %v11714_v26 = vpop.f32.mrf.mxu0 }
 0x3d5   : > { %v11716_v44 = vpop.f32.mrf.mxu1  ;;  %v11718_v43 = vadd.f32 %v9623_v37, %v3025_v51 }
 0x3d7   : > { %v9576_v60 = vpop.f32.mrf.mxu0  ;;  %v9632_v63 = vpop.f32.mrf.mxu1 }
 0x3d8   : > { %v3045_v53 = vadd.f32 %v9576_v60, %v11673_v41 }
 0x3d9   : > { %v11724_v30 = vpop.f32.mrf.mxu0  ;;  %v11726_v34 = vpop.f32.mrf.mxu1 }
 0x3da   : > { %v11730_v62 = vadd.f32 %v9626_v58, %v3045_v53 }
 0x3db   : > { %v9579_v1 = vpop.f32.mrf.mxu0  ;;  %v9635_v13 = vpop.f32.mrf.mxu1 }
 0x3dc   : > { %v3065_v28 = vadd.f32 %v9579_v1, %v11673_v41 }
 0x3dd   : > { %v11738_v23 = vpop.f32.mrf.mxu0  ;;  %v11744_v7 = vpop.f32.mrf.mxu1 }
 0x3de   : > { %14337 = vst [vmem:[#allocation10_spill] sm:$0xff] %v11744_v7  ;;  %v11746_v14 = vadd.f32 %v9629_v22, %v3065_v28 }
 0x3df   : > { %v9582_v35 = vpop.f32.mrf.mxu0 }
 0x3e0   : > { %v3085_v16 = vadd.f32 %v9582_v35, %v11673_v41 }
 0x3e1   : > { %v11751_v33 = vpop.f32.mrf.mxu0 }
 0x3e2   : > { %v9638_v9 = vpop.f32.mrf.mxu1  ;;  %v11753_v19 = vadd.f32 %v9632_v63, %v3085_v16 }
 0x3e3   : > { %v9585_v0 = vpop.f32.mrf.mxu0 }
 0x3e4   : > { %v11755_v17 = vpop.f32.mrf.mxu1  ;;  %v3105_v40 = vadd.f32 %v9585_v0, %v11673_v41 }
 0x3e5   : > { %14338 = vst [vmem:[#allocation9_spill] sm:$0xff] %v11755_v17  ;;  %v11759_v50 = vpop.f32.mrf.mxu0 }
 0x3e6   : > { %v9641_v15 = vpop.f32.mrf.mxu1  ;;  %v11761_v56 = vadd.f32 %v9635_v13, %v3105_v40 }
 0x3e8   : > { %v11763_v24 = vpop.f32.mrf.mxu1 }
 0x3e9   : > { %14339 = vst [vmem:[#allocation11_spill] sm:$0xff] %v11763_v24 }
 0x3ea   : > { %v9588_v20 = vpop.f32.mrf.mxu0  ;;  %v9644_v32 = vpop.f32.mrf.mxu1 }
 0x3eb   : > { %v3125_v37 = vadd.f32 %v9588_v20, %v11673_v41 }
 0x3ec   : > { %v11766_v48 = vpop.f32.mrf.mxu0  ;;  %v11768_v18 = vpop.f32.mrf.mxu1 }
 0x3ed   : > { %14340 = vst [vmem:[#allocation12_spill] sm:$0xff] %v11768_v18  ;;  %v11770_v54 = vadd.f32 %v9638_v9, %v3125_v37 }
 0x3ee   : > { %v9591_v58 = vpop.f32.mrf.mxu0  ;;  %v9647_v4 = vpop.f32.mrf.mxu1 }
 0x3ef   : > { %v3145_v51 = vadd.f32 %v9591_v58, %v11673_v41 }
 0x3f0   : > { %v11773_v22 = vpop.f32.mrf.mxu0  ;;  %v11775_v60 = vpop.f32.mrf.mxu1 }
 0x3f1   : > { %14341 = vst [vmem:[#allocation13_spill] sm:$0xff] %v11775_v60  ;;  %v11777_v63 = vadd.f32 %v9641_v15, %v3145_v51 }
 0x3f2   : > { %v9594_v53 = vpop.f32.mrf.mxu0 }
 0x3f3   : > { %v3165_v29 = vadd.f32 %v9594_v53, %v11673_v41 }
 0x3f4   : > { %v11780_v1 = vpop.f32.mrf.mxu0 }
 0x3f5   : > { %v9650_v13 = vpop.f32.mrf.mxu1  ;;  %v11782_v28 = vadd.f32 %v9644_v32, %v3165_v29 }
 0x3f6   : > { %v9597_v35 = vpop.f32.mrf.mxu0 }
 0x3f7   : > { %v11784_v8 = vpop.f32.mrf.mxu1  ;;  %v3185_v16 = vadd.f32 %v9597_v35, %v11673_v41 }
 0x3f8   : > { %14342 = vst [vmem:[#allocation14_spill] sm:$0xff] %v11784_v8  ;;  %v11787_v9 = vpop.f32.mrf.mxu0 }
 0x3f9   : > { %v9653_v2 = vpop.f32.mrf.mxu1  ;;  %14343 = vst [vmem:[#allocation15_spill] sm:$0xff] %v11787_v9  ;;  %v11789_v0 = vadd.f32 %v9647_v4, %v3185_v16 }
 0x3fb   : > { %v11791_v40 = vpop.f32.mrf.mxu1 }
 0x3fc   : > { %14344 = vst [vmem:[#allocation16_spill] sm:$0xff] %v11791_v40 }
 0x3fd   : > { %v9600_v15 = vpop.f32.mrf.mxu0  ;;  %v11793_v20 = vpop.f32.mrf.mxu1 }
 0x3fe   : > { %v3205_v37 = vadd.f32 %v9600_v15, %v11673_v41 }
 0x3ff   : > { %v11796_v58 = vpop.f32.mrf.mxu0  ;;  %v11798_v32 = vpop.f32.mrf.mxu1 }
 0x400   : > { %14345 = vst [vmem:[#allocation17_spill] sm:$0xff] %v11796_v58  ;;  %v11800_v51 = vadd.f32 %v9650_v13, %v3205_v37 }
 0x401   : > { %v9603_v53 = vpop.f32.mrf.mxu0  ;;  %v11802_v29 = vpop.f32.mrf.mxu1 }
 0x402   : > { %v3225_v35 = vadd.f32 %v9603_v53, %v11673_v41 }
 0x403   : > { %v11805_v4 = vpop.f32.mrf.mxu0  ;;  %v11807_v16 = vpop.f32.mrf.mxu1 }
 0x404   : > { %14346 = vst [vmem:[#allocation18_spill] sm:$0xff] %v11805_v4  ;;  %v11809_v49 = vadd.f32 %v9653_v2, %v3225_v35 }
 0x405   : > { %v11811_v6 = vpop.f32.mrf.mxu0  ;;  %v11813_v15 = vpop.f32.mrf.mxu1 }
 0x406   : > { %14347 = vst [vmem:[#allocation19_spill] sm:$0xff] %v11813_v15 }
 0x407   : > { %v11815_v21 = vpop.f32.mrf.mxu0  ;;  %v11817_v25 = vpop.f32.mrf.mxu1 }
 0x408   : > { %14348 = vst [vmem:[#allocation20_spill] sm:$0xff] %v11817_v25 }
 0x409   : > { %v11819_v13 = vpop.f32.mrf.mxu0  ;;  %v11821_v37 = vpop.f32.mrf.mxu1 }
 0x40a   : > { %14349 = vst [vmem:[#allocation21_spill] sm:$0xff] %v11821_v37 }
 0x40b   : > { %v11823_v38 = vpop.f32.mrf.mxu0  ;;  %v11825_v53 = vpop.f32.mrf.mxu1 }
 0x40c   : > { %14350 = vst [vmem:[#allocation22_spill] sm:$0xff] %v11825_v53 }
 0x40d   : > { %v11827_v10 = vpop.f32.mrf.mxu0  ;;  %v9720_v2 = vpop.f32.mrf.mxu1 }
 0x40f   : > { %v11829_v35 = vpop.f32.mrf.mxu0  ;;  %v11831_v40 = vpop.f32.mrf.mxu1 }
 0x410   : > { %14351 = vst [vmem:[#allocation23_spill] sm:$0xff] %v11831_v40 }
 0x411   : > { %v11833_v8 = vpop.f32.mrf.mxu0  ;;  %v9723_v60 = vpop.f32.mrf.mxu1 }
 0x412   : > { %14352 = vst [vmem:[#allocation24_spill] sm:$0xff] %v11833_v8 }
 0x413   : > { %v11835_v4 = vpop.f32.mrf.mxu0  ;;  %v11837_v25 = vpop.f32.mrf.mxu1 }
 0x414   : > { %14353 = vst [vmem:[#allocation25_spill] sm:$0xff] %v11835_v4  ;;  %14354 = vst [vmem:[#allocation26_spill] sm:$0xff] %v11837_v25 }
 0x415   : > { %v9670_v18 = vpop.f32.mrf.mxu0  ;;  %v9726_v37 = vpop.f32.mrf.mxu1 }
 0x416   : > { %v3624_v24 = vadd.f32 %v9670_v18, %v11711_v57 }
 0x417   : > { %v11840_v58 = vpop.f32.mrf.mxu0  ;;  %v11842_v53 = vpop.f32.mrf.mxu1 }
 0x418   : > { %14355 = vst [vmem:[#allocation27_spill] sm:$0xff] %v11840_v58  ;;  %14356 = vst [vmem:[#allocation28_spill] sm:$0xff] %v11842_v53  ;;  %v11844_v15 = vadd.f32 %v9720_v2, %v3624_v24 }
 0x419   : > { %v9673_v17 = vpop.f32.mrf.mxu0  ;;  %v9729_v7 = vpop.f32.mrf.mxu1 }
 0x41a   : > { %14357 = vst [vmem:[#allocation29_spill] sm:$0xff] %v11844_v15  ;;  %v3638_v40 = vadd.f32 %v9673_v17, %v11718_v43 }
 0x41b   : > { %v11847_v8 = vpop.f32.mrf.mxu0  ;;  %v11849_v3 = vpop.f32.mrf.mxu1 }
 0x41c   : > { %14358 = vst [vmem:[#allocation30_spill] sm:$0xff] %v11849_v3  ;;  %v11851_v4 = vadd.f32 %v9723_v60, %v3638_v40 }
 0x41d   : > { %v9676_v25 = vpop.f32.mrf.mxu0  ;;  %v9732_v9 = vpop.f32.mrf.mxu1 }
 0x41e   : > { %14359 = vst [vmem:[#allocation31_spill] sm:$0xff] %v11851_v4  ;;  %v3652_v57 = vadd.f32 %v9676_v25, %v11730_v62 }
 0x41f   : > { %v11854_v18 = vpop.f32.mrf.mxu0  ;;  %v11856_v58 = vpop.f32.mrf.mxu1 }
 0x420   : > { %14360 = vst [vmem:[#allocation32_spill] sm:$0xff] %v11856_v58  ;;  %v11858_v24 = vadd.f32 %v9726_v37, %v3652_v57 }
 0x421   : > { %v9679_v2 = vpop.f32.mrf.mxu0  ;;  %v9735_v15 = vpop.f32.mrf.mxu1 }
 0x422   : > { %14361 = vst [vmem:[#allocation33_spill] sm:$0xff] %v11858_v24  ;;  %v3666_v43 = vadd.f32 %v9679_v2, %v11746_v14 }
 0x423   : > { %v11861_v17 = vpop.f32.mrf.mxu0  ;;  %v11863_v53 = vpop.f32.mrf.mxu1 }
 0x424   : > { %14362 = vst [vmem:[#allocation34_spill] sm:$0xff] %v11863_v53  ;;  %v11865_v60 = vadd.f32 %v9729_v7, %v3666_v43 }
 0x425   : > { %v9682_v40 = vpop.f32.mrf.mxu0  ;;  %v9738_v4 = vpop.f32.mrf.mxu1 }
 0x426   : > { %14363 = vst [vmem:[#allocation35_spill] sm:$0xff] %v11865_v60  ;;  %v3680_v25 = vadd.f32 %v9682_v40, %v11753_v19 }
 0x427   : > { %v11868_v62 = vpop.f32.mrf.mxu0  ;;  %v11870_v3 = vpop.f32.mrf.mxu1 }
 0x428   : > { %14364 = vst [vmem:[#allocation36_spill] sm:$0xff] %v11870_v3  ;;  %v11872_v37 = vadd.f32 %v9732_v9, %v3680_v25 }
 0x429   : > { %v9685_v57 = vpop.f32.mrf.mxu0  ;;  %v9741_v24 = vpop.f32.mrf.mxu1 }
 0x42a   : > { %14365 = vst [vmem:[#allocation37_spill] sm:$0xff] %v11872_v37  ;;  %v3694_v14 = vadd.f32 %v9685_v57, %v11761_v56 }
 0x42b   : > { %v11875_v2 = vpop.f32.mrf.mxu0  ;;  %v11877_v58 = vpop.f32.mrf.mxu1 }
 0x42c   : > { %14366 = vst [vmem:[#allocation38_spill] sm:$0xff] %v11877_v58  ;;  %v11879_v7 = vadd.f32 %v9735_v15, %v3694_v14 }
 0x42d   : > { %v9688_v43 = vpop.f32.mrf.mxu0  ;;  %v9744_v60 = vpop.f32.mrf.mxu1 }
 0x42e   : > { %14367 = vst [vmem:[#allocation39_spill] sm:$0xff] %v11879_v7  ;;  %v3708_v19 = vadd.f32 %v9688_v43, %v11770_v54 }
 0x42f   : > { %v11882_v40 = vpop.f32.mrf.mxu0  ;;  %v11884_v53 = vpop.f32.mrf.mxu1 }
 0x430   : > { %14368 = vst [vmem:[#allocation40_spill] sm:$0xff] %v11884_v53  ;;  %v11886_v9 = vadd.f32 %v9738_v4, %v3708_v19 }
 0x431   : > { %v9691_v25 = vpop.f32.mrf.mxu0  ;;  %v9747_v37 = vpop.f32.mrf.mxu1 }
 0x432   : > { %14369 = vst [vmem:[#allocation41_spill] sm:$0xff] %v11886_v9  ;;  %v3722_v56 = vadd.f32 %v9691_v25, %v11777_v63 }
 0x433   : > { %v11889_v57 = vpop.f32.mrf.mxu0  ;;  %v11891_v3 = vpop.f32.mrf.mxu1 }
 0x434   : > { %v11893_v15 = vadd.f32 %v9741_v24, %v3722_v56  ;;  %v2915_v24 = vadd.f32 %v11673_v41, %v11678_v61  ;;  %v2955_v61 = vadd.f32 %v11673_v41, %v11693_v46  ;;  %v3055_v46 = vadd.f32 %v11673_v41, %v11738_v23 }
 0x435   : > { %v9694_v14 = vpop.f32.mrf.mxu0  ;;  %v9750_v7 = vpop.f32.mrf.mxu1 }
 0x436   : > { %14370 = vst [vmem:[#allocation42_spill] sm:$0xff] %v11893_v15  ;;  %v3736_v54 = vadd.f32 %v9694_v14, %v11782_v28 }
 0x437   : > { %v11896_v43 = vpop.f32.mrf.mxu0  ;;  %v11898_v58 = vpop.f32.mrf.mxu1 }
 0x438   : > { %v11900_v4 = vadd.f32 %v9744_v60, %v3736_v54  ;;  %v2935_v60 = vadd.f32 %v11673_v41, %v11686_v11  ;;  %v2995_v11 = vadd.f32 %v11673_v41, %v11707_v47  ;;  %v3582_v47 = vadd.f32 %v11819_v13, %v11690_v12 }
 0x439   : > { %v9697_v19 = vpop.f32.mrf.mxu0  ;;  %v9753_v9 = vpop.f32.mrf.mxu1  ;;  %v3095_v13 = vadd.f32 %v11673_v41, %v11759_v50  ;;  %v3155_v50 = vadd.f32 %v11673_v41, %v11780_v1  ;;  %v14377_v1 = vld [vmem:[#allocation9_spill] sm:$0xff] }
 0x43a   : > { %14371 = vst [vmem:[#allocation43_spill] sm:$0xff] %v11900_v4  ;;  %v3750_v63 = vadd.f32 %v9697_v19, %v11789_v0  ;;  %v3568_v0 = vadd.f32 %v11811_v6, %v11683_v36  ;;  %v3301_v19 = vadd.f32 %v11663_v31, %v2915_v24  ;;  %v3035_v36 = vadd.f32 %v11673_v41, %v11724_v30 }
 0x43b   : > { %v11903_v25 = vpop.f32.mrf.mxu0  ;;  %v11905_v53 = vpop.f32.mrf.mxu1 }
 0x43c   : > { %14372 = vst [vmem:[#allocation44_spill] sm:$0xff] %v11905_v53  ;;  %v11909_v56 = vadd.f32 %v9747_v37, %v3750_v63  ;;  %v2975_v37 = vadd.f32 %v11673_v41, %v11700_v42  ;;  %v3561_v6 = vadd.f32 %v11815_v21, %v3301_v19  ;;  %v3313_v42 = vadd.f32 %v11668_v39, %v2935_v60 }
 0x43d   : > { %v9700_v28 = vpop.f32.mrf.mxu0  ;;  %v9808_v14 = vpop.f32.mrf.mxu1  ;;  %v3075_v21 = vadd.f32 %v11673_v41, %v11751_v33  ;;  %v3349_v19 = vadd.f32 %v11695_v59, %v2995_v11  ;;  %v3115_v33 = vadd.f32 %v11673_v41, %v11766_v48  ;;  %v3596_v59 = vadd.f32 %v11827_v10, %v11697_v5 }
 0x43e   : > { %v3764_v15 = vadd.f32 %v9700_v28, %v11800_v51  ;;  %v3015_v28 = vadd.f32 %v11673_v41, %v11714_v26  ;;  %v3860_v26 = vadd.f32 %v11793_v20, %v3568_v0  ;;  %v3575_v30 = vadd.f32 %v11823_v38, %v3313_v42 }
 0x43f   : > { %v11914_v54 = vpop.f32.mrf.mxu0  ;;  %v4431_v4 = vpop.f32.mrf.mxu1  ;;  %v3337_v23 = vadd.f32 %v11688_v27, %v2975_v37  ;;  %v3852_v20 = vadd.f32 %v11798_v32, %v3561_v6  ;;  %v3373_v38 = vadd.f32 %v11709_v45, %v3035_v36  ;;  %v3135_v32 = vadd.f32 %v11673_v41, %v11773_v22  ;;  %v14375_v6 = vld [vmem:[#allocation24_spill] sm:$0xff] }
 0x440   : > { %v11919_v53 = vadd.f32 %v9750_v7, %v3764_v15  ;;  %v3397_v48 = vadd.f32 %v11726_v34, %v3075_v21  ;;  %v14379_v21 = vld [vmem:[#allocation17_spill] sm:$0xff] }
 0x441   : > { %v9703_v51 = vpop.f32.mrf.mxu0  ;;  %v9811_v63 = vpop.f32.mrf.mxu1 }
 0x442   : > { %v3778_v31 = vadd.f32 %v9703_v51, %v11809_v49  ;;  %v3325_v49 = vadd.f32 %v11680_v55, %v2955_v61  ;;  %v3361_v51 = vadd.f32 %v11702_v52, %v3015_v28  ;;  %v3385_v55 = vadd.f32 %v11716_v44, %v3055_v46  ;;  %v14374_v28 = vld [vmem:[#allocation5_spill] sm:$0xff] }
 0x443   : > { %v11936_v7 = vpop.f32.mrf.mxu0  ;;  %v4443_v15 = vpop.f32.mrf.mxu1  ;;  %v3876_v61 = vadd.f32 %v11802_v29, %v3582_v47  ;;  %v3868_v44 = vadd.f32 %v11807_v16, %v3575_v30  ;;  %v3610_v22 = vadd.f32 %v14375_v6, %v14374_v28  ;;  %v3421_v46 = vadd.f32 %v14377_v1, %v3115_v33  ;;  %v14380_v30 = vld [vmem:[#allocation25_spill] sm:$0xff] }
 0x444   : > { %v11941_v24 = vadd.f32 %v9753_v9, %v3778_v31  ;;  %v3589_v11 = vadd.f32 %v11829_v35, %v3325_v49  ;;  %v14376_v31 = vld [vmem:[#allocation10_spill] sm:$0xff]  ;;  %v3603_v49 = vadd.f32 %v14380_v30, %v3337_v23  ;;  %v14387_v6 = vld [vmem:[#allocation21_spill] sm:$0xff] }
 0x445   : > { %v9758_v39 = vpop.f32.mrf.mxu0  ;;  %v9814_v60 = vpop.f32.mrf.mxu1  ;;  %v3409_v36 = vadd.f32 %v14376_v31, %v3095_v13 }
 0x446   : > { %v4180_v12 = vadd.f32 %v9758_v39, %v3860_v26  ;;  %v14378_v26 = vld [vmem:[#allocation19_spill] sm:$0xff] }
 0x447   : > { %v4173_v27 = vpop.f32.mrf.mxu0  ;;  %v4455_v9 = vpop.f32.mrf.mxu1  ;;  %v3892_v35 = vadd.f32 %v14378_v26, %v3596_v59  ;;  %v14381_v39 = vld [vmem:[#allocation11_spill] sm:$0xff] }
 0x448   : > { %v4438_v0 = vadd.f32 %v9808_v14, %v4180_v12  ;;  %v4174_v52 = vadd.f32 %v4173_v27, %v3852_v20  ;;  %v14373_v14 = vld [vmem:[#allocation15_spill] sm:$0xff]  ;;  %v3433_v12 = vadd.f32 %v14381_v39, %v3135_v32  ;;  %v14382_v20 = vld [vmem:[#allocation12_spill] sm:$0xff]  ;;  %v3908_v32 = vadd.f32 %v14387_v6, %v3610_v22  ;;  %v14392_v39 = vld [vmem:[#allocation26_spill] sm:$0xff] }
 0x449   : > { %v9761_v45 = vpop.f32.mrf.mxu0  ;;  %v9817_v37 = vpop.f32.mrf.mxu1  ;;  %v3175_v29 = vadd.f32 %v11673_v41, %v14373_v14  ;;  %v3445_v27 = vadd.f32 %v14382_v20, %v3155_v50  ;;  %v14385_v59 = vld [vmem:[#allocation27_spill] sm:$0xff]  ;;  %v3631_v50 = vadd.f32 %v11847_v8, %v3361_v51  ;;  %v3687_v8 = vadd.f32 %v11875_v2, %v3409_v36  ;;  %v14390_v51 = vld [vmem:[#allocation16_spill] sm:$0xff] }
 0x44a   : > { %10535 = vtanh.f32 %v4438_v0  ;;  %v4432_v10 = vadd.f32 %v4431_v4, %v4174_v52  ;;  %v4192_v5 = vadd.f32 %v9761_v45, %v3876_v61  ;;  %v3195_v4 = vadd.f32 %v11673_v41, %v14379_v21  ;;  %v14383_v61 = vld [vmem:[#allocation20_spill] sm:$0xff] }
 0x44b   : > { %v4185_v34 = vpop.f32.mrf.mxu0  ;;  %v4467_v42 = vpop.f32.mrf.mxu1  ;;  %v3884_v45 = vadd.f32 %v14383_v61, %v3589_v11  ;;  %v3659_v11 = vadd.f32 %v11861_v17, %v3385_v55  ;;  %v14391_v17 = vld [vmem:[#allocation23_spill] sm:$0xff]  ;;  %v14393_v2 = vld [vmem:[#allocation28_spill] sm:$0xff] }
 0x44c   : > { %10537 = vtanh.f32 %v4432_v10  ;;  %v4450_v47 = vadd.f32 %v9811_v63, %v4192_v5  ;;  %v4186_v16 = vadd.f32 %v4185_v34, %v3868_v44  ;;  %v14384_v63 = vld [vmem:[#allocation18_spill] sm:$0xff]  ;;  %v3617_v10 = vadd.f32 %v14385_v59, %v3349_v19  ;;  %v14386_v5 = vld [vmem:[#allocation13_spill] sm:$0xff]  ;;  %v14396_v61 = vld [vmem:[#allocation32_spill] sm:$0xff] }
 0x44d   : > { %v9764_v0 = vpop.f32.mrf.mxu0  ;;  %v9820_v13 = vpop.f32.mrf.mxu1  ;;  %v3215_v44 = vadd.f32 %v11673_v41, %v14384_v63  ;;  %v3457_v14 = vadd.f32 %v14386_v5, %v3175_v29  ;;  %v14388_v34 = vld [vmem:[#allocation14_spill] sm:$0xff]  ;;  %v3673_v29 = vadd.f32 %v11868_v62, %v3397_v48  ;;  %v3715_v62 = vadd.f32 %v11889_v57, %v3433_v12  ;;  %v14398_v59 = vld [vmem:[#allocation36_spill] sm:$0xff] }
 0x44e   : > { %10539 = vtanh.f32 %v4450_v47  ;;  %v4444_v33 = vadd.f32 %v4443_v15, %v4186_v16  ;;  %v4204_v52 = vadd.f32 %v9764_v0, %v3892_v35  ;;  %v3645_v15 = vadd.f32 %v11854_v18, %v3373_v38  ;;  %v14389_v19 = vld [vmem:[#allocation22_spill] sm:$0xff] }
 0x44f   : > { %v4197_v28 = vpop.f32.mrf.mxu0  ;;  %v4479_v23 = vpop.f32.mrf.mxu1  ;;  %v3469_v47 = vadd.f32 %v14388_v34, %v3195_v4  ;;  %v3900_v26 = vadd.f32 %v14389_v19, %v3603_v49  ;;  %v3481_v21 = vadd.f32 %v14390_v51, %v3215_v44  ;;  %v3916_v55 = vadd.f32 %v14391_v17, %v3617_v10  ;;  %v14401_v34 = vld [vmem:[#allocation31_spill] sm:$0xff] }
 0x450   : > { %10541 = vtanh.f32 %v4444_v33  ;;  %v4462_v31 = vadd.f32 %v9814_v60, %v4204_v52  ;;  %v4198_v1 = vadd.f32 %v4197_v28, %v3884_v45  ;;  %v3701_v60 = vadd.f32 %v11882_v40, %v3421_v46  ;;  %v14394_v40 = vld [vmem:[#allocation30_spill] sm:$0xff]  ;;  %v14395_v33 = vld [vmem:[#allocation29_spill] sm:$0xff] }
 0x451   : > { %v9767_v41 = vpop.f32.mrf.mxu0  ;;  %v9823_v16 = vpop.f32.mrf.mxu1  ;;  %v3932_v49 = vadd.f32 %v14392_v39, %v3631_v50  ;;  %v3948_v36 = vadd.f32 %v14393_v2, %v3645_v15  ;;  %v12000_v46 = vadd.f32 %v14394_v40, %v3659_v11  ;;  %v3743_v63 = vadd.f32 %v11903_v25, %v3457_v14  ;;  %v14399_v50 = vld [vmem:[#allocation38_spill] sm:$0xff] }
 0x452   : > { %10543 = vtanh.f32 %v4462_v31  ;;  %v4456_v35 = vadd.f32 %v4455_v9, %v4198_v1  ;;  %v4216_v22 = vadd.f32 %v9767_v41, %v3908_v32  ;;  %v3729_v9 = vadd.f32 %v11896_v43, %v3445_v27  ;;  %v14397_v27 = vld [vmem:[#allocation34_spill] sm:$0xff]  ;;  %v14400_v1 = vld [vmem:[#allocation40_spill] sm:$0xff] }
 0x453   : > { %v4209_v18 = vpop.f32.mrf.mxu0  ;;  %v4491_v38 = vpop.f32.mrf.mxu1  ;;  %v3757_v57 = vadd.f32 %v11914_v54, %v3469_v47  ;;  %v12011_v44 = vadd.f32 %v14397_v27, %v3687_v8  ;;  %v12014_v10 = vadd.f32 %v14398_v59, %v3701_v60  ;;  %v3771_v32 = vadd.f32 %v11936_v7, %v3481_v21 }
 0x454   : > { %10545 = vtanh.f32 %v4456_v35  ;;  %v4474_v4 = vadd.f32 %v9817_v37, %v4216_v22  ;;  %v4210_v30 = vadd.f32 %v4209_v18, %v3900_v26  ;;  %v12004_v37 = vadd.f32 %v14396_v61, %v3673_v29 }
 0x455   : > { %v9770_v48 = vpop.f32.mrf.mxu0  ;;  %v9826_v20 = vpop.f32.mrf.mxu1  ;;  %v12023_v31 = vadd.f32 %v14399_v50, %v3715_v62  ;;  %v12026_v15 = vadd.f32 %v14400_v1, %v3729_v9  ;;  %v12038_v35 = vadd.f32 %v11891_v3, %v3743_v63  ;;  %v12041_v22 = vadd.f32 %v11898_v58, %v3757_v57  ;;  %v14402_v58 = vld [vmem:[#allocation44_spill] sm:$0xff]  ;;  %v14405_v63 = vld [vmem:[#allocation6_spill] sm:$0xff] }
 0x456   : > { %10547 = vtanh.f32 %v4474_v4  ;;  %v4468_v0 = vadd.f32 %v4467_v42, %v4210_v30  ;;  %v4228_v52 = vadd.f32 %v9770_v48, %v14395_v33  ;;  %v12054_v4 = vadd.f32 %v14402_v58, %v3771_v32  ;;  %v14403_v30 = vld [vmem:[#allocation33_spill] sm:$0xff]  ;;  %v14404_v33 = vld [vmem:[#allocation2_spill] sm:$0xff] }
 0x457   : > { %v10536_v45 = vpop.eup %10535  ;;  %v4221_v43 = vpop.f32.mrf.mxu0 }
 0x458   : > { %v12008_v12 = vpop.f32.mrf.mxu1  ;;  %v4666_v42 = vsel %vm484_vm0, %v10536_v45, 0  ;;  %10549 = vtanh.f32 %v4468_v0  ;;  %v4486_v5 = vadd.f32 %v9820_v13, %v4228_v52  ;;  %v4222_v28 = vadd.f32 %v4221_v43, %v3916_v55 }
 0x459   : > { %v10538_v6 = vpop.eup %10537  ;;  %v9773_v25 = vpop.f32.mrf.mxu0  ;;  %v12020_v54 = vand.u32 4294901760, %v4666_v42 }
 0x45a   : > { %v12018_v14 = vpop.f32.mrf.mxu1  ;;  %10551 = vtanh.f32 %v4486_v5  ;;  %v4480_v11 = vadd.f32 %v4479_v23, %v4222_v28  ;;  %v4240_v47 = vadd.f32 %v9773_v25, %v14401_v34  ;;  %v4663_v13 = vsel %vm484_vm0, %v10538_v6, 0  ;;  %v14406_v28 = vld [vmem:[#allocation35_spill] sm:$0xff] }
 0x45b   : > { %v10540_v41 = vpop.eup %10539  ;;  %v4233_v19 = vpop.f32.mrf.mxu0  ;;  %v12032_v26 = vand.u32 4294901760, %v4663_v13  ;;  %v12035_v29 = vsub.f32 %v4666_v42, %v12020_v54 }
 0x45c   : > { %v12030_v7 = vpop.f32.mrf.mxu1  ;;  %10553 = vtanh.f32 %v4480_v11  ;;  %v4498_v23 = vadd.f32 %v9823_v16, %v4240_v47  ;;  %v4234_v8 = vadd.f32 %v4233_v19, %v3932_v49  ;;  %v4672_v60 = vsel %vm484_vm0, %v10540_v41, 0 }
 0x45d   : > { %v10542_v51 = vpop.eup %10541  ;;  %v9776_v21 = vpop.f32.mrf.mxu0  ;;  %9910 = vmatprep.mubr.f32.mxu1 %v12032_v26  ;;  %v12047_v17 = vand.u32 4294901760, %v4672_v60  ;;  %v12050_v55 = vsub.f32 %v4663_v13, %v12032_v26  ;;  %v14140_v3 = vand.u32 4294901760, %v12035_v29 }
 0x45e   : > { %v12044_v18 = vpop.f32.mrf.mxu1  ;;  %10555 = vtanh.f32 %v4498_v23  ;;  %v4492_v16 = vadd.f32 %v4491_v38, %v4234_v8  ;;  %v4252_v39 = vadd.f32 %v9776_v21, %v14403_v30  ;;  %9911 = vmatmul.mubr.f32.vlgmr.msra.gmra.mxu1 %v12020_v54  ;;  %v4669_v49 = vsel %vm484_vm0, %v10542_v51, 0 }
 0x45f   : > { %v10544_v62 = vpop.eup %10543  ;;  %v4245_v9 = vpop.f32.mrf.mxu0  ;;  %v12061_v2 = vand.u32 4294901760, %v4669_v49  ;;  %v12064_v40 = vsub.f32 %v4672_v60, %v12047_v17  ;;  %v14144_v0 = vand.u32 4294901760, %v12050_v55  ;;  %v4838_v38 = vsub.f32 %v12035_v29, %v14140_v3  ;;  %10011 = vmatpush3.msra.mxu1 %v14404_v33 }
 0x460   : > { %v12059_v48 = vpop.f32.mrf.mxu1  ;;  %10557 = vtanh.f32 %v4492_v16  ;;  %v4510_v52 = vadd.f32 %v9826_v20, %v4252_v39  ;;  %v4246_v61 = vadd.f32 %v4245_v9, %v3948_v36  ;;  %v4678_v45 = vsel %vm484_vm0, %v10544_v62, 0  ;;  %10012 = vmatprep.subr.mxu1 %v14405_v63  ;;  %v14407_v16 = vld [vmem:[#allocation37_spill] sm:$0xff]  ;;  %v14408_v62 = vld [vmem:[#allocation3_spill] sm:$0xff] }
 0x461   : > { %v10546_v57 = vpop.eup %10545  ;;  %v9779_v43 = vpop.f32.mrf.mxu0  ;;  %9913 = vmatprep.mubr.f32.mxu1 %v12061_v2  ;;  %v4828_v59 = vsub.f32 %v12050_v55, %v14144_v0  ;;  %v4839_v42 = vand.u32 4294901760, %v4838_v38  ;;  %v12079_v5 = vand.u32 4294901760, %v4678_v45  ;;  %v12082_v20 = vsub.f32 %v4669_v49, %v12061_v2  ;;  %10013 = vmatpush3.msra.mxu1 %v14405_v63 }
 0x462   : > { %v12073_v27 = vpop.f32.mrf.mxu1  ;;  %10559 = vtanh.f32 %v4510_v52  ;;  %v4504_v36 = vadd.f32 %v12008_v12, %v4246_v61  ;;  %v4264_v6 = vadd.f32 %v9779_v43, %v14406_v28  ;;  %9914 = vmatmul.mubr.f32.gmra.mxu1 %v12047_v17  ;;  %v4675_v32 = vsel %vm484_vm0, %v10546_v57, 0  ;;  %10114 = vmatprep.subr.mxu1 %v14404_v33 }
 0x463   : > { %v10548_v25 = vpop.eup %10547  ;;  %v4257_v50 = vpop.f32.mrf.mxu0  ;;  %v4829_v11 = vand.u32 4294901760, %v4828_v59  ;;  %v12092_v34 = vand.u32 4294901760, %v4675_v32  ;;  %v12095_v47 = vsub.f32 %v4678_v45, %v12079_v5  ;;  %v14137_v12 = vand.u32 4294901760, %v12082_v20 }
 0x464   : > { %v12090_v1 = vpop.f32.mrf.mxu1  ;;  %10561 = vtanh.f32 %v4504_v36  ;;  %v4522_v13 = vadd.f32 %v12018_v14, %v4264_v6  ;;  %v4258_v41 = vadd.f32 %v4257_v50, %v12000_v46  ;;  %v14135_v19 = vand.u32 4294901760, %v12064_v40 }
 0x465   : > { %v10550_v23 = vpop.eup %10549  ;;  %v9782_v8 = vpop.f32.mrf.mxu0  ;;  %9858 = vmatprep.mubr.f32.mxu0 %v4829_v11  ;;  %9916 = vmatprep.mubr.f32.mxu1 %v12092_v34  ;;  %v4848_v51 = vsub.f32 %v12082_v20, %v14137_v12  ;;  %v4684_v21 = vsel %vm484_vm0, %v10548_v25, 0  ;;  %v12109_v58 = vsub.f32 %v4675_v32, %v12092_v34  ;;  %v14132_v46 = vand.u32 4294901760, %v12095_v47  ;;  %v14410_v11 = vld [vmem:[#allocation39_spill] sm:$0xff] }
 0x466   : > { %v12101_v60 = vpop.f32.mrf.mxu1  ;;  %10563 = vtanh.f32 %v4522_v13  ;;  %v4516_v14 = vadd.f32 %v12030_v7, %v4258_v41  ;;  %v4276_v30 = vadd.f32 %v9782_v8, %v14407_v16  ;;  %9859 = vmatmul.mubr.f32.vlgmr.msra.gmra.mxu0 %v4839_v42  ;;  %9917 = vmatmul.mubr.f32.gmra.mxu1 %v12079_v5  ;;  %v4681_v39 = vsel %vm484_vm0, %v10550_v23, 0  ;;  %v14409_v42 = vld [vmem:[#allocation7_spill] sm:$0xff] }
 0x467   : > { %v10552_v49 = vpop.eup %10551  ;;  %9959 = vmatpush3.msra.mxu0 %v14408_v62  ;;  %v4269_v9 = vpop.f32.mrf.mxu0  ;;  %v4849_v52 = vand.u32 4294901760, %v4848_v51  ;;  %v12119_v61 = vand.u32 4294901760, %v4681_v39  ;;  %v4858_v7 = vsub.f32 %v12064_v40, %v14135_v19  ;;  %v12124_v45 = vand.u32 4294901760, %v4684_v21 }
 0x468   : > { %v12117_v38 = vpop.f32.mrf.mxu1  ;;  %10565 = vtanh.f32 %v4516_v14  ;;  %v4534_v57 = vadd.f32 %v12044_v18, %v4276_v30  ;;  %v4270_v43 = vadd.f32 %v4269_v9, %v12004_v37  ;;  %v14133_v59 = vand.u32 4294901760, %v12109_v58  ;;  %9960 = vmatprep.subr.mxu0 %v14409_v42  ;;  %v14411_v30 = vld [vmem:[#allocation4_spill] sm:$0xff] }
 0x469   : > { %v10554_v36 = vpop.eup %10553  ;;  %v9785_v28 = vpop.f32.mrf.mxu0  ;;  %9861 = vmatprep.mubr.f32.mxu0 %v4849_v52  ;;  %9919 = vmatprep.mubr.f32.mxu1 %v12119_v61  ;;  %v4859_v32 = vand.u32 4294901760, %v4858_v7  ;;  %v12134_v25 = vsub.f32 %v4684_v21, %v12124_v45  ;;  %v4878_v18 = vsub.f32 %v12095_v47, %v14132_v46  ;;  %v4690_v37 = vsel %vm484_vm0, %v10552_v49, 0 }
 0x46a   : > { %v12130_v6 = vpop.f32.mrf.mxu1  ;;  %10567 = vtanh.f32 %v4534_v57  ;;  %v4528_v50 = vadd.f32 %v12059_v48, %v4270_v43  ;;  %v4288_v13 = vadd.f32 %v9785_v28, %v14410_v11  ;;  %9920 = vmatmul.mubr.f32.gmra.mxu1 %v12124_v45  ;;  %v4868_v41 = vsub.f32 %v12109_v58, %v14133_v59  ;;  %9961 = vmatpush3.msra.mxu0 %v14409_v42 }
 0x46b   : > { %v10556_v23 = vpop.eup %10555  ;;  %9862 = vmatmul.mubr.f32.gmra.mxu0 %v4859_v32  ;;  %v4281_v8 = vpop.f32.mrf.mxu0  ;;  %v4687_v21 = vsel %vm484_vm0, %v10554_v36, 0  ;;  %v4879_v14 = vand.u32 4294901760, %v4878_v18  ;;  %v12150_v16 = vand.u32 4294901760, %v4690_v37  ;;  %v12153_v48 = vsub.f32 %v4681_v39, %v12119_v61  ;;  %10062 = vmatprep.subr.mxu0 %v14411_v30 }
 0x46c   : > { %v12147_v51 = vpop.f32.mrf.mxu1  ;;  %10569 = vtanh.f32 %v4528_v50  ;;  %v4546_v49 = vadd.f32 %v12073_v27, %v4288_v13  ;;  %v4282_v62 = vadd.f32 %v4281_v8, %v12011_v44  ;;  %v4869_v9 = vand.u32 4294901760, %v4868_v41  ;;  %v14412_v27 = vld [vmem:[#allocation41_spill] sm:$0xff] }
 0x46d   : > { %v10558_v52 = vpop.eup %10557  ;;  %v9788_v7 = vpop.f32.mrf.mxu0  ;;  %v12160_v43 = vand.u32 4294901760, %v4687_v21  ;;  %v12163_v42 = vsub.f32 %v4690_v37, %v12150_v16  ;;  %v14130_v39 = vand.u32 4294901760, %v12153_v48  ;;  %v14129_v36 = vand.u32 4294901760, %v12134_v25 }
 0x46e   : > { %v12158_v57 = vpop.f32.mrf.mxu1  ;;  %10571 = vtanh.f32 %v4546_v49  ;;  %v4540_v28 = vadd.f32 %v12090_v1, %v4282_v62  ;;  %v4300_v32 = vadd.f32 %v9788_v7, %v14412_v27  ;;  %9864 = vmatprep.mubr.f32.mxu0 %v4869_v9  ;;  %v4693_v44 = vsel %vm484_vm0, %v10558_v52, 0 }
 0x46f   : > { %v10560_v18 = vpop.eup %10559  ;;  %9922 = vmatprep.mubr.f32.mxu1 %v12160_v43  ;;  %9865 = vmatmul.mubr.f32.gmra.mxu0 %v4879_v14  ;;  %v4293_v50 = vpop.f32.mrf.mxu0  ;;  %v4888_v37 = vsub.f32 %v12153_v48, %v14130_v39  ;;  %v12176_v13 = vand.u32 4294901760, %v4693_v44  ;;  %v4898_v1 = vsub.f32 %v12134_v25, %v14129_v36  ;;  %v4696_v41 = vsel %vm484_vm0, %v10556_v23, 0 }
 0x470   : > { %v12171_v11 = vpop.f32.mrf.mxu1  ;;  %10573 = vtanh.f32 %v4540_v28  ;;  %v4558_v8 = vadd.f32 %v12101_v60, %v4300_v32  ;;  %9923 = vmatmul.mubr.f32.gmra.mxu1 %v12150_v16  ;;  %v4294_v14 = vadd.f32 %v4293_v50, %v12014_v10  ;;  %v12185_v49 = vand.u32 4294901760, %v4696_v41  ;;  %v14413_v28 = vld [vmem:[#allocation42_spill] sm:$0xff] }
 0x471   : > { %v10562_v62 = vpop.eup %10561  ;;  %v9791_v9 = vpop.f32.mrf.mxu0  ;;  %v4889_v7 = vand.u32 4294901760, %v4888_v37  ;;  %9925 = vmatprep.mubr.f32.mxu1 %v12176_v13  ;;  %v4899_v27 = vand.u32 4294901760, %v4898_v1  ;;  %v12191_v36 = vsub.f32 %v4687_v21, %v12160_v43  ;;  %v14131_v23 = vand.u32 4294901760, %v12163_v42 }
 0x472   : > { %v12187_v52 = vpop.f32.mrf.mxu1  ;;  %10575 = vtanh.f32 %v4558_v8  ;;  %v4552_v60 = vadd.f32 %v12117_v38, %v4294_v14  ;;  %v4312_v10 = vadd.f32 %v9791_v9, %v14413_v28  ;;  %v12197_v32 = vsub.f32 %v4696_v41, %v12185_v49 }
 0x473   : > { %v10564_v50 = vpop.eup %10563  ;;  %9867 = vmatprep.mubr.f32.mxu0 %v4889_v7  ;;  %v4305_v39 = vpop.f32.mrf.mxu0  ;;  %v14134_v37 = vand.u32 4294901760, %v12191_v36  ;;  %v4699_v1 = vsel %vm484_vm0, %v10562_v62, 0  ;;  %v4918_v21 = vsub.f32 %v12163_v42, %v14131_v23  ;;  %v4702_v8 = vsel %vm484_vm0, %v10560_v18, 0 }
 0x474   : > { %10577 = vtanh.f32 %v4552_v60  ;;  %v4570_v38 = vadd.f32 %v12130_v6, %v4312_v10  ;;  %9868 = vmatmul.mubr.f32.gmra.mxu0 %v4899_v27  ;;  %9926 = vmatmul.mubr.f32.gmra.mxu1 %v12185_v49  ;;  %v4306_v41 = vadd.f32 %v4305_v39, %v12023_v31  ;;  %v12208_v14 = vand.u32 4294901760, %v4699_v1  ;;  %v4587_v7 = vpop.f32.mrf.mxu1  ;;  %v14414_v27 = vld [vmem:[#allocation43_spill] sm:$0xff] }
 0x475   : > { %v10566_v9 = vpop.eup %10565  ;;  %v9794_v28 = vpop.f32.mrf.mxu0  ;;  %v4908_v62 = vsub.f32 %v12191_v36, %v14134_v37  ;;  %v4919_v23 = vand.u32 4294901760, %v4918_v21  ;;  %v12213_v46 = vand.u32 4294901760, %v4702_v8  ;;  %v12216_v18 = vsub.f32 %v4693_v44, %v12176_v13 }
 0x476   : > { %10579 = vtanh.f32 %v4570_v38  ;;  %v4564_v6 = vadd.f32 %v12147_v51, %v4306_v41  ;;  %v4324_v31 = vadd.f32 %v9794_v28, %v14414_v27  ;;  %9928 = vmatprep.mubr.f32.mxu1 %v12208_v14  ;;  %v4705_v39 = vsel %vm484_vm0, %v10566_v9, 0  ;;  %v9850_v9 = vpop.f32.mrf.mxu1 }
 0x477   : > { %v10568_v60 = vpop.eup %10567  ;;  %v4909_v10 = vand.u32 4294901760, %v4908_v62  ;;  %v12223_v59 = vsub.f32 %v4702_v8, %v12213_v46  ;;  %v4317_v21 = vpop.f32.mrf.mxu0  ;;  %v14136_v37 = vand.u32 4294901760, %v12216_v18  ;;  %v12226_v19 = vand.u32 4294901760, %v4705_v39 }
 0x478   : > { %10581 = vtanh.f32 %v4564_v6  ;;  %v4582_v44 = vadd.f32 %v12158_v57, %v4324_v31  ;;  %9929 = vmatmul.mubr.f32.gmra.mxu1 %v12213_v46  ;;  %v4318_v51 = vadd.f32 %v4317_v21, %v12026_v15  ;;  %v14138_v38 = vand.u32 4294901760, %v12197_v32 }
 0x479   : > { %14415 = vst [vmem:[#allocation15_spill] sm:$0xff] %v12226_v19  ;;  %v10570_v41 = vpop.eup %10569  ;;  %9870 = vmatprep.mubr.f32.mxu0 %v4909_v10  ;;  %v9797_v28 = vpop.f32.mrf.mxu0  ;;  %v4928_v8 = vsub.f32 %v12216_v18, %v14136_v37  ;;  %9931 = vmatprep.mubr.f32.mxu1 %v12226_v19  ;;  %v4708_v62 = vsel %vm484_vm0, %v10564_v50, 0  ;;  %v12238_v57 = vsub.f32 %v4699_v1, %v12208_v14  ;;  %v14141_v6 = vand.u32 4294901760, %v12223_v59 }
 0x47a   : > { %10583 = vtanh.f32 %v4582_v44  ;;  %9871 = vmatmul.mubr.f32.gmra.mxu0 %v4919_v23  ;;  %v4576_v15 = vadd.f32 %v12171_v11, %v4318_v51  ;;  %v4336_v27 = vadd.f32 %v9797_v28, %v11909_v56  ;;  %v4938_v31 = vsub.f32 %v12197_v32, %v14138_v38  ;;  %v4599_v51 = vpop.f32.mrf.mxu1 }
 0x47b   : > { %v10572_v10 = vpop.eup %10571  ;;  %v4929_v21 = vand.u32 4294901760, %v4928_v8  ;;  %v12246_v37 = vand.u32 4294901760, %v4708_v62  ;;  %v4329_v50 = vpop.f32.mrf.mxu0  ;;  %v14139_v1 = vand.u32 4294901760, %v12238_v57  ;;  %v4711_v12 = vsel %vm484_vm0, %v10570_v41, 0 }
 0x47c   : > { %10585 = vtanh.f32 %v4576_v15  ;;  %v4594_v23 = vadd.f32 %v12187_v52, %v4336_v27  ;;  %v4939_v44 = vand.u32 4294901760, %v4938_v31  ;;  %v4330_v11 = vadd.f32 %v4329_v50, %v12038_v35 }
 0x47d   : > { %14416 = vst [vmem:[#allocation5_spill] sm:$0xff] %v12246_v37  ;;  %v10574_v56 = vpop.eup %10573  ;;  %9873 = vmatprep.mubr.f32.mxu0 %v4929_v21  ;;  %v12253_v28 = vsub.f32 %v4708_v62, %v12246_v37  ;;  %9932 = vmatmul.mubr.f32.gmra.mxu1 %v12246_v37  ;;  %v9800_v8 = vpop.f32.mrf.mxu0  ;;  %v4948_v38 = vsub.f32 %v12238_v57, %v14139_v1  ;;  %v12259_v41 = vand.u32 4294901760, %v4711_v12  ;;  %v4714_v62 = vsel %vm484_vm0, %v10568_v60, 0 }
 0x47e   : > { %v4958_v52 = vsub.f32 %v12223_v59, %v14141_v6  ;;  %10587 = vtanh.f32 %v4594_v23  ;;  %9874 = vmatmul.mubr.f32.gmra.mxu0 %v4939_v44  ;;  %v4588_v35 = vadd.f32 %v4587_v7, %v4330_v11  ;;  %v4348_v15 = vadd.f32 %v9800_v8, %v11919_v53  ;;  %v9853_v44 = vpop.f32.mrf.mxu1 }
 0x47f   : > { %14417 = vst [vmem:[#allocation24_spill] sm:$0xff] %v12259_v41  ;;  %v10576_v27 = vpop.eup %10575  ;;  %v4949_v31 = vand.u32 4294901760, %v4948_v38  ;;  %9934 = vmatprep.mubr.f32.mxu1 %v12259_v41  ;;  %v12267_v50 = vand.u32 4294901760, %v4714_v62  ;;  %v4341_v1 = vpop.f32.mrf.mxu0  ;;  %v12270_v3 = vsub.f32 %v4705_v39, %v12226_v19  ;;  %v4717_v7 = vsel %vm484_vm0, %v10574_v56, 0 }
 0x480   : > { %v4959_v21 = vand.u32 4294901760, %v4958_v52  ;;  %10589 = vtanh.f32 %v4588_v35  ;;  %v4606_v6 = vadd.f32 %v9850_v9, %v4348_v15  ;;  %v4342_v23 = vadd.f32 %v4341_v1, %v12041_v22 }
 0x481   : > { %14418 = vst [vmem:[#allocation10_spill] sm:$0xff] %v12267_v50  ;;  %v10578_v53 = vpop.eup %10577  ;;  %9876 = vmatprep.mubr.f32.mxu0 %v4949_v31  ;;  %v12275_v60 = vsub.f32 %v4714_v62, %v12267_v50  ;;  %9935 = vmatmul.mubr.f32.gmra.mxu1 %v12267_v50  ;;  %v9803_v38 = vpop.f32.mrf.mxu0  ;;  %v14142_v11 = vand.u32 4294901760, %v12270_v3  ;;  %v12279_v8 = vand.u32 4294901760, %v4717_v7  ;;  %v14143_v39 = vand.u32 4294901760, %v12253_v28 }
 0x482   : > { %10591 = vtanh.f32 %v4606_v6  ;;  %9877 = vmatmul.mubr.f32.gmra.mxu0 %v4959_v21  ;;  %v4600_v22 = vadd.f32 %v4599_v51, %v4342_v23  ;;  %v4360_v9 = vadd.f32 %v9803_v38, %v11941_v24  ;;  %v4720_v1 = vsel %vm484_vm0, %v10572_v10, 0  ;;  %v4611_v21 = vpop.f32.mrf.mxu1 }
 0x483   : > { %14419 = vst [vmem:[#allocation9_spill] sm:$0xff] %v12279_v8  ;;  %v10580_v56 = vpop.eup %10579  ;;  %v4968_v52 = vsub.f32 %v12270_v3, %v14142_v11  ;;  %9937 = vmatprep.mubr.f32.mxu1 %v12279_v8  ;;  %v4978_v35 = vsub.f32 %v12253_v28, %v14143_v39  ;;  %v12291_v15 = vand.u32 4294901760, %v4720_v1  ;;  %v4353_v6 = vpop.f32.mrf.mxu0  ;;  %v12294_v51 = vsub.f32 %v4711_v12, %v12259_v41 }
 0x484   : > { %10593 = vtanh.f32 %v4600_v22  ;;  %v4618_v24 = vadd.f32 %v9853_v44, %v4360_v9  ;;  %v4354_v10 = vadd.f32 %v4353_v6, %v12054_v4  ;;  %v4723_v62 = vsel %vm484_vm0, %v10578_v53, 0 }
 0x485   : > { %14420 = vst [vmem:[#allocation19_spill] sm:$0xff] %v12291_v15  ;;  %v10582_v31 = vpop.eup %10581  ;;  %v4969_v23 = vand.u32 4294901760, %v4968_v52  ;;  %v4979_v38 = vand.u32 4294901760, %v4978_v35  ;;  %v12299_v11 = vsub.f32 %v4720_v1, %v12291_v15  ;;  %9938 = vmatmul.mubr.f32.gmra.mxu1 %v12291_v15  ;;  %v14146_v39 = vand.u32 4294901760, %v12294_v51 }
 0x486   : > { %10595 = vtanh.f32 %v4618_v24  ;;  %v4612_v12 = vadd.f32 %v4611_v21, %v4354_v10  ;;  %v12303_v0 = vand.u32 4294901760, %v4723_v62  ;;  %v14145_v44 = vand.u32 4294901760, %v12275_v60 }
 0x487   : > { %v10584_v4 = vpop.eup %10583  ;;  %9879 = vmatprep.mubr.f32.mxu0 %v4969_v23  ;;  %v4988_v53 = vsub.f32 %v12294_v51, %v14146_v39  ;;  %v4726_v22 = vsel %vm484_vm0, %v10576_v27, 0  ;;  %v12311_v9 = vsub.f32 %v4717_v7, %v12279_v8  ;;  %v4729_v1 = vsel %vm484_vm0, %v10582_v31, 0 }
 0x488   : > { %14421 = vst [vmem:[#allocation17_spill] sm:$0xff] %v12303_v0  ;;  %9880 = vmatmul.mubr.f32.gmra.mxu0 %v4979_v38  ;;  %10597 = vtanh.f32 %v4612_v12  ;;  %9940 = vmatprep.mubr.f32.mxu1 %v12303_v0  ;;  %v4998_v52 = vsub.f32 %v12275_v60, %v14145_v44  ;;  %v12318_v35 = vand.u32 4294901760, %v4726_v22  ;;  %v12320_v6 = vand.u32 4294901760, %v4729_v1 }
 0x489   : > { %v10586_v24 = vpop.eup %10585  ;;  %v4989_v10 = vand.u32 4294901760, %v4988_v53  ;;  %v14147_v27 = vand.u32 4294901760, %v12311_v9  ;;  %v14156_v7 = vand.u32 4294901760, %v12299_v11  ;;  %v4732_v31 = vsel %vm484_vm0, %v10580_v56, 0 }
 0x48a   : > { %14422 = vst [vmem:[#allocation25_spill] sm:$0xff] %v12318_v35  ;;  %14423 = vst [vmem:[#allocation11_spill] sm:$0xff] %v12320_v6  ;;  %v4999_v21 = vand.u32 4294901760, %v4998_v52  ;;  %v12326_v23 = vsub.f32 %v4726_v22, %v12318_v35  ;;  %9941 = vmatmul.mubr.f32.gmra.mxu1 %v12318_v35  ;;  %v12329_v38 = vand.u32 4294901760, %v4732_v31  ;;  %v12332_v12 = vsub.f32 %v4723_v62, %v12303_v0 }
 0x48b   : > { %v10588_v44 = vpop.eup %10587  ;;  %9882 = vmatprep.mubr.f32.mxu0 %v4989_v10  ;;  %v5008_v53 = vsub.f32 %v12311_v9, %v14147_v27  ;;  %9943 = vmatprep.mubr.f32.mxu1 %v12320_v6  ;;  %v5018_v56 = vsub.f32 %v12299_v11, %v14156_v7  ;;  %v4735_v22 = vsel %vm484_vm0, %v10586_v24, 0  ;;  %v4738_v52 = vsel %vm484_vm0, %v10584_v4, 0 }
 0x48c   : > { %14424 = vst [vmem:[#allocation12_spill] sm:$0xff] %v12329_v38  ;;  %9883 = vmatmul.mubr.f32.gmra.mxu0 %v4999_v21  ;;  %v12344_v62 = vsub.f32 %v4732_v31, %v12329_v38  ;;  %v14159_v10 = vand.u32 4294901760, %v12332_v12  ;;  %v12347_v39 = vand.u32 4294901760, %v4735_v22  ;;  %v14162_v27 = vand.u32 4294901760, %v12326_v23 }
 0x48d   : > { %v10590_v35 = vpop.eup %10589  ;;  %v5009_v0 = vand.u32 4294901760, %v5008_v53  ;;  %v5019_v15 = vand.u32 4294901760, %v5018_v56  ;;  %v12350_v8 = vand.u32 4294901760, %v4738_v52  ;;  %v12353_v7 = vsub.f32 %v4729_v1, %v12320_v6 }
 0x48e   : > { %14425 = vst [vmem:[#allocation20_spill] sm:$0xff] %v12347_v39  ;;  %9944 = vmatmul.mubr.f32.gmra.mxu1 %v12329_v38  ;;  %v5028_v4 = vsub.f32 %v12332_v12, %v14159_v10  ;;  %v5038_v24 = vsub.f32 %v12326_v23, %v14162_v27  ;;  %v4741_v31 = vsel %vm484_vm0, %v10590_v35, 0  ;;  %v14167_v21 = vand.u32 4294901760, %v12344_v62 }
 0x48f   : > { %14426 = vst [vmem:[#allocation18_spill] sm:$0xff] %v12350_v8  ;;  %v10592_v53 = vpop.eup %10591  ;;  %9885 = vmatprep.mubr.f32.mxu0 %v5009_v0  ;;  %9946 = vmatprep.mubr.f32.mxu1 %v12347_v39  ;;  %v12366_v1 = vsub.f32 %v4738_v52, %v12350_v8  ;;  %v14172_v56 = vand.u32 4294901760, %v12353_v7  ;;  %v12369_v38 = vand.u32 4294901760, %v4741_v31  ;;  %v4744_v10 = vsel %vm484_vm0, %v10588_v44, 0 }
 0x490   : > { %9886 = vmatmul.mubr.f32.gmra.mxu0 %v5019_v15  ;;  %v5029_v6 = vand.u32 4294901760, %v5028_v4  ;;  %v5058_v35 = vsub.f32 %v12344_v62, %v14167_v21  ;;  %v12375_v27 = vand.u32 4294901760, %v4744_v10  ;;  %v12381_v50 = vsub.f32 %v4735_v22, %v12347_v39 }
 0x491   : > { %14427 = vst [vmem:[#allocation27_spill] sm:$0xff] %v12369_v38  ;;  %v10594_v0 = vpop.eup %10593  ;;  %v5048_v52 = vsub.f32 %v12353_v7, %v14172_v56  ;;  %v4750_v44 = vsel %vm484_vm0, %v10592_v53, 0  ;;  %v5039_v15 = vand.u32 4294901760, %v5038_v24  ;;  %v12397_v24 = vsub.f32 %v4741_v31, %v12369_v38 }
 0x492   : > { %14428 = vst [vmem:[#allocation13_spill] sm:$0xff] %v12375_v27  ;;  %9888 = vmatprep.mubr.f32.mxu0 %v5029_v6  ;;  %9947 = vmatmul.mubr.f32.gmra.mxu1 %v12350_v8  ;;  %v12387_v4 = vsub.f32 %v4744_v10, %v12375_v27  ;;  %v4747_v21 = vsel %vm484_vm0, %v10594_v0, 0  ;;  %v12390_v37 = vand.u32 4294901760, %v4750_v44  ;;  %v14177_v22 = vand.u32 4294901760, %v12381_v50 }
 0x493   : > { %v10596_v19 = vpop.eup %10595  ;;  %v5049_v56 = vand.u32 4294901760, %v5048_v52  ;;  %9949 = vmatprep.mubr.f32.mxu1 %v12369_v38  ;;  %v12394_v41 = vand.u32 4294901760, %v4747_v21  ;;  %v5059_v6 = vand.u32 4294901760, %v5058_v35  ;;  %v14430_v52 = vand.u32 4294901760, %v12366_v1 }
 0x494   : > { %9889 = vmatmul.mubr.f32.gmra.mxu0 %v5039_v15  ;;  %v4756_v10 = vsel %vm484_vm0, %v10596_v19, 0  ;;  %v5068_v0 = vsub.f32 %v12381_v50, %v14177_v22  ;;  %v12407_v39 = vsub.f32 %v4750_v44, %v12390_v37  ;;  %v14185_v19 = vand.u32 4294901760, %v12397_v24 }
 0x495   : > { %14429 = vst [vmem:[#allocation21_spill] sm:$0xff] %v12394_v41  ;;  %v10598_v53 = vpop.eup %10597  ;;  %9891 = vmatprep.mubr.f32.mxu0 %v5049_v56  ;;  %v5078_v8 = vsub.f32 %v12366_v1, %v14430_v52  ;;  %v12410_v35 = vsub.f32 %v4747_v21, %v12394_v41  ;;  %v12416_v15 = vand.u32 4294901760, %v4756_v10 }
 0x496   : > { %9950 = vmatmul.mubr.f32.gmra.mxu1 %v12375_v27  ;;  %v4753_v31 = vsel %vm484_vm0, %v10598_v53, 0  ;;  %v5069_v22 = vand.u32 4294901760, %v5068_v0  ;;  %v5088_v21 = vsub.f32 %v12397_v24, %v14185_v19  ;;  %v14432_v19 = vand.u32 4294901760, %v12050_v55 }
 0x497   : > { %9952 = vmatprep.mubr.f32.mxu1 %v12394_v41  ;;  %v12419_v52 = vand.u32 4294901760, %v4753_v31  ;;  %v14184_v44 = vand.u32 4294901760, %v12410_v35  ;;  %v5079_v27 = vand.u32 4294901760, %v5078_v8  ;;  %v14431_v41 = vand.u32 4294901760, %v12387_v4 }
 0x498   : > { %9892 = vmatmul.mubr.f32.gmra.mxu0 %v5059_v6  ;;  %v5089_v0 = vand.u32 4294901760, %v5088_v21  ;;  %v12436_v38 = vsub.f32 %v4756_v10, %v12416_v15 }
 0x499   : > { %9894 = vmatprep.mubr.f32.mxu0 %v5069_v22  ;;  %v5108_v53 = vsub.f32 %v12410_v35, %v14184_v44  ;;  %v12429_v56 = vsub.f32 %v4753_v31, %v12419_v52  ;;  %v5098_v6 = vsub.f32 %v12387_v4, %v14431_v41  ;;  %v5117_v22 = vand.u32 4294901760, %v12407_v39 }
 0x49a   : > { %9953 = vmatmul.mubr.f32.gmra.mxu1 %v12390_v37  ;;  %v5137_v10 = vand.u32 4294901760, %v12436_v38 }
 0x49b   : > { %9955 = vmatprep.mubr.f32.mxu1 %v12419_v52  ;;  %v14186_v8 = vand.u32 4294901760, %v12429_v56  ;;  %v5109_v31 = vand.u32 4294901760, %v5108_v53  ;;  %v5099_v44 = vand.u32 4294901760, %v5098_v6  ;;  %v5118_v41 = vsub.f32 %v12407_v39, %v5117_v22 }
 0x49c   : > { %9895 = vmatmul.mubr.f32.gmra.mxu0 %v5079_v27  ;;  %v5138_v6 = vsub.f32 %v12436_v38, %v5137_v10 }
 0x49d   : > { %9897 = vmatprep.mubr.f32.mxu0 %v5089_v0  ;;  %v5128_v21 = vsub.f32 %v12429_v56, %v14186_v8  ;;  %v5119_v53 = vand.u32 4294901760, %v5118_v41  ;;  %v14433_v0 = vand.u32 4294901760, %v12035_v29  ;;  %v14434_v8 = vand.u32 4294901760, %v12082_v20 }
 0x49e   : > { %9956 = vmatmul.mubr.f32.gmra.mxu1 %v12416_v15  ;;  %v14441_v41 = vand.u32 4294901760, %v12191_v36 }
 0x49f   : > { %10014 = vmatprep.mubr.f32.mxu1 %v14432_v19  ;;  %v5129_v27 = vand.u32 4294901760, %v5128_v21  ;;  %v5139_v19 = vand.u32 4294901760, %v5138_v6  ;;  %v14440_v21 = vld [vmem:[#allocation8_spill] sm:$0xff] }
 0x4a0   : > { %9898 = vmatmul.mubr.f32.gmra.mxu0 %v5099_v44  ;;  %v14435_v44 = vand.u32 4294901760, %v12064_v40 }
 0x4a1   : > { %9900 = vmatprep.mubr.f32.mxu0 %v5109_v31  ;;  %v14436_v31 = vand.u32 4294901760, %v12109_v58 }
 0x4a2   : > { %10015 = vmatmul.mubr.f32.vlgmr.msra.gmra.mxu1 %v14433_v0 }
 0x4a3   : > { %10017 = vmatprep.mubr.f32.mxu1 %v14434_v8  ;;  %10115 = vmatpush3.msra.mxu1 %v14404_v33  ;;  %v14437_v8 = vand.u32 4294901760, %v12095_v47  ;;  %v14438_v33 = vand.u32 4294901760, %v12153_v48 }
 0x4a4   : > { %9901 = vmatmul.mubr.f32.gmra.mxu0 %v5119_v53  ;;  %10116 = vmatprep.subr.mxu1 %v14405_v63  ;;  %v12651_v53 = vld [vmem:[%s14056_s11] ss:$0 sm:$0xff] }
 0x4a5   : > { %9903 = vmatprep.mubr.f32.mxu0 %v5129_v27  ;;  %10117 = vmatpush3.msra.mxu1 %v14405_v63  ;;  %v14439_v63 = vand.u32 4294901760, %v12134_v25 }
 0x4a6   : > { %10018 = vmatmul.mubr.f32.gmra.mxu1 %v14435_v44 }
 0x4a7   : > { %10020 = vmatprep.mubr.f32.mxu1 %v14436_v31 }
 0x4a8   : > { %9904 = vmatmul.mubr.f32.gmra.mxu0 %v5139_v19 }
 0x4a9   : > { %9962 = vmatprep.mubr.f32.mxu0 %v12050_v55  ;;  %v14443_v55 = vand.u32 4294901760, %v12216_v18 }
 0x4aa   : > { %10021 = vmatmul.mubr.f32.gmra.mxu1 %v14437_v8 }
 0x4ab   : > { %10023 = vmatprep.mubr.f32.mxu1 %v14438_v33 }
 0x4ac   : > { %9963 = vmatmul.mubr.f32.vlgmr.msra.gmra.mxu0 %v12035_v29  ;;  %v14442_v29 = vand.u32 4294901760, %v12163_v42 }
 0x4ad   : > { %10063 = vmatpush3.msra.mxu0 %v14411_v30  ;;  %9965 = vmatprep.mubr.f32.mxu0 %v12082_v20  ;;  %v14444_v20 = vand.u32 4294901760, %v12197_v32  ;;  %v14445_v30 = vand.u32 4294901760, %v12238_v57 }
 0x4ae   : > { %10024 = vmatmul.mubr.f32.gmra.mxu1 %v14439_v63  ;;  %10064 = vmatprep.subr.mxu0 %v14440_v21 }
 0x4af   : > { %10026 = vmatprep.mubr.f32.mxu1 %v14441_v41  ;;  %10065 = vmatpush3.msra.mxu0 %v14440_v21 }
 0x4b0   : > { %9966 = vmatmul.mubr.f32.gmra.mxu0 %v12064_v40  ;;  %v14446_v40 = vand.u32 4294901760, %v12223_v59 }
 0x4b1   : > { %9968 = vmatprep.mubr.f32.mxu0 %v12109_v58  ;;  %v14447_v58 = vand.u32 4294901760, %v12270_v3 }
 0x4b2   : > { %10027 = vmatmul.mubr.f32.gmra.mxu1 %v14442_v29 }
 0x4b3   : > { %10029 = vmatprep.mubr.f32.mxu1 %v14443_v55 }
 0x4b4   : > { %9969 = vmatmul.mubr.f32.gmra.mxu0 %v12095_v47  ;;  %v14448_v47 = vand.u32 4294901760, %v12253_v28 }
 0x4b5   : > { %9971 = vmatprep.mubr.f32.mxu0 %v12153_v48  ;;  %v14449_v48 = vand.u32 4294901760, %v12294_v51 }
 0x4b6   : > { %10030 = vmatmul.mubr.f32.gmra.mxu1 %v14444_v20 }
 0x4b7   : > { %10032 = vmatprep.mubr.f32.mxu1 %v14445_v30 }
 0x4b8   : > { %9972 = vmatmul.mubr.f32.gmra.mxu0 %v12134_v25  ;;  %v14450_v25 = vand.u32 4294901760, %v12275_v60 }
 0x4b9   : > { %9974 = vmatprep.mubr.f32.mxu0 %v12191_v36  ;;  %v14451_v36 = vand.u32 4294901760, %v12311_v9 }
 0x4ba   : > { %10033 = vmatmul.mubr.f32.gmra.mxu1 %v14446_v40 }
 0x4bb   : > { %10035 = vmatprep.mubr.f32.mxu1 %v14447_v58 }
 0x4bc   : > { %9975 = vmatmul.mubr.f32.gmra.mxu0 %v12163_v42  ;;  %v14452_v42 = vand.u32 4294901760, %v12299_v11 }
 0x4bd   : > { %9977 = vmatprep.mubr.f32.mxu0 %v12216_v18  ;;  %v14453_v18 = vand.u32 4294901760, %v12332_v12 }
 0x4be   : > { %10036 = vmatmul.mubr.f32.gmra.mxu1 %v14448_v47 }
 0x4bf   : > { %10038 = vmatprep.mubr.f32.mxu1 %v14449_v48 }
 0x4c0   : > { %9978 = vmatmul.mubr.f32.gmra.mxu0 %v12197_v32  ;;  %v14454_v32 = vand.u32 4294901760, %v12326_v23 }
 0x4c1   : > { %9980 = vmatprep.mubr.f32.mxu0 %v12238_v57  ;;  %v14455_v57 = vand.u32 4294901760, %v12353_v7 }
 0x4c2   : > { %10039 = vmatmul.mubr.f32.gmra.mxu1 %v14450_v25 }
 0x4c3   : > { %10041 = vmatprep.mubr.f32.mxu1 %v14451_v36 }
 0x4c4   : > { %9981 = vmatmul.mubr.f32.gmra.mxu0 %v12223_v59  ;;  %v14457_v59 = vand.u32 4294901760, %v12381_v50 }
 0x4c5   : > { %9983 = vmatprep.mubr.f32.mxu0 %v12270_v3  ;;  %v14456_v3 = vand.u32 4294901760, %v12344_v62 }
 0x4c6   : > { %10042 = vmatmul.mubr.f32.gmra.mxu1 %v14452_v42 }
 0x4c7   : > { %10044 = vmatprep.mubr.f32.mxu1 %v14453_v18 }
 0x4c8   : > { %9984 = vmatmul.mubr.f32.gmra.mxu0 %v12253_v28  ;;  %v14458_v28 = vand.u32 4294901760, %v12366_v1 }
 0x4c9   : > { %9986 = vmatprep.mubr.f32.mxu0 %v12294_v51  ;;  %v14459_v51 = vand.u32 4294901760, %v12397_v24 }
 0x4ca   : > { %10045 = vmatmul.mubr.f32.gmra.mxu1 %v14454_v32 }
 0x4cb   : > { %10047 = vmatprep.mubr.f32.mxu1 %v14455_v57 }
 0x4cc   : > { %9987 = vmatmul.mubr.f32.gmra.mxu0 %v12275_v60  ;;  %v14460_v60 = vand.u32 4294901760, %v12387_v4 }
 0x4cd   : > { %9989 = vmatprep.mubr.f32.mxu0 %v12311_v9  ;;  %v14461_v9 = vand.u32 4294901760, %v12410_v35 }
 0x4ce   : > { %10048 = vmatmul.mubr.f32.gmra.mxu1 %v14456_v3 }
 0x4cf   : > { %10050 = vmatprep.mubr.f32.mxu1 %v14457_v59 }
 0x4d0   : > { %9990 = vmatmul.mubr.f32.gmra.mxu0 %v12299_v11  ;;  %v14462_v11 = vand.u32 4294901760, %v12429_v56 }
 0x4d1   : > { %9992 = vmatprep.mubr.f32.mxu0 %v12332_v12 }
 0x4d2   : > { %10051 = vmatmul.mubr.f32.gmra.mxu1 %v14458_v28 }
 0x4d3   : > { %10053 = vmatprep.mubr.f32.mxu1 %v14459_v51 }
 0x4d4   : > { %9993 = vmatmul.mubr.f32.gmra.mxu0 %v12326_v23 }
 0x4d5   : > { %9995 = vmatprep.mubr.f32.mxu0 %v12353_v7  ;;  %v14478_v7 = vld [vmem:[#allocation27_spill] sm:$0xff] }
 0x4d6   : > { %10054 = vmatmul.mubr.f32.gmra.mxu1 %v14460_v60 }
 0x4d7   : > { %10056 = vmatprep.mubr.f32.mxu1 %v14461_v9 }
 0x4d8   : > { %9996 = vmatmul.mubr.f32.gmra.mxu0 %v12344_v62  ;;  %v14480_v62 = vld [vmem:[#allocation21_spill] sm:$0xff] }
 0x4d9   : > { %9998 = vmatprep.mubr.f32.mxu0 %v12381_v50  ;;  %v14476_v50 = vld [vmem:[#allocation18_spill] sm:$0xff] }
 0x4da   : > { %10057 = vmatmul.mubr.f32.gmra.mxu1 %v5117_v22 }
 0x4db   : > { %10059 = vmatprep.mubr.f32.mxu1 %v14462_v11 }
 0x4dc   : > { %9999 = vmatmul.mubr.f32.gmra.mxu0 %v12366_v1  ;;  %v6584_v1 = vld [vmem:[%s14057_s12 + $0x10] sm:$0xff] }
 0x4dd   : > { %10001 = vmatprep.mubr.f32.mxu0 %v12397_v24  ;;  %v12631_v24 = vand.u32 4294901760, %v6584_v1 }
 0x4de   : > { %10060 = vmatmul.mubr.f32.gmra.mxu1 %v5137_v10 }
 0x4df   : > { %10118 = vmatprep.mubr.f32.mxu1 %v12032_v26  ;;  %14481 = vst [vmem:[#allocation23_spill] sm:$0xff] %v12631_v24 }
 0x4e0   : > { %10002 = vmatmul.mubr.f32.gmra.mxu0 %v12387_v4 }
 0x4e1   : > { %10004 = vmatprep.mubr.f32.mxu0 %v12410_v35 }
 0x4e2   : > { %10119 = vmatmul.mubr.f32.vlgmr.msra.gmra.mxu1 %v12020_v54 }
 0x4e3   : > { %10121 = vmatprep.mubr.f32.mxu1 %v12061_v2 }
 0x4e4   : > { %10005 = vmatmul.mubr.f32.gmra.mxu0 %v12407_v39 }
 0x4e5   : > { %10007 = vmatprep.mubr.f32.mxu0 %v12429_v56  ;;  %v12638_v56 = vsub.f32 %v6584_v1, %v12631_v24 }
 0x4e6   : > { %10122 = vmatmul.mubr.f32.gmra.mxu1 %v12047_v17 }
 0x4e7   : > { %10124 = vmatprep.mubr.f32.mxu1 %v12092_v34  ;;  %14482 = vst [vmem:[#allocation26_spill] sm:$0xff] %v12638_v56  ;;  %v12643_v10 = vand.u32 4294901760, %v12638_v56 }
 0x4e8   : > { %10008 = vmatmul.mubr.f32.gmra.mxu0 %v12436_v38  ;;  %v14479_v38 = vld [vmem:[#allocation13_spill] sm:$0xff] }
 0x4e9   : > { %10066 = vmatprep.mubr.f32.mxu0 %v12032_v26  ;;  %v14464_v26 = vld [vmem:[#allocation5_spill] sm:$0xff]  ;;  %14483 = vst [vmem:[#allocation28_spill] sm:$0xff] %v12643_v10  ;;  %v7113_v0 = vsub.f32 %v12638_v56, %v12643_v10 }
 0x4ea   : > { %10125 = vmatmul.mubr.f32.gmra.mxu1 %v12079_v5 }
 0x4eb   : > { %10127 = vmatprep.mubr.f32.mxu1 %v12119_v61  ;;  %v7114_v44 = vand.u32 4294901760, %v7113_v0 }
 0x4ec   : > { %10067 = vmatmul.mubr.f32.vlgmr.msra.gmra.mxu0 %v12020_v54  ;;  %v14463_v54 = vld [vmem:[#allocation15_spill] sm:$0xff] }
 0x4ed   : > { %10069 = vmatprep.mubr.f32.mxu0 %v12061_v2  ;;  %v14466_v2 = vld [vmem:[#allocation10_spill] sm:$0xff] }
 0x4ee   : > { %10128 = vmatmul.mubr.f32.gmra.mxu1 %v12124_v45 }
 0x4ef   : > { %10130 = vmatprep.mubr.f32.mxu1 %v12160_v43 }
 0x4f0   : > { %10070 = vmatmul.mubr.f32.gmra.mxu0 %v12047_v17  ;;  %v14465_v17 = vld [vmem:[#allocation24_spill] sm:$0xff] }
 0x4f1   : > { %10072 = vmatprep.mubr.f32.mxu0 %v12092_v34  ;;  %v14468_v34 = vld [vmem:[#allocation19_spill] sm:$0xff] }
 0x4f2   : > { %10131 = vmatmul.mubr.f32.gmra.mxu1 %v12150_v16 }
 0x4f3   : > { %10133 = vmatprep.mubr.f32.mxu1 %v12176_v13 }
 0x4f4   : > { %10073 = vmatmul.mubr.f32.gmra.mxu0 %v12079_v5  ;;  %v14467_v5 = vld [vmem:[#allocation9_spill] sm:$0xff] }
 0x4f5   : > { %10075 = vmatprep.mubr.f32.mxu0 %v12119_v61  ;;  %v14469_v61 = vld [vmem:[#allocation17_spill] sm:$0xff] }
 0x4f6   : > { %10134 = vmatmul.mubr.f32.gmra.mxu1 %v12185_v49 }
 0x4f7   : > { %10136 = vmatprep.mubr.f32.mxu1 %v12208_v14 }
 0x4f8   : > { %10076 = vmatmul.mubr.f32.gmra.mxu0 %v12124_v45  ;;  %v14470_v45 = vld [vmem:[#allocation25_spill] sm:$0xff] }
 0x4f9   : > { %10078 = vmatprep.mubr.f32.mxu0 %v12160_v43  ;;  %v14472_v43 = vld [vmem:[#allocation12_spill] sm:$0xff] }
 0x4fa   : > { %10137 = vmatmul.mubr.f32.gmra.mxu1 %v12213_v46 }
 0x4fb   : > { %10139 = vmatprep.mubr.f32.mxu1 %v14463_v54 }
 0x4fc   : > { %10079 = vmatmul.mubr.f32.gmra.mxu0 %v12150_v16  ;;  %v14471_v16 = vld [vmem:[#allocation11_spill] sm:$0xff] }
 0x4fd   : > { %10081 = vmatprep.mubr.f32.mxu0 %v12176_v13 }
 0x4fe   : > { %10140 = vmatmul.mubr.f32.gmra.mxu1 %v14464_v26 }
 0x4ff   : > { %10142 = vmatprep.mubr.f32.mxu1 %v14465_v17 }
 0x500   : > { %10082 = vmatmul.mubr.f32.gmra.mxu0 %v12185_v49  ;;  %v14474_v49 = vld [vmem:[#allocation20_spill] sm:$0xff] }
 0x501   : > { %10084 = vmatprep.mubr.f32.mxu0 %v12208_v14 }
 0x502   : > { %10143 = vmatmul.mubr.f32.gmra.mxu1 %v14466_v2 }
 0x503   : > { %10145 = vmatprep.mubr.f32.mxu1 %v14467_v5 }
 0x504   : > { %10085 = vmatmul.mubr.f32.gmra.mxu0 %v12213_v46  ;;  %v6585_v46 = vld [vmem:[%s14057_s12 + $0x18] sm:$0xff] }
 0x505   : > { %10087 = vmatprep.mubr.f32.mxu0 %v14463_v54  ;;  %v12600_v13 = vand.u32 4294901760, %v6585_v46 }
 0x506   : > { %10146 = vmatmul.mubr.f32.gmra.mxu1 %v14468_v34 }
 0x507   : > { %10148 = vmatprep.mubr.f32.mxu1 %v14469_v61  ;;  %14473 = vst [vmem:[#allocation14_spill] sm:$0xff] %v12600_v13  ;;  %10166 = vmatprep.subr.mxu0 %v12600_v13  ;;  %v12606_v14 = vsub.f32 %v6585_v46, %v12600_v13 }
 0x508   : > { %10088 = vmatmul.mubr.f32.gmra.mxu0 %v14464_v26 }
 0x509   : > { %10090 = vmatprep.mubr.f32.mxu0 %v14465_v17  ;;  %14475 = vst [vmem:[#allocation22_spill] sm:$0xff] %v12606_v14  ;;  %10167 = vmatpush3.msra.mxu0 %v12600_v13  ;;  %v12612_v39 = vand.u32 4294901760, %v12606_v14  ;;  %v6583_v17 = vld [vmem:[%s14057_s12 + $0x8] sm:$0xff] }
 0x50a   : > { %10149 = vmatmul.mubr.f32.gmra.mxu1 %v14470_v45  ;;  %10168 = vmatprep.subr.mxu0 %v12631_v24 }
 0x50b   : > { %10151 = vmatprep.mubr.f32.mxu1 %v14471_v16  ;;  %14477 = vst [vmem:[#allocation16_spill] sm:$0xff] %v12612_v39  ;;  %v7106_v23 = vsub.f32 %v12606_v14, %v12612_v39  ;;  %10169 = vmatpush3.msra.mxu0 %v12631_v24 }
 0x50c   : > { %10091 = vmatmul.mubr.f32.gmra.mxu0 %v14466_v2 }
 0x50d   : > { %10093 = vmatprep.mubr.f32.mxu0 %v14467_v5  ;;  %v7107_v12 = vand.u32 4294901760, %v7106_v23  ;;  %v12700_v5 = vand.u32 4294901760, %v6583_v17 }
 0x50e   : > { %10152 = vmatmul.mubr.f32.gmra.mxu1 %v14472_v43 }
 0x50f   : > { %10154 = vmatprep.mubr.f32.mxu1 %v14474_v49  ;;  %10222 = vmatprep.subr.mxu1 %v7107_v12  ;;  %14485 = vst [vmem:[#allocation29_spill] sm:$0xff] %v12700_v5  ;;  %v12709_v46 = vsub.f32 %v6583_v17, %v12700_v5 }
 0x510   : > { %10094 = vmatmul.mubr.f32.gmra.mxu0 %v14468_v34  ;;  %10223 = vmatpush3.msra.mxu1 %v7107_v12 }
 0x511   : > { %10096 = vmatprep.mubr.f32.mxu0 %v14469_v61  ;;  %10224 = vmatprep.subr.mxu1 %v7114_v44  ;;  %14486 = vst [vmem:[#allocation32_spill] sm:$0xff] %v12709_v46  ;;  %v12720_v23 = vand.u32 4294901760, %v12709_v46 }
 0x512   : > { %10155 = vmatmul.mubr.f32.gmra.mxu1 %v14476_v50  ;;  %10170 = vmatprep.subr.mxu0 %v12700_v5 }
 0x513   : > { %10157 = vmatprep.mubr.f32.mxu1 %v14478_v7  ;;  %10225 = vmatpush3.msra.mxu1 %v7114_v44  ;;  %14488 = vst [vmem:[#allocation36_spill] sm:$0xff] %v12720_v23  ;;  %v7120_v1 = vsub.f32 %v12709_v46, %v12720_v23 }
 0x514   : > { %10097 = vmatmul.mubr.f32.gmra.mxu0 %v14470_v45  ;;  %v6582_v45 = vld [vmem:[%s14057_s12] sm:$0xff] }
 0x515   : > { %10099 = vmatprep.mubr.f32.mxu0 %v14471_v16  ;;  %10171 = vmatpush3.msra.mxu0 %v12700_v5 }
 0x516   : > { %10158 = vmatmul.mubr.f32.gmra.mxu1 %v14479_v38 }
 0x517   : > { %10160 = vmatprep.mubr.f32.mxu1 %v14480_v62 }
 0x518   : > { %10100 = vmatmul.mubr.f32.gmra.mxu0 %v14472_v43  ;;  %v12711_v43 = vand.u32 4294901760, %v6582_v45 }
 0x519   : > { %10102 = vmatprep.mubr.f32.mxu0 %v14474_v49 }
 0x51a   : > { %10161 = vmatmul.mubr.f32.gmra.mxu1 %v12390_v37  ;;  %14487 = vst [vmem:[#allocation34_spill] sm:$0xff] %v12711_v43  ;;  %10172 = vmatprep.subr.mxu0 %v12711_v43 }
 0x51b   : > { %10163 = vmatprep.mubr.f32.mxu1 %v12419_v52  ;;  %10173 = vmatpush3.msra.mxu0 %v12711_v43 }
 0x51c   : > { %10103 = vmatmul.mubr.f32.gmra.mxu0 %v14476_v50  ;;  %10278 = vmatprep.subr.mxu0 %v12606_v14 }
 0x51d   : > { %10105 = vmatprep.mubr.f32.mxu0 %v14478_v7 }
 0x51e   : > { %10164 = vmatmul.mubr.f32.gmra.mxu1 %v12416_v15  ;;  %v9912_v4 = vpop.f32.mrf.mxu1 }
 0x520   : > { %10106 = vmatmul.mubr.f32.gmra.mxu0 %v14479_v38  ;;  %v12634_v35 = vpop.f32.mrf.mxu1  ;;  %v12724_v38 = vsub.f32 %v6582_v45, %v12711_v43 }
 0x521   : > { %10108 = vmatprep.mubr.f32.mxu0 %v14480_v62 }
 0x522   : > { %v9915_v22 = vpop.f32.mrf.mxu1  ;;  %14489 = vst [vmem:[#allocation38_spill] sm:$0xff] %v12724_v38 }
 0x524   : > { %10109 = vmatmul.mubr.f32.gmra.mxu0 %v12390_v37  ;;  %v12646_v27 = vpop.f32.mrf.mxu1 }
 0x525   : > { %10111 = vmatprep.mubr.f32.mxu0 %v12419_v52 }
 0x526   : > { %v9860_v6 = vpop.f32.mrf.mxu0  ;;  %v9918_v19 = vpop.f32.mrf.mxu1 }
 0x527   : > { %v4842_v31 = vadd.f32 %v9860_v6, %v12651_v53  ;;  %v7121_v6 = vand.u32 4294901760, %v7120_v1 }
 0x528   : > { %10112 = vmatmul.mubr.f32.gmra.mxu0 %v12416_v15  ;;  %v12658_v37 = vpop.f32.mrf.mxu0  ;;  %v12660_v8 = vpop.f32.mrf.mxu1 }
 0x529   : > { %v12662_v33 = vadd.f32 %v9912_v4, %v4842_v31  ;;  %v12732_v4 = vand.u32 4294901760, %v12724_v38  ;;  %10226 = vmatprep.subr.mxu1 %v7121_v6 }
 0x52a   : > { %v9921_v63 = vpop.f32.mrf.mxu1  ;;  %10227 = vmatpush3.msra.mxu1 %v7121_v6 }
 0x52b   : > { %v9863_v21 = vpop.f32.mrf.mxu0  ;;  %14490 = vst [vmem:[#allocation40_spill] sm:$0xff] %v12732_v4 }
 0x52c   : > { %v4862_v41 = vadd.f32 %v9863_v21, %v12651_v53  ;;  %v12665_v52 = vpop.f32.mrf.mxu1 }
 0x52d   : > { %v12667_v29 = vpop.f32.mrf.mxu0 }
 0x52e   : > { %v12669_v55 = vadd.f32 %v9915_v22, %v4862_v41 }
 0x52f   : > { %v9866_v20 = vpop.f32.mrf.mxu0 }
 0x530   : > { %v4882_v15 = vadd.f32 %v9866_v20, %v12651_v53  ;;  %v9924_v30 = vpop.f32.mrf.mxu1 }
 0x531   : > { %v12672_v40 = vpop.f32.mrf.mxu0 }
 0x532   : > { %v12674_v58 = vpop.f32.mrf.mxu1  ;;  %v12676_v47 = vadd.f32 %v9918_v19, %v4882_v15  ;;  %v7127_v19 = vsub.f32 %v12724_v38, %v12732_v4 }
 0x534   : > { %v9869_v48 = vpop.f32.mrf.mxu0  ;;  %v9927_v25 = vpop.f32.mrf.mxu1  ;;  %v7128_v21 = vand.u32 4294901760, %v7127_v19 }
 0x535   : > { %v4902_v36 = vadd.f32 %v9869_v48, %v12651_v53 }
 0x536   : > { %v12679_v42 = vpop.f32.mrf.mxu0  ;;  %v12681_v18 = vpop.f32.mrf.mxu1  ;;  %10228 = vmatprep.subr.mxu1 %v7128_v21 }
 0x537   : > { %v12683_v32 = vadd.f32 %v9921_v63, %v4902_v36  ;;  %10229 = vmatpush3.msra.mxu1 %v7128_v21 }
 0x538   : > { %v9930_v57 = vpop.f32.mrf.mxu1  ;;  %10334 = vmatprep.subr.mxu1 %v12600_v13 }
 0x539   : > { %14484 = vst [vmem:[#allocation30_spill] sm:$0xff] %v12683_v32 }
 0x53a   : > { %v9872_v3 = vpop.f32.mrf.mxu0  ;;  %v12685_v59 = vpop.f32.mrf.mxu1 }
 0x53b   : > { %v4922_v28 = vadd.f32 %v9872_v3, %v12651_v53 }
 0x53c   : > { %v12688_v51 = vpop.f32.mrf.mxu0 }
 0x53d   : > { %v9933_v60 = vpop.f32.mrf.mxu1  ;;  %v12690_v9 = vadd.f32 %v9924_v30, %v4922_v28 }
 0x53e   : > { %v9875_v11 = vpop.f32.mrf.mxu0 }
 0x53f   : > { %v4942_v54 = vadd.f32 %v9875_v11, %v12651_v53  ;;  %v12693_v26 = vpop.f32.mrf.mxu1 }
 0x540   : > { %v12698_v2 = vpop.f32.mrf.mxu0 }
 0x541   : > { %v9936_v34 = vpop.f32.mrf.mxu1  ;;  %v12702_v61 = vadd.f32 %v9927_v25, %v4942_v54 }
 0x542   : > { %v9878_v16 = vpop.f32.mrf.mxu0 }
 0x543   : > { %v4962_v49 = vadd.f32 %v9878_v16, %v12651_v53  ;;  %v12714_v50 = vpop.f32.mrf.mxu1 }
 0x544   : > { %v12717_v7 = vpop.f32.mrf.mxu0 }
 0x545   : > { %v9939_v12 = vpop.f32.mrf.mxu1  ;;  %v12726_v62 = vadd.f32 %v9930_v57, %v4962_v49 }
 0x547   : > { %v12735_v22 = vpop.f32.mrf.mxu1 }
 0x548   : > { %14491 = vst [vmem:[#allocation31_spill] sm:$0xff] %v12735_v22  ;;  %v9881_v0 = vpop.f32.mrf.mxu0 }
 0x549   : > { %v4982_v44 = vadd.f32 %v9881_v0, %v12651_v53 }
 0x54a   : > { %v12740_v31 = vpop.f32.mrf.mxu0  ;;  %v9942_v63 = vpop.f32.mrf.mxu1 }
 0x54b   : > { %v12742_v41 = vadd.f32 %v9933_v60, %v4982_v44 }
 0x54c   : > { %v9884_v20 = vpop.f32.mrf.mxu0  ;;  %v12744_v15 = vpop.f32.mrf.mxu1 }
 0x54d   : > { %14492 = vst [vmem:[#allocation44_spill] sm:$0xff] %v12744_v15  ;;  %v5002_v30 = vadd.f32 %v9884_v20, %v12651_v53 }
 0x54e   : > { %v12747_v48 = vpop.f32.mrf.mxu0  ;;  %v9945_v25 = vpop.f32.mrf.mxu1 }
 0x54f   : > { %v12750_v36 = vadd.f32 %v9936_v34, %v5002_v30 }
 0x550   : > { %v9887_v57 = vpop.f32.mrf.mxu0  ;;  %v12752_v3 = vpop.f32.mrf.mxu1 }
 0x551   : > { %14493 = vst [vmem:[#allocation33_spill] sm:$0xff] %v12752_v3  ;;  %v5022_v28 = vadd.f32 %v9887_v57, %v12651_v53 }
 0x552   : > { %v12755_v60 = vpop.f32.mrf.mxu0  ;;  %v9948_v11 = vpop.f32.mrf.mxu1 }
 0x553   : > { %v12757_v54 = vadd.f32 %v9939_v12, %v5022_v28 }
 0x554   : > { %v9890_v17 = vpop.f32.mrf.mxu0  ;;  %v12759_v45 = vpop.f32.mrf.mxu1 }
 0x555   : > { %14494 = vst [vmem:[#allocation2_spill] sm:$0xff] %v12759_v45  ;;  %v5042_v16 = vadd.f32 %v9890_v17, %v12651_v53 }
 0x556   : > { %v12762_v49 = vpop.f32.mrf.mxu0  ;;  %v9951_v1 = vpop.f32.mrf.mxu1 }
 0x557   : > { %v12764_v34 = vadd.f32 %v9942_v63, %v5042_v16 }
 0x558   : > { %v9893_v0 = vpop.f32.mrf.mxu0  ;;  %v12766_v6 = vpop.f32.mrf.mxu1 }
 0x559   : > { %14495 = vst [vmem:[#allocation6_spill] sm:$0xff] %v12766_v6  ;;  %v5062_v19 = vadd.f32 %v9893_v0, %v12651_v53 }
 0x55a   : > { %v12769_v44 = vpop.f32.mrf.mxu0  ;;  %v9954_v21 = vpop.f32.mrf.mxu1 }
 0x55b   : > { %v12771_v12 = vadd.f32 %v9945_v25, %v5062_v19 }
 0x55c   : > { %v9896_v20 = vpop.f32.mrf.mxu0  ;;  %v12773_v30 = vpop.f32.mrf.mxu1 }
 0x55d   : > { %14496 = vst [vmem:[#allocation35_spill] sm:$0xff] %v12773_v30  ;;  %v5082_v57 = vadd.f32 %v9896_v20, %v12651_v53 }
 0x55e   : > { %v12776_v28 = vpop.f32.mrf.mxu0  ;;  %v9957_v17 = vpop.f32.mrf.mxu1 }
 0x55f   : > { %v12778_v63 = vadd.f32 %v9948_v11, %v5082_v57 }
 0x560   : > { %v9899_v16 = vpop.f32.mrf.mxu0  ;;  %v12780_v4 = vpop.f32.mrf.mxu1 }
 0x561   : > { %14497 = vst [vmem:[#allocation37_spill] sm:$0xff] %v12780_v4  ;;  %v5102_v0 = vadd.f32 %v9899_v16, %v12651_v53 }
 0x562   : > { %v12783_v23 = vpop.f32.mrf.mxu0  ;;  %v12785_v10 = vpop.f32.mrf.mxu1 }
 0x563   : > { %14498 = vst [vmem:[#allocation3_spill] sm:$0xff] %v12783_v23  ;;  %v12787_v25 = vadd.f32 %v9951_v1, %v5102_v0 }
 0x564   : > { %v9902_v19 = vpop.f32.mrf.mxu0  ;;  %v12789_v39 = vpop.f32.mrf.mxu1 }
 0x565   : > { %v5122_v20 = vadd.f32 %v9902_v19, %v12651_v53 }
 0x566   : > { %v12792_v38 = vpop.f32.mrf.mxu0  ;;  %v12794_v11 = vpop.f32.mrf.mxu1 }
 0x567   : > { %14499 = vst [vmem:[#allocation7_spill] sm:$0xff] %v12792_v38  ;;  %v12796_v57 = vadd.f32 %v9954_v21, %v5122_v20 }
 0x568   : > { %v9905_v46 = vpop.f32.mrf.mxu0  ;;  %v12798_v56 = vpop.f32.mrf.mxu1 }
 0x569   : > { %v5142_v16 = vadd.f32 %v9905_v46, %v12651_v53 }
 0x56a   : > { %v12801_v14 = vpop.f32.mrf.mxu0  ;;  %v12803_v1 = vpop.f32.mrf.mxu1 }
 0x56b   : > { %14500 = vst [vmem:[#allocation39_spill] sm:$0xff] %v12801_v14  ;;  %14501 = vst [vmem:[#allocation4_spill] sm:$0xff] %v12803_v1  ;;  %v12805_v0 = vadd.f32 %v9957_v17, %v5142_v16 }
 0x56c   : > { %v12807_v43 = vpop.f32.mrf.mxu0  ;;  %v12809_v19 = vpop.f32.mrf.mxu1 }
 0x56d   : > { %14502 = vst [vmem:[#allocation41_spill] sm:$0xff] %v12809_v19 }
 0x56e   : > { %v12811_v5 = vpop.f32.mrf.mxu0  ;;  %v12813_v24 = vpop.f32.mrf.mxu1 }
 0x56f   : > { %14503 = vst [vmem:[#allocation42_spill] sm:$0xff] %v12813_v24 }
 0x570   : > { %v12815_v21 = vpop.f32.mrf.mxu0  ;;  %v12817_v20 = vpop.f32.mrf.mxu1 }
 0x571   : > { %14504 = vst [vmem:[#allocation43_spill] sm:$0xff] %v12817_v20 }
 0x572   : > { %v12819_v13 = vpop.f32.mrf.mxu0  ;;  %v10028_v46 = vpop.f32.mrf.mxu1 }
 0x574   : > { %v12821_v4 = vpop.f32.mrf.mxu0  ;;  %v12823_v30 = vpop.f32.mrf.mxu1 }
 0x575   : > { %14505 = vst [vmem:[#allocation8_spill] sm:$0xff] %v12823_v30 }
 0x576   : > { %v12825_v17 = vpop.f32.mrf.mxu0  ;;  %v10031_v16 = vpop.f32.mrf.mxu1 }
 0x577   : > { %14506 = vst [vmem:[#allocation15_spill] sm:$0xff] %v12825_v17 }
 0x578   : > { %v12827_v6 = vpop.f32.mrf.mxu0  ;;  %v12829_v14 = vpop.f32.mrf.mxu1 }
 0x579   : > { %14507 = vst [vmem:[#allocation5_spill] sm:$0xff] %v12827_v6  ;;  %14508 = vst [vmem:[#allocation24_spill] sm:$0xff] %v12829_v14 }
 0x57a   : > { %v12831_v19 = vpop.f32.mrf.mxu0  ;;  %v10034_v24 = vpop.f32.mrf.mxu1 }
 0x57b   : > { %14509 = vst [vmem:[#allocation10_spill] sm:$0xff] %v12831_v19 }
 0x57c   : > { %v9976_v45 = vpop.f32.mrf.mxu0  ;;  %v12833_v3 = vpop.f32.mrf.mxu1 }
 0x57d   : > { %14510 = vst [vmem:[#allocation9_spill] sm:$0xff] %v12833_v3  ;;  %v5548_v20 = vadd.f32 %v9976_v45, %v12690_v9 }
 0x57e   : > { %v12836_v38 = vpop.f32.mrf.mxu0  ;;  %v10037_v1 = vpop.f32.mrf.mxu1 }
 0x57f   : > { %v12838_v15 = vadd.f32 %v10028_v46, %v5548_v20 }
 0x580   : > { %v9979_v30 = vpop.f32.mrf.mxu0  ;;  %v12840_v22 = vpop.f32.mrf.mxu1 }
 0x581   : > { %14511 = vst [vmem:[#allocation19_spill] sm:$0xff] %v12838_v15  ;;  %14512 = vst [vmem:[#allocation17_spill] sm:$0xff] %v12840_v22  ;;  %v5562_v6 = vadd.f32 %v9979_v30, %v12702_v61 }
 0x582   : > { %v12843_v32 = vpop.f32.mrf.mxu0  ;;  %v10040_v14 = vpop.f32.mrf.mxu1 }
 0x583   : > { %v12845_v19 = vadd.f32 %v10031_v16, %v5562_v6 }
 0x584   : > { %v9982_v23 = vpop.f32.mrf.mxu0  ;;  %v12847_v17 = vpop.f32.mrf.mxu1 }
 0x585   : > { %14513 = vst [vmem:[#allocation25_spill] sm:$0xff] %v12845_v19  ;;  %14514 = vst [vmem:[#allocation11_spill] sm:$0xff] %v12847_v17  ;;  %v5576_v9 = vadd.f32 %v9982_v23, %v12726_v62 }
 0x586   : > { %v12850_v45 = vpop.f32.mrf.mxu0  ;;  %v10043_v3 = vpop.f32.mrf.mxu1 }
 0x587   : > { %v12852_v20 = vadd.f32 %v10034_v24, %v5576_v9 }
 0x588   : > { %v9985_v46 = vpop.f32.mrf.mxu0  ;;  %v12854_v15 = vpop.f32.mrf.mxu1 }
 0x589   : > { %14515 = vst [vmem:[#allocation12_spill] sm:$0xff] %v12852_v20  ;;  %14516 = vst [vmem:[#allocation20_spill] sm:$0xff] %v12854_v15  ;;  %v5590_v61 = vadd.f32 %v9985_v46, %v12742_v41 }
 0x58a   : > { %v12857_v30 = vpop.f32.mrf.mxu0  ;;  %v10046_v22 = vpop.f32.mrf.mxu1 }
 0x58b   : > { %v12859_v6 = vadd.f32 %v10037_v1, %v5590_v61 }
 0x58c   : > { %v9988_v16 = vpop.f32.mrf.mxu0  ;;  %v12861_v19 = vpop.f32.mrf.mxu1 }
 0x58d   : > { %14517 = vst [vmem:[#allocation18_spill] sm:$0xff] %v12859_v6  ;;  %14518 = vst [vmem:[#allocation27_spill] sm:$0xff] %v12861_v19  ;;  %v5604_v23 = vadd.f32 %v9988_v16, %v12750_v36 }
 0x58e   : > { %v12864_v62 = vpop.f32.mrf.mxu0  ;;  %v10049_v17 = vpop.f32.mrf.mxu1 }
 0x58f   : > { %v12866_v24 = vadd.f32 %v10040_v14, %v5604_v23 }
 0x590   : > { %v9991_v9 = vpop.f32.mrf.mxu0  ;;  %v12868_v20 = vpop.f32.mrf.mxu1 }
 0x591   : > { %14519 = vst [vmem:[#allocation13_spill] sm:$0xff] %v12866_v24  ;;  %14520 = vst [vmem:[#allocation21_spill] sm:$0xff] %v12868_v20  ;;  %v5618_v41 = vadd.f32 %v9991_v9, %v12757_v54 }
 0x592   : > { %v12871_v46 = vpop.f32.mrf.mxu0  ;;  %v10052_v15 = vpop.f32.mrf.mxu1 }
 0x593   : > { %v12873_v1 = vadd.f32 %v10043_v3, %v5618_v41 }
 0x594   : > { %v9994_v61 = vpop.f32.mrf.mxu0  ;;  %v12875_v6 = vpop.f32.mrf.mxu1 }
 0x595   : > { %14521 = vst [vmem:[#allocation45_spill] sm:$0xff] %v12873_v1  ;;  %14522 = vst [vmem:[#allocation46_spill] sm:$0xff] %v12875_v6  ;;  %v5632_v36 = vadd.f32 %v9994_v61, %v12764_v34 }
 0x596   : > { %v12878_v16 = vpop.f32.mrf.mxu0  ;;  %v10055_v19 = vpop.f32.mrf.mxu1 }
 0x597   : > { %v12880_v14 = vadd.f32 %v10046_v22, %v5632_v36 }
 0x598   : > { %v9997_v23 = vpop.f32.mrf.mxu0  ;;  %v12882_v24 = vpop.f32.mrf.mxu1 }
 0x599   : > { %14523 = vst [vmem:[#allocation47_spill] sm:$0xff] %v12880_v14  ;;  %14524 = vst [vmem:[#allocation48_spill] sm:$0xff] %v12882_v24  ;;  %v5646_v54 = vadd.f32 %v9997_v23, %v12771_v12 }
 0x59a   : > { %v12885_v9 = vpop.f32.mrf.mxu0  ;;  %v10058_v20 = vpop.f32.mrf.mxu1 }
 0x59b   : > { %v12887_v3 = vadd.f32 %v10049_v17, %v5646_v54  ;;  %v4832_v17 = vadd.f32 %v12651_v53, %v12658_v37  ;;  %v4872_v37 = vadd.f32 %v12651_v53, %v12672_v40  ;;  %v4972_v40 = vadd.f32 %v12651_v53, %v12740_v31 }
 0x59c   : > { %v10000_v41 = vpop.f32.mrf.mxu0  ;;  %v12889_v1 = vpop.f32.mrf.mxu1 }
 0x59d   : > { %14525 = vst [vmem:[#allocation49_spill] sm:$0xff] %v12887_v3  ;;  %v5660_v34 = vadd.f32 %v10000_v41, %v12778_v63 }
 0x59e   : > { %v12892_v61 = vpop.f32.mrf.mxu0  ;;  %v10061_v6 = vpop.f32.mrf.mxu1 }
 0x59f   : > { %v12894_v22 = vadd.f32 %v10052_v15, %v5660_v34  ;;  %v4852_v15 = vadd.f32 %v12651_v53, %v12667_v29  ;;  %v4912_v29 = vadd.f32 %v12651_v53, %v12688_v51  ;;  %v5506_v51 = vadd.f32 %v12815_v21, %v12669_v55 }
 0x5a0   : > { %v10003_v36 = vpop.f32.mrf.mxu0  ;;  %v12896_v14 = vpop.f32.mrf.mxu1 }
 0x5a1   : > { %14526 = vst [vmem:[#allocation50_spill] sm:$0xff] %v12894_v22  ;;  %14527 = vst [vmem:[#allocation51_spill] sm:$0xff] %v12896_v14  ;;  %v5674_v12 = vadd.f32 %v10003_v36, %v12787_v25  ;;  %v5492_v25 = vadd.f32 %v12807_v43, %v12662_v33  ;;  %v5223_v36 = vadd.f32 %v12634_v35, %v4832_v17 }
 0x5a2   : > { %v12899_v23 = vpop.f32.mrf.mxu0  ;;  %v10120_v24 = vpop.f32.mrf.mxu1  ;;  %v4952_v43 = vadd.f32 %v12651_v53, %v12717_v7 }
 0x5a3   : > { %v12903_v54 = vadd.f32 %v10055_v19, %v5674_v12  ;;  %v4892_v19 = vadd.f32 %v12651_v53, %v12679_v42  ;;  %v4932_v12 = vadd.f32 %v12651_v53, %v12698_v2  ;;  %v5485_v33 = vadd.f32 %v12811_v5, %v5223_v36 }
 0x5a4   : > { %v10006_v3 = vpop.f32.mrf.mxu0  ;;  %v6360_v63 = vpop.f32.mrf.mxu1  ;;  %v5235_v42 = vadd.f32 %v12646_v27, %v4852_v15  ;;  %v5785_v2 = vadd.f32 %v12785_v10, %v5492_v25  ;;  %v4992_v5 = vadd.f32 %v12651_v53, %v12747_v48  ;;  %v5271_v36 = vadd.f32 %v12674_v58, %v4912_v29  ;;  %v14528_v29 = vld [vmem:[#allocation15_spill] sm:$0xff] }
 0x5a5   : > { %v5688_v41 = vadd.f32 %v10006_v3, %v12796_v57  ;;  %v5259_v31 = vadd.f32 %v12665_v52, %v4892_v19  ;;  %v5283_v55 = vadd.f32 %v12681_v18, %v4932_v12  ;;  %v5777_v10 = vadd.f32 %v12789_v39, %v5485_v33  ;;  %v14530_v33 = vld [vmem:[#allocation30_spill] sm:$0xff] }
 0x5a6   : > { %v12908_v34 = vpop.f32.mrf.mxu0  ;;  %v10123_v22 = vpop.f32.mrf.mxu1  ;;  %v5499_v7 = vadd.f32 %v12819_v13, %v5235_v42  ;;  %v5032_v13 = vadd.f32 %v12651_v53, %v12762_v49  ;;  %v5307_v52 = vadd.f32 %v12693_v26, %v4972_v40  ;;  %v5520_v58 = vadd.f32 %v12821_v4, %v12676_v47 }
 0x5a7   : > { %v12913_v14 = vadd.f32 %v10058_v20, %v5688_v41  ;;  %v5801_v19 = vadd.f32 %v12794_v11, %v5506_v51  ;;  %v5052_v39 = vadd.f32 %v12651_v53, %v12769_v44  ;;  %v5319_v49 = vadd.f32 %v12714_v50, %v4992_v5  ;;  %v14534_v5 = vld [vmem:[#allocation4_spill] sm:$0xff] }
 0x5a8   : > { %v10009_v57 = vpop.f32.mrf.mxu0  ;;  %v6372_v3 = vpop.f32.mrf.mxu1  ;;  %v5793_v26 = vadd.f32 %v12798_v56, %v5499_v7  ;;  %v5817_v7 = vadd.f32 %v14534_v5, %v5520_v58  ;;  %v14546_v5 = vld [vmem:[#allocation8_spill] sm:$0xff] }
 0x5a9   : > { %v5702_v35 = vadd.f32 %v10009_v57, %v12805_v0  ;;  %v5247_v0 = vadd.f32 %v12660_v8, %v4872_v37  ;;  %v5295_v8 = vadd.f32 %v12685_v59, %v4952_v43  ;;  %v14532_v43 = vld [vmem:[#allocation31_spill] sm:$0xff] }
 0x5aa   : > { %v12930_v20 = vpop.f32.mrf.mxu0  ;;  %v10126_v17 = vpop.f32.mrf.mxu1 }
 0x5ab   : > { %v12935_v41 = vadd.f32 %v10061_v6, %v5702_v35  ;;  %v5012_v6 = vadd.f32 %v12651_v53, %v12755_v60  ;;  %v5072_v60 = vadd.f32 %v12651_v53, %v12776_v28  ;;  %v5513_v12 = vadd.f32 %v14528_v29, %v5247_v0  ;;  %v14531_v35 = vld [vmem:[#allocation5_spill] sm:$0xff]  ;;  %v14533_v28 = vld [vmem:[#allocation44_spill] sm:$0xff] }
 0x5ac   : > { %v10068_v27 = vpop.f32.mrf.mxu0  ;;  %v12942_v15 = vpop.f32.mrf.mxu1  ;;  %v5534_v44 = vadd.f32 %v14531_v35, %v14530_v33  ;;  %v5343_v42 = vadd.f32 %v14533_v28, %v5032_v13  ;;  %v14539_v29 = vld [vmem:[#allocation41_spill] sm:$0xff]  ;;  %v14542_v33 = vld [vmem:[#allocation42_spill] sm:$0xff]  ;;  %v5569_v28 = vadd.f32 %v12850_v45, %v5295_v8 }
 0x5ad   : > { %v6108_v21 = vadd.f32 %v10068_v27, %v5785_v2  ;;  %v5331_v40 = vadd.f32 %v14532_v43, %v5012_v6  ;;  %v14536_v27 = vld [vmem:[#allocation10_spill] sm:$0xff]  ;;  %v14545_v45 = vld [vmem:[#allocation37_spill] sm:$0xff] }
 0x5ae   : > { %v6101_v48 = vpop.f32.mrf.mxu0  ;;  %v10129_v25 = vpop.f32.mrf.mxu1 }
 0x5af   : > { %v6367_v37 = vadd.f32 %v10120_v24, %v6108_v21  ;;  %v6102_v18 = vadd.f32 %v6101_v48, %v5777_v10  ;;  %v14529_v24 = vld [vmem:[#allocation3_spill] sm:$0xff]  ;;  %v5527_v21 = vadd.f32 %v14536_v27, %v5259_v31  ;;  %v14537_v10 = vld [vmem:[#allocation33_spill] sm:$0xff]  ;;  %v14547_v27 = vld [vmem:[#allocation24_spill] sm:$0xff] }
 0x5b0   : > { %v10071_v59 = vpop.f32.mrf.mxu0  ;;  %v6396_v57 = vpop.f32.mrf.mxu1  ;;  %v5092_v11 = vadd.f32 %v12651_v53, %v14529_v24  ;;  %v5355_v48 = vadd.f32 %v14537_v10, %v5052_v39  ;;  %v5833_v39 = vadd.f32 %v14542_v33, %v5534_v44  ;;  %v5597_v44 = vadd.f32 %v12864_v62, %v5319_v49 }
 0x5b1   : > { %10599 = vtanh.f32 %v6367_v37  ;;  %v6361_v47 = vadd.f32 %v6360_v63, %v6102_v18  ;;  %v6120_v4 = vadd.f32 %v10071_v59, %v5801_v19  ;;  %v14535_v63 = vld [vmem:[#allocation7_spill] sm:$0xff]  ;;  %v14538_v37 = vld [vmem:[#allocation2_spill] sm:$0xff] }
 0x5b2   : > { %v6113_v50 = vpop.f32.mrf.mxu0  ;;  %v12969_v51 = vpop.f32.mrf.mxu1  ;;  %v5112_v0 = vadd.f32 %v12651_v53, %v14535_v63  ;;  %v5367_v18 = vadd.f32 %v14538_v37, %v5072_v60  ;;  %v5555_v60 = vadd.f32 %v12843_v32, %v5283_v55  ;;  %v5625_v55 = vadd.f32 %v12878_v16, %v5343_v42  ;;  %v14548_v16 = vld [vmem:[#allocation9_spill] sm:$0xff] }
 0x5b3   : > { %10601 = vtanh.f32 %v6361_v47  ;;  %v6379_v56 = vadd.f32 %v10123_v22, %v6120_v4  ;;  %v6114_v2 = vadd.f32 %v6113_v50, %v5793_v26  ;;  %v5809_v22 = vadd.f32 %v14539_v29, %v5513_v12  ;;  %v14540_v26 = vld [vmem:[#allocation39_spill] sm:$0xff]  ;;  %v14541_v4 = vld [vmem:[#allocation6_spill] sm:$0xff]  ;;  %v14549_v42 = vld [vmem:[#allocation17_spill] sm:$0xff] }
 0x5b4   : > { %v10074_v6 = vpop.f32.mrf.mxu0  ;;  %v12977_v19 = vpop.f32.mrf.mxu1  ;;  %v5132_v58 = vadd.f32 %v12651_v53, %v14540_v26  ;;  %v5541_v47 = vadd.f32 %v12836_v38, %v5271_v36  ;;  %v5379_v24 = vadd.f32 %v14541_v4, %v5092_v11  ;;  %v5583_v12 = vadd.f32 %v12857_v30, %v5307_v52  ;;  %v14543_v50 = vld [vmem:[#allocation35_spill] sm:$0xff] }
 0x5b5   : > { %10603 = vtanh.f32 %v6379_v56  ;;  %v6373_v13 = vadd.f32 %v6372_v3, %v6114_v2  ;;  %v6132_v59 = vadd.f32 %v10074_v6, %v5817_v7  ;;  %v5391_v53 = vadd.f32 %v14543_v50, %v5112_v0  ;;  %v14544_v38 = vld [vmem:[#allocation43_spill] sm:$0xff]  ;;  %v14556_v50 = vld [vmem:[#allocation25_spill] sm:$0xff] }
 0x5b6   : > { %v6125_v31 = vpop.f32.mrf.mxu0  ;;  %v12985_v35 = vpop.f32.mrf.mxu1  ;;  %v5825_v36 = vadd.f32 %v14544_v38, %v5527_v21  ;;  %v5403_v8 = vadd.f32 %v14545_v45, %v5132_v58  ;;  %v5841_v7 = vadd.f32 %v14546_v5, %v5541_v47  ;;  %v5857_v62 = vadd.f32 %v14547_v27, %v5555_v60  ;;  %v14550_v6 = vld [vmem:[#allocation19_spill] sm:$0xff]  ;;  %v14554_v60 = vld [vmem:[#allocation21_spill] sm:$0xff] }
 0x5b7   : > { %10605 = vtanh.f32 %v6373_v13  ;;  %v6391_v43 = vadd.f32 %v10126_v17, %v6132_v59  ;;  %v6126_v3 = vadd.f32 %v6125_v31, %v5809_v22  ;;  %v5611_v17 = vadd.f32 %v12871_v46, %v5331_v40  ;;  %v14552_v22 = vld [vmem:[#allocation20_spill] sm:$0xff]  ;;  %v14553_v58 = vld [vmem:[#allocation27_spill] sm:$0xff] }
 0x5b8   : > { %v10077_v56 = vpop.f32.mrf.mxu0  ;;  %v12992_v11 = vpop.f32.mrf.mxu1  ;;  %v5639_v49 = vadd.f32 %v12885_v9, %v5355_v48  ;;  %v5873_v40 = vadd.f32 %v14548_v16, %v5569_v28  ;;  %v13009_v10 = vadd.f32 %v14549_v42, %v5583_v12  ;;  %v5667_v9 = vadd.f32 %v12899_v23, %v5379_v24 }
 0x5b9   : > { %10607 = vtanh.f32 %v6391_v43  ;;  %v6385_v2 = vadd.f32 %v12942_v15, %v6126_v3  ;;  %v6144_v32 = vadd.f32 %v10077_v56, %v5833_v39  ;;  %v5653_v15 = vadd.f32 %v12892_v61, %v5367_v18  ;;  %v14555_v3 = vld [vmem:[#allocation46_spill] sm:$0xff] }
 0x5ba   : > { %v6137_v30 = vpop.f32.mrf.mxu0  ;;  %v12999_v52 = vpop.f32.mrf.mxu1  ;;  %v5681_v61 = vadd.f32 %v12908_v34, %v5391_v53  ;;  %v13020_v26 = vadd.f32 %v14552_v22, %v5611_v17  ;;  %v13023_v47 = vadd.f32 %v14553_v58, %v5625_v55  ;;  %v5695_v23 = vadd.f32 %v12930_v20, %v5403_v8 }
 0x5bb   : > { %10609 = vtanh.f32 %v6385_v2  ;;  %v6403_v63 = vadd.f32 %v10129_v25, %v6144_v32  ;;  %v6138_v0 = vadd.f32 %v6137_v30, %v5825_v36  ;;  %v14551_v25 = vld [vmem:[#allocation11_spill] sm:$0xff]  ;;  %v13033_v43 = vadd.f32 %v14554_v60, %v5639_v49  ;;  %v14557_v2 = vld [vmem:[#allocation48_spill] sm:$0xff] }
 0x5bc   : > { %v10080_v21 = vpop.f32.mrf.mxu0  ;;  %v13005_v46 = vpop.f32.mrf.mxu1  ;;  %v13013_v59 = vadd.f32 %v14551_v25, %v5597_v44  ;;  %v13036_v28 = vadd.f32 %v14555_v3, %v5653_v15  ;;  %v13049_v32 = vadd.f32 %v14557_v2, %v5667_v9  ;;  %v13052_v17 = vadd.f32 %v12889_v1, %v5681_v61  ;;  %v14560_v25 = vld [vmem:[#allocation14_spill] sm:$0xff]  ;;  %v14563_v3 = vld [vmem:[#allocation29_spill] sm:$0xff] }
 0x5bd   : > { %10611 = vtanh.f32 %v6403_v63  ;;  %v6397_v37 = vadd.f32 %v6396_v57, %v6138_v0  ;;  %v6156_v13 = vadd.f32 %v10080_v21, %v14550_v6  ;;  %v14558_v0 = vld [vmem:[#allocation51_spill] sm:$0xff] }
 0x5be   : > { %v10600_v29 = vpop.eup %10599  ;;  %v6149_v48 = vpop.f32.mrf.mxu0  ;;  %v13066_v27 = vadd.f32 %v14558_v0, %v5695_v23  ;;  %v14562_v23 = vld [vmem:[#allocation18_spill] sm:$0xff] }
 0x5bf   : > { %v13017_v18 = vpop.f32.mrf.mxu1  ;;  %v6597_v57 = vsel %vm1100_vm1, %v10600_v29, 0  ;;  %10613 = vtanh.f32 %v6397_v37  ;;  %v6415_v4 = vadd.f32 %v12969_v51, %v6156_v13  ;;  %v6150_v31 = vadd.f32 %v6149_v48, %v5841_v7  ;;  %v14561_v48 = vld [vmem:[#allocation23_spill] sm:$0xff] }
 0x5c0   : > { %v10602_v33 = vpop.eup %10601  ;;  %v10083_v24 = vpop.f32.mrf.mxu0  ;;  %v13030_v39 = vand.u32 4294901760, %v6597_v57 }
 0x5c1   : > { %v13028_v34 = vpop.f32.mrf.mxu1  ;;  %10615 = vtanh.f32 %v6415_v4  ;;  %v6409_v12 = vadd.f32 %v12977_v19, %v6150_v31  ;;  %v6168_v51 = vadd.f32 %v10083_v24, %v14556_v50  ;;  %v6594_v53 = vsel %vm1100_vm1, %v10602_v33, 0 }
 0x5c2   : > { %v10604_v56 = vpop.eup %10603  ;;  %v6161_v20 = vpop.f32.mrf.mxu0  ;;  %v13043_v36 = vand.u32 4294901760, %v6594_v53  ;;  %v13046_v44 = vsub.f32 %v6597_v57, %v13030_v39 }
 0x5c3   : > { %v13041_v38 = vpop.f32.mrf.mxu1  ;;  %10617 = vtanh.f32 %v6409_v12  ;;  %v6427_v19 = vadd.f32 %v12985_v35, %v6168_v51  ;;  %v6162_v55 = vadd.f32 %v6161_v20, %v5857_v62  ;;  %v6603_v45 = vsel %vm1100_vm1, %v10604_v56, 0  ;;  %v14559_v62 = vld [vmem:[#allocation12_spill] sm:$0xff] }
 0x5c4   : > { %v10606_v8 = vpop.eup %10605  ;;  %v10086_v30 = vpop.f32.mrf.mxu0  ;;  %10230 = vmatprep.mubr.f32.mxu1 %v13043_v36  ;;  %v13059_v7 = vand.u32 4294901760, %v6603_v45  ;;  %v13062_v63 = vsub.f32 %v6594_v53, %v13043_v36  ;;  %v14218_v1 = vand.u32 4294901760, %v13046_v44 }
 0x5c5   : > { %v13057_v5 = vpop.f32.mrf.mxu1  ;;  %10619 = vtanh.f32 %v6427_v19  ;;  %v6421_v35 = vadd.f32 %v12992_v11, %v6162_v55  ;;  %v6180_v49 = vadd.f32 %v10086_v30, %v14559_v62  ;;  %10231 = vmatmul.mubr.f32.vlgmr.msra.gmra.mxu1 %v13030_v39  ;;  %v6600_v15 = vsel %vm1100_vm1, %v10606_v8, 0 }
 0x5c6   : > { %v10608_v21 = vpop.eup %10607  ;;  %v6173_v16 = vpop.f32.mrf.mxu0  ;;  %v13074_v37 = vand.u32 4294901760, %v6600_v15  ;;  %v13077_v6 = vsub.f32 %v6603_v45, %v13059_v7  ;;  %v14220_v13 = vand.u32 4294901760, %v13062_v63  ;;  %v6771_v11 = vsub.f32 %v13046_v44, %v14218_v1  ;;  %10335 = vmatpush3.msra.mxu1 %v14560_v25  ;;  %v14564_v45 = vld [vmem:[#allocation34_spill] sm:$0xff] }
 0x5c7   : > { %v13072_v42 = vpop.f32.mrf.mxu1  ;;  %10621 = vtanh.f32 %v6421_v35  ;;  %v6439_v29 = vadd.f32 %v12999_v52, %v6180_v49  ;;  %v6174_v9 = vadd.f32 %v6173_v16, %v5873_v40  ;;  %v6609_v61 = vsel %vm1100_vm1, %v10608_v21, 0  ;;  %10336 = vmatprep.subr.mxu1 %v14561_v48 }
 0x5c8   : > { %v10610_v22 = vpop.eup %10609  ;;  %v10089_v58 = vpop.f32.mrf.mxu0  ;;  %10233 = vmatprep.mubr.f32.mxu1 %v13074_v37  ;;  %v6761_v4 = vsub.f32 %v13062_v63, %v14220_v13  ;;  %v6772_v31 = vand.u32 4294901760, %v6771_v11  ;;  %v13093_v33 = vand.u32 4294901760, %v6609_v61  ;;  %v13096_v52 = vsub.f32 %v6600_v15, %v13074_v37  ;;  %10337 = vmatpush3.msra.mxu1 %v14561_v48  ;;  %v14565_v15 = vld [vmem:[#allocation13_spill] sm:$0xff] }
 0x5c9   : > { %v13088_v57 = vpop.f32.mrf.mxu1  ;;  %10623 = vtanh.f32 %v6439_v29  ;;  %v6433_v40 = vadd.f32 %v13005_v46, %v6174_v9  ;;  %v6192_v24 = vadd.f32 %v10089_v58, %v14562_v23  ;;  %10234 = vmatmul.mubr.f32.gmra.mxu1 %v13059_v7  ;;  %v6606_v60 = vsel %vm1100_vm1, %v10610_v22, 0  ;;  %10338 = vmatprep.subr.mxu1 %v14563_v3  ;;  %v14566_v29 = vld [vmem:[#allocation22_spill] sm:$0xff] }
 0x5ca   : > { %v10612_v12 = vpop.eup %10611  ;;  %v6185_v50 = vpop.f32.mrf.mxu0  ;;  %v6762_v53 = vand.u32 4294901760, %v6761_v4  ;;  %v13106_v56 = vand.u32 4294901760, %v6606_v60  ;;  %v13109_v20 = vsub.f32 %v6609_v61, %v13093_v33  ;;  %v14216_v46 = vand.u32 4294901760, %v13096_v52  ;;  %10339 = vmatpush3.msra.mxu1 %v14563_v3 }
 0x5cb   : > { %v13104_v51 = vpop.f32.mrf.mxu1  ;;  %10625 = vtanh.f32 %v6433_v40  ;;  %v6451_v2 = vadd.f32 %v13017_v18, %v6192_v24  ;;  %v6186_v19 = vadd.f32 %v6185_v50, %v13009_v10  ;;  %v14215_v55 = vand.u32 4294901760, %v13077_v6  ;;  %10340 = vmatprep.subr.mxu1 %v14564_v45  ;;  %v14567_v24 = vld [vmem:[#allocation26_spill] sm:$0xff] }
 0x5cc   : > { %v10614_v8 = vpop.eup %10613  ;;  %v10092_v30 = vpop.f32.mrf.mxu0  ;;  %10174 = vmatprep.mubr.f32.mxu0 %v6762_v53  ;;  %10236 = vmatprep.mubr.f32.mxu1 %v13106_v56  ;;  %v6781_v35 = vsub.f32 %v13096_v52, %v14216_v46  ;;  %v6615_v62 = vsel %vm1100_vm1, %v10612_v12, 0  ;;  %v13125_v18 = vsub.f32 %v6606_v60, %v13106_v56  ;;  %v14212_v10 = vand.u32 4294901760, %v13109_v20 }
 0x5cd   : > { %v13118_v0 = vpop.f32.mrf.mxu1  ;;  %10627 = vtanh.f32 %v6451_v2  ;;  %v6445_v49 = vadd.f32 %v13028_v34, %v6186_v19  ;;  %v6204_v21 = vadd.f32 %v10092_v30, %v14565_v15  ;;  %10175 = vmatmul.mubr.f32.vlgmr.msra.gmra.mxu0 %v6772_v31  ;;  %10237 = vmatmul.mubr.f32.gmra.mxu1 %v13093_v33  ;;  %v6612_v16 = vsel %vm1100_vm1, %v10614_v8, 0  ;;  %v14568_v8 = vld [vmem:[#allocation45_spill] sm:$0xff] }
 0x5ce   : > { %v10616_v11 = vpop.eup %10615  ;;  %10279 = vmatpush3.msra.mxu0 %v14566_v29  ;;  %v6197_v9 = vpop.f32.mrf.mxu0  ;;  %v6782_v22 = vand.u32 4294901760, %v6781_v35  ;;  %v13135_v58 = vand.u32 4294901760, %v6612_v16  ;;  %v6791_v34 = vsub.f32 %v13077_v6, %v14215_v55  ;;  %v13140_v4 = vand.u32 4294901760, %v6615_v62  ;;  %10341 = vmatpush3.msra.mxu1 %v14564_v45 }
 0x5cf   : > { %v13133_v61 = vpop.f32.mrf.mxu1  ;;  %10629 = vtanh.f32 %v6445_v49  ;;  %v6463_v31 = vadd.f32 %v13041_v38, %v6204_v21  ;;  %v6198_v40 = vadd.f32 %v6197_v9, %v13013_v59  ;;  %v14213_v23 = vand.u32 4294901760, %v13125_v18  ;;  %10280 = vmatprep.subr.mxu0 %v14567_v24  ;;  %10446 = vmatprep.subr.mxu1 %v14560_v25  ;;  %v14569_v9 = vld [vmem:[#allocation32_spill] sm:$0xff] }
 0x5d0   : > { %v10618_v60 = vpop.eup %10617  ;;  %v10095_v12 = vpop.f32.mrf.mxu0  ;;  %10177 = vmatprep.mubr.f32.mxu0 %v6782_v22  ;;  %10239 = vmatprep.mubr.f32.mxu1 %v13135_v58  ;;  %v6792_v50 = vand.u32 4294901760, %v6791_v34  ;;  %v13150_v53 = vsub.f32 %v6615_v62, %v13140_v4  ;;  %v6811_v59 = vsub.f32 %v13109_v20, %v14212_v10  ;;  %v6621_v38 = vsel %vm1100_vm1, %v10616_v11, 0 }
 0x5d1   : > { %v13152_v2 = vpop.f32.mrf.mxu1  ;;  %10631 = vtanh.f32 %v6463_v31  ;;  %v6457_v19 = vadd.f32 %v13057_v5, %v6198_v40  ;;  %v6216_v30 = vadd.f32 %v10095_v12, %v14568_v8  ;;  %10240 = vmatmul.mubr.f32.gmra.mxu1 %v13140_v4  ;;  %v6801_v35 = vsub.f32 %v13125_v18, %v14213_v23  ;;  %10281 = vmatpush3.msra.mxu0 %v14567_v24 }
 0x5d2   : > { %v10620_v62 = vpop.eup %10619  ;;  %10178 = vmatmul.mubr.f32.gmra.mxu0 %v6792_v50  ;;  %v6209_v49 = vpop.f32.mrf.mxu0  ;;  %v6618_v21 = vsel %vm1100_vm1, %v10618_v60, 0  ;;  %v6812_v11 = vand.u32 4294901760, %v6811_v59  ;;  %v13168_v29 = vand.u32 4294901760, %v6621_v38  ;;  %v13171_v5 = vsub.f32 %v6612_v16, %v13135_v58  ;;  %10282 = vmatprep.subr.mxu0 %v14569_v9 }
 0x5d3   : > { %v13165_v15 = vpop.f32.mrf.mxu1  ;;  %10633 = vtanh.f32 %v6457_v19  ;;  %v6475_v22 = vadd.f32 %v13072_v42, %v6216_v30  ;;  %v6210_v34 = vadd.f32 %v6209_v49, %v13020_v26  ;;  %v6802_v31 = vand.u32 4294901760, %v6801_v35  ;;  %10283 = vmatpush3.msra.mxu0 %v14569_v9  ;;  %v14570_v19 = vld [vmem:[#allocation38_spill] sm:$0xff]  ;;  %v14571_v42 = vld [vmem:[#allocation47_spill] sm:$0xff] }
 0x5d4   : > { %v10622_v40 = vpop.eup %10621  ;;  %v10098_v24 = vpop.f32.mrf.mxu0  ;;  %v13177_v12 = vand.u32 4294901760, %v6618_v21  ;;  %v13180_v60 = vsub.f32 %v6621_v38, %v13168_v29  ;;  %v14210_v16 = vand.u32 4294901760, %v13171_v5  ;;  %v14211_v59 = vand.u32 4294901760, %v13150_v53  ;;  %10284 = vmatprep.subr.mxu0 %v14570_v19 }
 0x5d5   : > { %v13182_v50 = vpop.f32.mrf.mxu1  ;;  %10635 = vtanh.f32 %v6475_v22  ;;  %v6469_v26 = vadd.f32 %v13088_v57, %v6210_v34  ;;  %v6228_v8 = vadd.f32 %v10098_v24, %v14571_v42  ;;  %10180 = vmatprep.mubr.f32.mxu0 %v6802_v31  ;;  %v6624_v30 = vsel %vm1100_vm1, %v10622_v40, 0  ;;  %10285 = vmatpush3.msra.mxu0 %v14570_v19  ;;  %v14572_v40 = vld [vmem:[#allocation16_spill] sm:$0xff] }
 0x5d6   : > { %v10624_v38 = vpop.eup %10623  ;;  %10242 = vmatprep.mubr.f32.mxu1 %v13177_v12  ;;  %10181 = vmatmul.mubr.f32.gmra.mxu0 %v6812_v11  ;;  %v6221_v35 = vpop.f32.mrf.mxu0  ;;  %v6821_v49 = vsub.f32 %v13171_v5, %v14210_v16  ;;  %v13195_v9 = vand.u32 4294901760, %v6624_v30  ;;  %v6831_v57 = vsub.f32 %v13150_v53, %v14211_v59  ;;  %v6627_v22 = vsel %vm1100_vm1, %v10620_v62, 0 }
 0x5d7   : > { %10637 = vtanh.f32 %v6469_v26  ;;  %v6487_v34 = vadd.f32 %v13104_v51, %v6228_v8  ;;  %10243 = vmatmul.mubr.f32.gmra.mxu1 %v13168_v29  ;;  %v6222_v11 = vadd.f32 %v6221_v35, %v13023_v47  ;;  %v13204_v31 = vand.u32 4294901760, %v6627_v22  ;;  %10390 = vmatprep.subr.mxu0 %v14572_v40  ;;  %v13207_v42 = vpop.f32.mrf.mxu1  ;;  %v14573_v26 = vld [vmem:[#allocation49_spill] sm:$0xff] }
 0x5d8   : > { %v10626_v24 = vpop.eup %10625  ;;  %v10101_v19 = vpop.f32.mrf.mxu0  ;;  %v6822_v16 = vand.u32 4294901760, %v6821_v49  ;;  %10245 = vmatprep.mubr.f32.mxu1 %v13195_v9  ;;  %v6832_v59 = vand.u32 4294901760, %v6831_v57  ;;  %v13211_v62 = vsub.f32 %v6618_v21, %v13177_v12  ;;  %v14214_v51 = vand.u32 4294901760, %v13180_v60 }
 0x5d9   : > { %10639 = vtanh.f32 %v6487_v34  ;;  %v6481_v47 = vadd.f32 %v13118_v0, %v6222_v11  ;;  %v6240_v8 = vadd.f32 %v10101_v19, %v14573_v26  ;;  %v13217_v35 = vsub.f32 %v6627_v22, %v13204_v31  ;;  %v6516_v19 = vpop.f32.mrf.mxu1 }
 0x5da   : > { %v10628_v10 = vpop.eup %10627  ;;  %10183 = vmatprep.mubr.f32.mxu0 %v6822_v16  ;;  %v6233_v23 = vpop.f32.mrf.mxu0  ;;  %v14217_v49 = vand.u32 4294901760, %v13211_v62  ;;  %v6630_v57 = vsel %vm1100_vm1, %v10626_v24, 0  ;;  %v6851_v21 = vsub.f32 %v13180_v60, %v14214_v51  ;;  %v6633_v34 = vsel %vm1100_vm1, %v10624_v38, 0 }
 0x5db   : > { %10641 = vtanh.f32 %v6481_v47  ;;  %v6499_v0 = vadd.f32 %v13133_v61, %v6240_v8  ;;  %10184 = vmatmul.mubr.f32.gmra.mxu0 %v6832_v59  ;;  %10246 = vmatmul.mubr.f32.gmra.mxu1 %v13204_v31  ;;  %v6234_v22 = vadd.f32 %v6233_v23, %v13033_v43  ;;  %v13228_v16 = vand.u32 4294901760, %v6630_v57  ;;  %v14576_v59 = vld [vmem:[#allocation50_spill] sm:$0xff] }
 0x5dc   : > { %v10630_v11 = vpop.eup %10629  ;;  %v10104_v26 = vpop.f32.mrf.mxu0  ;;  %v6841_v24 = vsub.f32 %v13211_v62, %v14217_v49  ;;  %v6852_v51 = vand.u32 4294901760, %v6851_v21  ;;  %v13233_v55 = vand.u32 4294901760, %v6633_v34  ;;  %v13236_v38 = vsub.f32 %v6624_v30, %v13195_v9 }
 0x5dd   : > { %14574 = vst [vmem:[#allocation15_spill] sm:$0xff] %v13228_v16  ;;  %10643 = vtanh.f32 %v6499_v0  ;;  %v6493_v61 = vadd.f32 %v13152_v2, %v6234_v22  ;;  %v6252_v43 = vadd.f32 %v10104_v26, %v14576_v59  ;;  %10248 = vmatprep.mubr.f32.mxu1 %v13228_v16  ;;  %v6636_v23 = vsel %vm1100_vm1, %v10630_v11, 0  ;;  %v10162_v11 = vpop.f32.mrf.mxu1 }
 0x5de   : > { %14575 = vst [vmem:[#allocation3_spill] sm:$0xff] %v13233_v55  ;;  %v10632_v47 = vpop.eup %10631  ;;  %v6842_v8 = vand.u32 4294901760, %v6841_v24  ;;  %v13243_v46 = vsub.f32 %v6633_v34, %v13233_v55  ;;  %v6245_v21 = vpop.f32.mrf.mxu0  ;;  %v14219_v49 = vand.u32 4294901760, %v13236_v38  ;;  %v13246_v1 = vand.u32 4294901760, %v6636_v23 }
 0x5df   : > { %10645 = vtanh.f32 %v6493_v61  ;;  %v6511_v30 = vadd.f32 %v13165_v15, %v6252_v43  ;;  %10249 = vmatmul.mubr.f32.gmra.mxu1 %v13233_v55  ;;  %v6246_v2 = vadd.f32 %v6245_v21, %v13036_v28  ;;  %v14221_v0 = vand.u32 4294901760, %v13217_v35 }
 0x5e0   : > { %14577 = vst [vmem:[#allocation30_spill] sm:$0xff] %v13246_v1  ;;  %v10634_v22 = vpop.eup %10633  ;;  %10186 = vmatprep.mubr.f32.mxu0 %v6842_v8  ;;  %v10107_v26 = vpop.f32.mrf.mxu0  ;;  %v6861_v34 = vsub.f32 %v13236_v38, %v14219_v49  ;;  %10251 = vmatprep.mubr.f32.mxu1 %v13246_v1  ;;  %v6639_v24 = vsel %vm1100_vm1, %v10628_v10, 0  ;;  %v13258_v15 = vsub.f32 %v6630_v57, %v13228_v16  ;;  %v14225_v61 = vand.u32 4294901760, %v13243_v46 }
 0x5e1   : > { %10647 = vtanh.f32 %v6511_v30  ;;  %10187 = vmatmul.mubr.f32.gmra.mxu0 %v6852_v51  ;;  %v6505_v28 = vadd.f32 %v13182_v50, %v6246_v2  ;;  %v6264_v59 = vadd.f32 %v10107_v26, %v12903_v54  ;;  %v6871_v43 = vsub.f32 %v13217_v35, %v14221_v0  ;;  %v6528_v2 = vpop.f32.mrf.mxu1 }
 0x5e2   : > { %v10636_v8 = vpop.eup %10635  ;;  %v6862_v21 = vand.u32 4294901760, %v6861_v34  ;;  %v13266_v49 = vand.u32 4294901760, %v6639_v24  ;;  %v6257_v10 = vpop.f32.mrf.mxu0  ;;  %v14222_v57 = vand.u32 4294901760, %v13258_v15  ;;  %v6642_v13 = vsel %vm1100_vm1, %v10634_v22, 0 }
 0x5e3   : > { %10649 = vtanh.f32 %v6505_v28  ;;  %v6523_v51 = vadd.f32 %v13207_v42, %v6264_v59  ;;  %v6872_v30 = vand.u32 4294901760, %v6871_v43  ;;  %v6258_v50 = vadd.f32 %v6257_v10, %v13049_v32 }
 0x5e4   : > { %14578 = vst [vmem:[#allocation5_spill] sm:$0xff] %v13266_v49  ;;  %v10638_v54 = vpop.eup %10637  ;;  %10189 = vmatprep.mubr.f32.mxu0 %v6862_v21  ;;  %v13273_v26 = vsub.f32 %v6639_v24, %v13266_v49  ;;  %10252 = vmatmul.mubr.f32.gmra.mxu1 %v13266_v49  ;;  %v10110_v34 = vpop.f32.mrf.mxu0  ;;  %v6881_v0 = vsub.f32 %v13258_v15, %v14222_v57  ;;  %v13279_v22 = vand.u32 4294901760, %v6642_v13  ;;  %v6645_v24 = vsel %vm1100_vm1, %v10632_v47, 0 }
 0x5e5   : > { %v6891_v42 = vsub.f32 %v13243_v46, %v14225_v61  ;;  %10651 = vtanh.f32 %v6523_v51  ;;  %10190 = vmatmul.mubr.f32.gmra.mxu0 %v6872_v30  ;;  %v6517_v32 = vadd.f32 %v6516_v19, %v6258_v50  ;;  %v6276_v28 = vadd.f32 %v10110_v34, %v12913_v14  ;;  %v10165_v30 = vpop.f32.mrf.mxu1 }
 0x5e6   : > { %14579 = vst [vmem:[#allocation31_spill] sm:$0xff] %v13279_v22  ;;  %v10640_v59 = vpop.eup %10639  ;;  %v6882_v43 = vand.u32 4294901760, %v6881_v0  ;;  %10254 = vmatprep.mubr.f32.mxu1 %v13279_v22  ;;  %v13287_v10 = vand.u32 4294901760, %v6645_v24  ;;  %v6269_v57 = vpop.f32.mrf.mxu0  ;;  %v13290_v49 = vsub.f32 %v6636_v23, %v13246_v1  ;;  %v6648_v19 = vsel %vm1100_vm1, %v10638_v54, 0 }
 0x5e7   : > { %v6892_v21 = vand.u32 4294901760, %v6891_v42  ;;  %10653 = vtanh.f32 %v6517_v32  ;;  %v6535_v61 = vadd.f32 %v10162_v11, %v6276_v28  ;;  %v6270_v51 = vadd.f32 %v6269_v57, %v13052_v17 }
 0x5e8   : > { %14580 = vst [vmem:[#allocation44_spill] sm:$0xff] %v13287_v10  ;;  %v10642_v14 = vpop.eup %10641  ;;  %10192 = vmatprep.mubr.f32.mxu0 %v6882_v43  ;;  %v13295_v47 = vsub.f32 %v6645_v24, %v13287_v10  ;;  %10255 = vmatmul.mubr.f32.gmra.mxu1 %v13287_v10  ;;  %v10113_v0 = vpop.f32.mrf.mxu0  ;;  %v14226_v50 = vand.u32 4294901760, %v13290_v49  ;;  %v13299_v34 = vand.u32 4294901760, %v6648_v19  ;;  %v14227_v23 = vand.u32 4294901760, %v13273_v26 }
 0x5e9   : > { %10655 = vtanh.f32 %v6535_v61  ;;  %10193 = vmatmul.mubr.f32.gmra.mxu0 %v6892_v21  ;;  %v6529_v17 = vadd.f32 %v6528_v2, %v6270_v51  ;;  %v6288_v11 = vadd.f32 %v10113_v0, %v12935_v41  ;;  %v6651_v57 = vsel %vm1100_vm1, %v10636_v8, 0  ;;  %v6540_v21 = vpop.f32.mrf.mxu1 }
 0x5ea   : > { %14581 = vst [vmem:[#allocation4_spill] sm:$0xff] %v13299_v34  ;;  %v10644_v54 = vpop.eup %10643  ;;  %v6901_v42 = vsub.f32 %v13290_v49, %v14226_v50  ;;  %10257 = vmatprep.mubr.f32.mxu1 %v13299_v34  ;;  %v6911_v32 = vsub.f32 %v13273_v26, %v14227_v23  ;;  %v13311_v28 = vand.u32 4294901760, %v6651_v57  ;;  %v6281_v61 = vpop.f32.mrf.mxu0  ;;  %v13314_v2 = vsub.f32 %v6642_v13, %v13279_v22 }
 0x5eb   : > { %10657 = vtanh.f32 %v6529_v17  ;;  %v6547_v41 = vadd.f32 %v10165_v30, %v6288_v11  ;;  %v6282_v8 = vadd.f32 %v6281_v61, %v13066_v27  ;;  %v6654_v24 = vsel %vm1100_vm1, %v10642_v14, 0 }
 0x5ec   : > { %14582 = vst [vmem:[#allocation7_spill] sm:$0xff] %v13311_v28  ;;  %v10646_v43 = vpop.eup %10645  ;;  %v6902_v51 = vand.u32 4294901760, %v6901_v42  ;;  %v6912_v0 = vand.u32 4294901760, %v6911_v32  ;;  %v13319_v50 = vsub.f32 %v6651_v57, %v13311_v28  ;;  %10258 = vmatmul.mubr.f32.gmra.mxu1 %v13311_v28  ;;  %v14231_v23 = vand.u32 4294901760, %v13314_v2 }
 0x5ed   : > { %10659 = vtanh.f32 %v6547_v41  ;;  %v6541_v13 = vadd.f32 %v6540_v21, %v6282_v8  ;;  %v13323_v10 = vand.u32 4294901760, %v6654_v24  ;;  %v14230_v30 = vand.u32 4294901760, %v13295_v47 }
 0x5ee   : > { %v10648_v27 = vpop.eup %10647  ;;  %10195 = vmatprep.mubr.f32.mxu0 %v6902_v51  ;;  %v6921_v14 = vsub.f32 %v13314_v2, %v14231_v23  ;;  %v6657_v17 = vsel %vm1100_vm1, %v10640_v59, 0  ;;  %v13331_v11 = vsub.f32 %v6648_v19, %v13299_v34  ;;  %v6660_v57 = vsel %vm1100_vm1, %v10646_v43, 0 }
 0x5ef   : > { %14583 = vst [vmem:[#allocation10_spill] sm:$0xff] %v13323_v10  ;;  %10196 = vmatmul.mubr.f32.gmra.mxu0 %v6912_v0  ;;  %10661 = vtanh.f32 %v6541_v13  ;;  %10260 = vmatprep.mubr.f32.mxu1 %v13323_v10  ;;  %v6931_v42 = vsub.f32 %v13295_v47, %v14230_v30  ;;  %v13338_v32 = vand.u32 4294901760, %v6657_v17  ;;  %v13340_v61 = vand.u32 4294901760, %v6660_v57 }
 0x5f0   : > { %v10650_v41 = vpop.eup %10649  ;;  %v6922_v8 = vand.u32 4294901760, %v6921_v14  ;;  %v14232_v59 = vand.u32 4294901760, %v13331_v11  ;;  %v14241_v19 = vand.u32 4294901760, %v13319_v50  ;;  %v6663_v43 = vsel %vm1100_vm1, %v10644_v54, 0 }
 0x5f1   : > { %14584 = vst [vmem:[#allocation33_spill] sm:$0xff] %v13338_v32  ;;  %14585 = vst [vmem:[#allocation2_spill] sm:$0xff] %v13340_v61  ;;  %v6932_v21 = vand.u32 4294901760, %v6931_v42  ;;  %v13346_v51 = vsub.f32 %v6657_v17, %v13338_v32  ;;  %10261 = vmatmul.mubr.f32.gmra.mxu1 %v13338_v32  ;;  %v13349_v0 = vand.u32 4294901760, %v6663_v43  ;;  %v13352_v13 = vsub.f32 %v6654_v24, %v13323_v10 }
 0x5f2   : > { %v10652_v30 = vpop.eup %10651  ;;  %10198 = vmatprep.mubr.f32.mxu0 %v6922_v8  ;;  %v6941_v14 = vsub.f32 %v13331_v11, %v14232_v59  ;;  %10263 = vmatprep.mubr.f32.mxu1 %v13340_v61  ;;  %v6951_v54 = vsub.f32 %v13319_v50, %v14241_v19  ;;  %v6666_v17 = vsel %vm1100_vm1, %v10650_v41, 0  ;;  %v6669_v42 = vsel %vm1100_vm1, %v10648_v27, 0 }
 0x5f3   : > { %14586 = vst [vmem:[#allocation41_spill] sm:$0xff] %v13349_v0  ;;  %10199 = vmatmul.mubr.f32.gmra.mxu0 %v6932_v21  ;;  %v13364_v24 = vsub.f32 %v6663_v43, %v13349_v0  ;;  %v14244_v8 = vand.u32 4294901760, %v13352_v13  ;;  %v13367_v23 = vand.u32 4294901760, %v6666_v17  ;;  %v14247_v59 = vand.u32 4294901760, %v13346_v51 }
 0x5f4   : > { %v10654_v32 = vpop.eup %10653  ;;  %v6942_v10 = vand.u32 4294901760, %v6941_v14  ;;  %v6952_v28 = vand.u32 4294901760, %v6951_v54  ;;  %v13370_v34 = vand.u32 4294901760, %v6669_v42  ;;  %v13373_v19 = vsub.f32 %v6660_v57, %v13340_v61 }
 0x5f5   : > { %14587 = vst [vmem:[#allocation39_spill] sm:$0xff] %v13367_v23  ;;  %10264 = vmatmul.mubr.f32.gmra.mxu1 %v13349_v0  ;;  %v6961_v27 = vsub.f32 %v13352_v13, %v14244_v8  ;;  %v6971_v41 = vsub.f32 %v13346_v51, %v14247_v59  ;;  %v6672_v43 = vsel %vm1100_vm1, %v10654_v32, 0  ;;  %v14252_v21 = vand.u32 4294901760, %v13364_v24 }
 0x5f6   : > { %14588 = vst [vmem:[#allocation6_spill] sm:$0xff] %v13370_v34  ;;  %v10656_v14 = vpop.eup %10655  ;;  %10201 = vmatprep.mubr.f32.mxu0 %v6942_v10  ;;  %10266 = vmatprep.mubr.f32.mxu1 %v13367_v23  ;;  %v13386_v57 = vsub.f32 %v6669_v42, %v13370_v34  ;;  %v14257_v54 = vand.u32 4294901760, %v13373_v19  ;;  %v13389_v0 = vand.u32 4294901760, %v6672_v43  ;;  %v6675_v8 = vsel %vm1100_vm1, %v10652_v30, 0 }
 0x5f7   : > { %10202 = vmatmul.mubr.f32.gmra.mxu0 %v6952_v28  ;;  %v6962_v61 = vand.u32 4294901760, %v6961_v27  ;;  %v6991_v32 = vsub.f32 %v13364_v24, %v14252_v21  ;;  %v13395_v59 = vand.u32 4294901760, %v6675_v8  ;;  %v13401_v22 = vsub.f32 %v6666_v17, %v13367_v23 }
 0x5f8   : > { %14589 = vst [vmem:[#allocation42_spill] sm:$0xff] %v13389_v0  ;;  %v10658_v10 = vpop.eup %10657  ;;  %v6981_v42 = vsub.f32 %v13373_v19, %v14257_v54  ;;  %v6681_v30 = vsel %vm1100_vm1, %v10656_v14, 0  ;;  %v6972_v28 = vand.u32 4294901760, %v6971_v41  ;;  %v13417_v41 = vsub.f32 %v6672_v43, %v13389_v0 }
 0x5f9   : > { %14590 = vst [vmem:[#allocation35_spill] sm:$0xff] %v13395_v59  ;;  %10204 = vmatprep.mubr.f32.mxu0 %v6962_v61  ;;  %10267 = vmatmul.mubr.f32.gmra.mxu1 %v13370_v34  ;;  %v13407_v27 = vsub.f32 %v6675_v8, %v13395_v59  ;;  %v6678_v21 = vsel %vm1100_vm1, %v10658_v10, 0  ;;  %v13410_v55 = vand.u32 4294901760, %v6681_v30  ;;  %v14262_v17 = vand.u32 4294901760, %v13401_v22 }
 0x5fa   : > { %v10660_v16 = vpop.eup %10659  ;;  %v6982_v54 = vand.u32 4294901760, %v6981_v42  ;;  %10269 = vmatprep.mubr.f32.mxu1 %v13389_v0  ;;  %v13414_v1 = vand.u32 4294901760, %v6678_v21  ;;  %v6992_v61 = vand.u32 4294901760, %v6991_v32  ;;  %v14592_v42 = vand.u32 4294901760, %v13386_v57 }
 0x5fb   : > { %10205 = vmatmul.mubr.f32.gmra.mxu0 %v6972_v28  ;;  %v6687_v8 = vsel %vm1100_vm1, %v10660_v16, 0  ;;  %v7001_v10 = vsub.f32 %v13401_v22, %v14262_v17  ;;  %v13427_v23 = vsub.f32 %v6681_v30, %v13410_v55  ;;  %v14270_v16 = vand.u32 4294901760, %v13417_v41 }
 0x5fc   : > { %14591 = vst [vmem:[#allocation43_spill] sm:$0xff] %v13414_v1  ;;  %v10662_v14 = vpop.eup %10661  ;;  %10207 = vmatprep.mubr.f32.mxu0 %v6982_v54  ;;  %v7011_v34 = vsub.f32 %v13386_v57, %v14592_v42  ;;  %v13430_v32 = vsub.f32 %v6678_v21, %v13414_v1  ;;  %v13436_v28 = vand.u32 4294901760, %v6687_v8 }
 0x5fd   : > { %10270 = vmatmul.mubr.f32.gmra.mxu1 %v13395_v59  ;;  %v6684_v43 = vsel %vm1100_vm1, %v10662_v14, 0  ;;  %v7002_v17 = vand.u32 4294901760, %v7001_v10  ;;  %v7021_v21 = vsub.f32 %v13417_v41, %v14270_v16  ;;  %v14594_v16 = vand.u32 4294901760, %v13062_v63 }
 0x5fe   : > { %10272 = vmatprep.mubr.f32.mxu1 %v13414_v1  ;;  %v13439_v42 = vand.u32 4294901760, %v6684_v43  ;;  %v14269_v30 = vand.u32 4294901760, %v13430_v32  ;;  %v7012_v59 = vand.u32 4294901760, %v7011_v34  ;;  %v14593_v1 = vand.u32 4294901760, %v13407_v27 }
 0x5ff   : > { %10208 = vmatmul.mubr.f32.gmra.mxu0 %v6992_v61  ;;  %v7022_v10 = vand.u32 4294901760, %v7021_v21  ;;  %v13456_v0 = vsub.f32 %v6687_v8, %v13436_v28 }
 0x600   : > { %10210 = vmatprep.mubr.f32.mxu0 %v7002_v17  ;;  %v7041_v14 = vsub.f32 %v13430_v32, %v14269_v30  ;;  %v13449_v54 = vsub.f32 %v6684_v43, %v13439_v42  ;;  %v7031_v61 = vsub.f32 %v13407_v27, %v14593_v1  ;;  %v7050_v17 = vand.u32 4294901760, %v13427_v23 }
 0x601   : > { %10273 = vmatmul.mubr.f32.gmra.mxu1 %v13410_v55  ;;  %v7070_v8 = vand.u32 4294901760, %v13456_v0 }
 0x602   : > { %10275 = vmatprep.mubr.f32.mxu1 %v13439_v42  ;;  %v14271_v34 = vand.u32 4294901760, %v13449_v54  ;;  %v7042_v43 = vand.u32 4294901760, %v7041_v14  ;;  %v7032_v30 = vand.u32 4294901760, %v7031_v61  ;;  %v7051_v1 = vsub.f32 %v13427_v23, %v7050_v17 }
 0x603   : > { %10211 = vmatmul.mubr.f32.gmra.mxu0 %v7012_v59  ;;  %v7071_v61 = vsub.f32 %v13456_v0, %v7070_v8 }
 0x604   : > { %10213 = vmatprep.mubr.f32.mxu0 %v7022_v10  ;;  %v7061_v21 = vsub.f32 %v13449_v54, %v14271_v34  ;;  %v7052_v14 = vand.u32 4294901760, %v7051_v1  ;;  %v14595_v10 = vand.u32 4294901760, %v13046_v44  ;;  %v14596_v34 = vand.u32 4294901760, %v13096_v52 }
 0x605   : > { %10276 = vmatmul.mubr.f32.gmra.mxu1 %v13436_v28  ;;  %v14611_v1 = vand.u32 4294901760, %v13290_v49 }
 0x606   : > { %10342 = vmatprep.mubr.f32.mxu1 %v14594_v16  ;;  %v7062_v59 = vand.u32 4294901760, %v7061_v21  ;;  %v7072_v16 = vand.u32 4294901760, %v7071_v61  ;;  %v14610_v21 = vand.u32 4294901760, %v13243_v46 }
 0x607   : > { %10214 = vmatmul.mubr.f32.gmra.mxu0 %v7032_v30  ;;  %v14597_v30 = vand.u32 4294901760, %v13077_v6 }
 0x608   : > { %10216 = vmatprep.mubr.f32.mxu0 %v7042_v43  ;;  %v14598_v43 = vand.u32 4294901760, %v13125_v18 }
 0x609   : > { %10343 = vmatmul.mubr.f32.vlgmr.msra.gmra.mxu1 %v14595_v10 }
 0x60a   : > { %10345 = vmatprep.mubr.f32.mxu1 %v14596_v34  ;;  %10447 = vmatpush3.msra.mxu1 %v14560_v25  ;;  %v14599_v25 = vand.u32 4294901760, %v13109_v20  ;;  %v14602_v34 = vld [vmem:[#allocation28_spill] sm:$0xff] }
 0x60b   : > { %10217 = vmatmul.mubr.f32.gmra.mxu0 %v7052_v14  ;;  %10448 = vmatprep.subr.mxu1 %v14561_v48 }
 0x60c   : > { %10219 = vmatprep.mubr.f32.mxu0 %v7062_v59  ;;  %10449 = vmatpush3.msra.mxu1 %v14561_v48  ;;  %v14600_v48 = vand.u32 4294901760, %v13171_v5 }
 0x60d   : > { %10346 = vmatmul.mubr.f32.gmra.mxu1 %v14597_v30  ;;  %10450 = vmatprep.subr.mxu1 %v14563_v3 }
 0x60e   : > { %10348 = vmatprep.mubr.f32.mxu1 %v14598_v43  ;;  %10451 = vmatpush3.msra.mxu1 %v14563_v3  ;;  %v14601_v3 = vand.u32 4294901760, %v13150_v53 }
 0x60f   : > { %10220 = vmatmul.mubr.f32.gmra.mxu0 %v7072_v16  ;;  %10452 = vmatprep.subr.mxu1 %v14564_v45 }
 0x610   : > { %10286 = vmatprep.mubr.f32.mxu0 %v13062_v63  ;;  %10453 = vmatpush3.msra.mxu1 %v14564_v45  ;;  %v14603_v63 = vand.u32 4294901760, %v13211_v62  ;;  %v14604_v45 = vld [vmem:[#allocation36_spill] sm:$0xff] }
 0x611   : > { %10349 = vmatmul.mubr.f32.gmra.mxu1 %v14599_v25 }
 0x612   : > { %10351 = vmatprep.mubr.f32.mxu1 %v14600_v48 }
 0x613   : > { %10287 = vmatmul.mubr.f32.vlgmr.msra.gmra.mxu0 %v13046_v44  ;;  %v14605_v44 = vand.u32 4294901760, %v13180_v60 }
 0x614   : > { %10391 = vmatpush3.msra.mxu0 %v14572_v40  ;;  %10289 = vmatprep.mubr.f32.mxu0 %v13096_v52  ;;  %v14606_v52 = vld [vmem:[#allocation40_spill] sm:$0xff]  ;;  %v14607_v40 = vand.u32 4294901760, %v13236_v38 }
 0x615   : > { %10352 = vmatmul.mubr.f32.gmra.mxu1 %v14601_v3  ;;  %10392 = vmatprep.subr.mxu0 %v14602_v34 }
 0x616   : > { %10354 = vmatprep.mubr.f32.mxu1 %v14603_v63  ;;  %10393 = vmatpush3.msra.mxu0 %v14602_v34 }
 0x617   : > { %10290 = vmatmul.mubr.f32.gmra.mxu0 %v13077_v6  ;;  %10394 = vmatprep.subr.mxu0 %v14604_v45  ;;  %v14608_v6 = vand.u32 4294901760, %v13217_v35 }
 0x618   : > { %10292 = vmatprep.mubr.f32.mxu0 %v13125_v18  ;;  %10395 = vmatpush3.msra.mxu0 %v14604_v45  ;;  %v14609_v18 = vand.u32 4294901760, %v13258_v15 }
 0x619   : > { %10355 = vmatmul.mubr.f32.gmra.mxu1 %v14605_v44  ;;  %10396 = vmatprep.subr.mxu0 %v14606_v52 }
 0x61a   : > { %10357 = vmatprep.mubr.f32.mxu1 %v14607_v40  ;;  %10397 = vmatpush3.msra.mxu0 %v14606_v52 }
 0x61b   : > { %10293 = vmatmul.mubr.f32.gmra.mxu0 %v13109_v20  ;;  %v14612_v20 = vand.u32 4294901760, %v13273_v26 }
 0x61c   : > { %10295 = vmatprep.mubr.f32.mxu0 %v13171_v5  ;;  %v14613_v5 = vand.u32 4294901760, %v13314_v2 }
 0x61d   : > { %10358 = vmatmul.mubr.f32.gmra.mxu1 %v14608_v6 }
 0x61e   : > { %10360 = vmatprep.mubr.f32.mxu1 %v14609_v18 }
 0x61f   : > { %10296 = vmatmul.mubr.f32.gmra.mxu0 %v13150_v53  ;;  %v14614_v53 = vand.u32 4294901760, %v13295_v47 }
 0x620   : > { %10298 = vmatprep.mubr.f32.mxu0 %v13211_v62  ;;  %v14615_v62 = vand.u32 4294901760, %v13331_v11 }
 0x621   : > { %10361 = vmatmul.mubr.f32.gmra.mxu1 %v14610_v21 }
 0x622   : > { %10363 = vmatprep.mubr.f32.mxu1 %v14611_v1 }
 0x623   : > { %10299 = vmatmul.mubr.f32.gmra.mxu0 %v13180_v60  ;;  %v14616_v60 = vand.u32 4294901760, %v13319_v50 }
 0x624   : > { %10301 = vmatprep.mubr.f32.mxu0 %v13236_v38  ;;  %v14617_v38 = vand.u32 4294901760, %v13352_v13 }
 0x625   : > { %10364 = vmatmul.mubr.f32.gmra.mxu1 %v14612_v20 }
 0x626   : > { %10366 = vmatprep.mubr.f32.mxu1 %v14613_v5 }
 0x627   : > { %10302 = vmatmul.mubr.f32.gmra.mxu0 %v13217_v35  ;;  %v14618_v35 = vand.u32 4294901760, %v13346_v51 }
 0x628   : > { %10304 = vmatprep.mubr.f32.mxu0 %v13258_v15  ;;  %v14619_v15 = vand.u32 4294901760, %v13373_v19 }
 0x629   : > { %10367 = vmatmul.mubr.f32.gmra.mxu1 %v14614_v53 }
 0x62a   : > { %10369 = vmatprep.mubr.f32.mxu1 %v14615_v62 }
 0x62b   : > { %10305 = vmatmul.mubr.f32.gmra.mxu0 %v13243_v46  ;;  %v14620_v46 = vand.u32 4294901760, %v13364_v24 }
 0x62c   : > { %10307 = vmatprep.mubr.f32.mxu0 %v13290_v49  ;;  %v14621_v49 = vand.u32 4294901760, %v13401_v22 }
 0x62d   : > { %10370 = vmatmul.mubr.f32.gmra.mxu1 %v14616_v60 }
 0x62e   : > { %10372 = vmatprep.mubr.f32.mxu1 %v14617_v38 }
 0x62f   : > { %10308 = vmatmul.mubr.f32.gmra.mxu0 %v13273_v26  ;;  %v14622_v26 = vand.u32 4294901760, %v13386_v57 }
 0x630   : > { %10310 = vmatprep.mubr.f32.mxu0 %v13314_v2  ;;  %v14623_v2 = vand.u32 4294901760, %v13417_v41 }
 0x631   : > { %10373 = vmatmul.mubr.f32.gmra.mxu1 %v14618_v35 }
 0x632   : > { %10375 = vmatprep.mubr.f32.mxu1 %v14619_v15 }
 0x633   : > { %10311 = vmatmul.mubr.f32.gmra.mxu0 %v13295_v47  ;;  %v14624_v47 = vand.u32 4294901760, %v13407_v27 }
 0x634   : > { %10313 = vmatprep.mubr.f32.mxu0 %v13331_v11  ;;  %v14625_v11 = vand.u32 4294901760, %v13430_v32 }
 0x635   : > { %10376 = vmatmul.mubr.f32.gmra.mxu1 %v14620_v46 }
 0x636   : > { %10378 = vmatprep.mubr.f32.mxu1 %v14621_v49 }
 0x637   : > { %10314 = vmatmul.mubr.f32.gmra.mxu0 %v13319_v50  ;;  %v14626_v50 = vand.u32 4294901760, %v13449_v54 }
 0x638   : > { %10316 = vmatprep.mubr.f32.mxu0 %v13352_v13 }
 0x639   : > { %10379 = vmatmul.mubr.f32.gmra.mxu1 %v14622_v26 }
 0x63a   : > { %10381 = vmatprep.mubr.f32.mxu1 %v14623_v2 }
 0x63b   : > { %10317 = vmatmul.mubr.f32.gmra.mxu0 %v13346_v51  ;;  %v14642_v51 = vld [vmem:[#allocation35_spill] sm:$0xff] }
 0x63c   : > { %10319 = vmatprep.mubr.f32.mxu0 %v13373_v19  ;;  %v14641_v19 = vld [vmem:[#allocation42_spill] sm:$0xff] }
 0x63d   : > { %10382 = vmatmul.mubr.f32.gmra.mxu1 %v14624_v47 }
 0x63e   : > { %10384 = vmatprep.mubr.f32.mxu1 %v14625_v11 }
 0x63f   : > { %10320 = vmatmul.mubr.f32.gmra.mxu0 %v13364_v24 }
 0x640   : > { %10322 = vmatprep.mubr.f32.mxu0 %v13401_v22  ;;  %v14639_v22 = vld [vmem:[#allocation39_spill] sm:$0xff] }
 0x641   : > { %10385 = vmatmul.mubr.f32.gmra.mxu1 %v7050_v17 }
 0x642   : > { %10387 = vmatprep.mubr.f32.mxu1 %v14626_v50 }
 0x643   : > { %10323 = vmatmul.mubr.f32.gmra.mxu0 %v13386_v57 }
 0x644   : > { %10325 = vmatprep.mubr.f32.mxu0 %v13417_v41  ;;  %v13647_v41 = vld [vmem:[%s14058_s13] ss:$0 sm:$0xff] }
 0x645   : > { %10388 = vmatmul.mubr.f32.gmra.mxu1 %v7070_v8 }
 0x646   : > { %10454 = vmatprep.mubr.f32.mxu1 %v13043_v36 }
 0x647   : > { %10326 = vmatmul.mubr.f32.gmra.mxu0 %v13407_v27 }
 0x648   : > { %10328 = vmatprep.mubr.f32.mxu0 %v13430_v32 }
 0x649   : > { %10455 = vmatmul.mubr.f32.vlgmr.msra.gmra.mxu1 %v13030_v39 }
 0x64a   : > { %10457 = vmatprep.mubr.f32.mxu1 %v13074_v37 }
 0x64b   : > { %10329 = vmatmul.mubr.f32.gmra.mxu0 %v13427_v23  ;;  %v14640_v23 = vld [vmem:[#allocation6_spill] sm:$0xff] }
 0x64c   : > { %10331 = vmatprep.mubr.f32.mxu0 %v13449_v54 }
 0x64d   : > { %10458 = vmatmul.mubr.f32.gmra.mxu1 %v13059_v7 }
 0x64e   : > { %10460 = vmatprep.mubr.f32.mxu1 %v13106_v56 }
 0x64f   : > { %10332 = vmatmul.mubr.f32.gmra.mxu0 %v13456_v0  ;;  %v14643_v0 = vld [vmem:[#allocation43_spill] sm:$0xff] }
 0x650   : > { %10398 = vmatprep.mubr.f32.mxu0 %v13043_v36  ;;  %v14628_v36 = vld [vmem:[#allocation3_spill] sm:$0xff] }
 0x651   : > { %10461 = vmatmul.mubr.f32.gmra.mxu1 %v13093_v33 }
 0x652   : > { %10463 = vmatprep.mubr.f32.mxu1 %v13135_v58 }
 0x653   : > { %10399 = vmatmul.mubr.f32.vlgmr.msra.gmra.mxu0 %v13030_v39  ;;  %v14627_v39 = vld [vmem:[#allocation15_spill] sm:$0xff] }
 0x654   : > { %10401 = vmatprep.mubr.f32.mxu0 %v13074_v37  ;;  %v14630_v37 = vld [vmem:[#allocation5_spill] sm:$0xff] }
 0x655   : > { %10464 = vmatmul.mubr.f32.gmra.mxu1 %v13140_v4 }
 0x656   : > { %10466 = vmatprep.mubr.f32.mxu1 %v13177_v12 }
 0x657   : > { %10402 = vmatmul.mubr.f32.gmra.mxu0 %v13059_v7  ;;  %v14629_v7 = vld [vmem:[#allocation30_spill] sm:$0xff] }
 0x658   : > { %10404 = vmatprep.mubr.f32.mxu0 %v13106_v56  ;;  %v14632_v56 = vld [vmem:[#allocation44_spill] sm:$0xff] }
 0x659   : > { %10467 = vmatmul.mubr.f32.gmra.mxu1 %v13168_v29 }
 0x65a   : > { %10469 = vmatprep.mubr.f32.mxu1 %v13195_v9 }
 0x65b   : > { %10405 = vmatmul.mubr.f32.gmra.mxu0 %v13093_v33  ;;  %v14631_v33 = vld [vmem:[#allocation31_spill] sm:$0xff] }
 0x65c   : > { %10407 = vmatprep.mubr.f32.mxu0 %v13135_v58  ;;  %v14633_v58 = vld [vmem:[#allocation4_spill] sm:$0xff] }
 0x65d   : > { %10470 = vmatmul.mubr.f32.gmra.mxu1 %v13204_v31 }
 0x65e   : > { %10472 = vmatprep.mubr.f32.mxu1 %v14627_v39 }
 0x65f   : > { %10408 = vmatmul.mubr.f32.gmra.mxu0 %v13140_v4  ;;  %v14634_v4 = vld [vmem:[#allocation7_spill] sm:$0xff] }
 0x660   : > { %10410 = vmatprep.mubr.f32.mxu0 %v13177_v12  ;;  %v14636_v12 = vld [vmem:[#allocation33_spill] sm:$0xff] }
 0x661   : > { %10473 = vmatmul.mubr.f32.gmra.mxu1 %v14628_v36 }
 0x662   : > { %10475 = vmatprep.mubr.f32.mxu1 %v14629_v7 }
 0x663   : > { %10411 = vmatmul.mubr.f32.gmra.mxu0 %v13168_v29  ;;  %v14635_v29 = vld [vmem:[#allocation10_spill] sm:$0xff] }
 0x664   : > { %10413 = vmatprep.mubr.f32.mxu0 %v13195_v9  ;;  %v14637_v9 = vld [vmem:[#allocation2_spill] sm:$0xff] }
 0x665   : > { %10476 = vmatmul.mubr.f32.gmra.mxu1 %v14630_v37 }
 0x666   : > { %10478 = vmatprep.mubr.f32.mxu1 %v14631_v33 }
 0x667   : > { %10414 = vmatmul.mubr.f32.gmra.mxu0 %v13204_v31  ;;  %v14638_v31 = vld [vmem:[#allocation41_spill] sm:$0xff] }
 0x668   : > { %10416 = vmatprep.mubr.f32.mxu0 %v14627_v39 }
 0x669   : > { %10479 = vmatmul.mubr.f32.gmra.mxu1 %v14632_v56 }
 0x66a   : > { %10481 = vmatprep.mubr.f32.mxu1 %v14633_v58 }
 0x66b   : > { %10417 = vmatmul.mubr.f32.gmra.mxu0 %v14628_v36 }
 0x66c   : > { %10419 = vmatprep.mubr.f32.mxu0 %v14629_v7 }
 0x66d   : > { %10482 = vmatmul.mubr.f32.gmra.mxu1 %v14634_v4 }
 0x66e   : > { %10484 = vmatprep.mubr.f32.mxu1 %v14635_v29 }
 0x66f   : > { %10420 = vmatmul.mubr.f32.gmra.mxu0 %v14630_v37 }
 0x670   : > { %10422 = vmatprep.mubr.f32.mxu0 %v14631_v33 }
 0x671   : > { %10485 = vmatmul.mubr.f32.gmra.mxu1 %v14636_v12 }
 0x672   : > { %10487 = vmatprep.mubr.f32.mxu1 %v14637_v9 }
 0x673   : > { %10423 = vmatmul.mubr.f32.gmra.mxu0 %v14632_v56 }
 0x674   : > { %10425 = vmatprep.mubr.f32.mxu0 %v14633_v58 }
 0x675   : > { %10488 = vmatmul.mubr.f32.gmra.mxu1 %v14638_v31 }
 0x676   : > { %10490 = vmatprep.mubr.f32.mxu1 %v14639_v22 }
 0x677   : > { %10426 = vmatmul.mubr.f32.gmra.mxu0 %v14634_v4 }
 0x678   : > { %10428 = vmatprep.mubr.f32.mxu0 %v14635_v29 }
 0x679   : > { %10491 = vmatmul.mubr.f32.gmra.mxu1 %v14640_v23 }
 0x67a   : > { %10493 = vmatprep.mubr.f32.mxu1 %v14641_v19 }
 0x67b   : > { %10429 = vmatmul.mubr.f32.gmra.mxu0 %v14636_v12 }
 0x67c   : > { %10431 = vmatprep.mubr.f32.mxu0 %v14637_v9 }
 0x67d   : > { %10494 = vmatmul.mubr.f32.gmra.mxu1 %v14642_v51 }
 0x67e   : > { %10496 = vmatprep.mubr.f32.mxu1 %v14643_v0 }
 0x67f   : > { %10432 = vmatmul.mubr.f32.gmra.mxu0 %v14638_v31 }
 0x680   : > { %10434 = vmatprep.mubr.f32.mxu0 %v14639_v22 }
 0x681   : > { %10497 = vmatmul.mubr.f32.gmra.mxu1 %v13410_v55 }
 0x682   : > { %10499 = vmatprep.mubr.f32.mxu1 %v13439_v42 }
 0x683   : > { %10435 = vmatmul.mubr.f32.gmra.mxu0 %v14640_v23 }
 0x684   : > { %10437 = vmatprep.mubr.f32.mxu0 %v14641_v19 }
 0x685   : > { %10500 = vmatmul.mubr.f32.gmra.mxu1 %v13436_v28  ;;  %v10232_v13 = vpop.f32.mrf.mxu1 }
 0x687   : > { %10438 = vmatmul.mubr.f32.gmra.mxu0 %v14642_v51  ;;  %v7165_v24 = vpop.f32.mrf.mxu1 }
 0x688   : > { %10440 = vmatprep.mubr.f32.mxu0 %v14643_v0 }
 0x689   : > { %v10235_v57 = vpop.f32.mrf.mxu1 }
 0x68b   : > { %10441 = vmatmul.mubr.f32.gmra.mxu0 %v13410_v55  ;;  %v7177_v27 = vpop.f32.mrf.mxu1 }
 0x68c   : > { %10443 = vmatprep.mubr.f32.mxu0 %v13439_v42 }
 0x68d   : > { %v10176_v32 = vpop.f32.mrf.mxu0  ;;  %v10238_v54 = vpop.f32.mrf.mxu1 }
 0x68e   : > { %v6775_v17 = vadd.f32 %v10176_v32, %v13647_v41 }
 0x68f   : > { %10444 = vmatmul.mubr.f32.gmra.mxu0 %v13436_v28  ;;  %v6764_v8 = vpop.f32.mrf.mxu0  ;;  %v7189_v59 = vpop.f32.mrf.mxu1 }
 0x690   : > { %v6765_v14 = vadd.f32 %v13647_v41, %v6764_v8  ;;  %v13653_v10 = vadd.f32 %v10232_v13, %v6775_v17 }
 0x691   : > { %v10241_v55 = vpop.f32.mrf.mxu1 }
 0x692   : > { %v10179_v61 = vpop.f32.mrf.mxu0  ;;  %v13655_v16 = vadd.f32 %v7165_v24, %v6765_v14 }
 0x693   : > { %v6795_v30 = vadd.f32 %v10179_v61, %v13647_v41  ;;  %v7201_v43 = vpop.f32.mrf.mxu1 }
 0x694   : > { %v6784_v42 = vpop.f32.mrf.mxu0 }
 0x695   : > { %v6785_v25 = vadd.f32 %v13647_v41, %v6784_v42  ;;  %v13659_v48 = vadd.f32 %v10235_v57, %v6795_v30 }
 0x696   : > { %v10182_v3 = vpop.f32.mrf.mxu0 }
 0x697   : > { %v6815_v28 = vadd.f32 %v10182_v3, %v13647_v41  ;;  %v10244_v34 = vpop.f32.mrf.mxu1  ;;  %v13662_v63 = vadd.f32 %v7177_v27, %v6785_v25 }
 0x698   : > { %v6804_v45 = vpop.f32.mrf.mxu0 }
 0x699   : > { %v6805_v44 = vadd.f32 %v13647_v41, %v6804_v45  ;;  %v7213_v52 = vpop.f32.mrf.mxu1  ;;  %v13665_v40 = vadd.f32 %v10238_v54, %v6815_v28 }
 0x69b   : > { %v10185_v6 = vpop.f32.mrf.mxu0  ;;  %v10247_v18 = vpop.f32.mrf.mxu1  ;;  %v13667_v21 = vadd.f32 %v7189_v59, %v6805_v44 }
 0x69c   : > { %v6835_v1 = vadd.f32 %v10185_v6, %v13647_v41 }
 0x69d   : > { %v6824_v20 = vpop.f32.mrf.mxu0  ;;  %v7225_v5 = vpop.f32.mrf.mxu1 }
 0x69e   : > { %v6825_v53 = vadd.f32 %v13647_v41, %v6824_v20  ;;  %v13671_v62 = vadd.f32 %v10241_v55, %v6835_v1 }
 0x69f   : > { %v10250_v60 = vpop.f32.mrf.mxu1 }
 0x6a0   : > { %v13673_v38 = vadd.f32 %v7201_v43, %v6825_v53 }
 0x6a1   : > { %v10188_v35 = vpop.f32.mrf.mxu0  ;;  %v7237_v15 = vpop.f32.mrf.mxu1 }
 0x6a2   : > { %v6855_v46 = vadd.f32 %v10188_v35, %v13647_v41 }
 0x6a3   : > { %v6844_v49 = vpop.f32.mrf.mxu0 }
 0x6a4   : > { %v6845_v26 = vadd.f32 %v13647_v41, %v6844_v49  ;;  %v10253_v2 = vpop.f32.mrf.mxu1  ;;  %v13677_v47 = vadd.f32 %v10244_v34, %v6855_v46 }
 0x6a5   : > { %v10191_v11 = vpop.f32.mrf.mxu0 }
 0x6a6   : > { %v6875_v50 = vadd.f32 %v10191_v11, %v13647_v41  ;;  %v7249_v39 = vpop.f32.mrf.mxu1  ;;  %v13680_v36 = vadd.f32 %v7213_v52, %v6845_v26 }
 0x6a7   : > { %v6864_v7 = vpop.f32.mrf.mxu0 }
 0x6a8   : > { %v6865_v37 = vadd.f32 %v13647_v41, %v6864_v7  ;;  %v10256_v33 = vpop.f32.mrf.mxu1  ;;  %v13683_v56 = vadd.f32 %v10247_v18, %v6875_v50 }
 0x6a9   : > { %v10194_v58 = vpop.f32.mrf.mxu0 }
 0x6aa   : > { %v6895_v4 = vadd.f32 %v10194_v58, %v13647_v41  ;;  %v7261_v29 = vpop.f32.mrf.mxu1  ;;  %v13686_v12 = vadd.f32 %v7225_v5, %v6865_v37 }
 0x6ab   : > { %v6884_v9 = vpop.f32.mrf.mxu0 }
 0x6ac   : > { %v6885_v31 = vadd.f32 %v13647_v41, %v6884_v9  ;;  %v10259_v22 = vpop.f32.mrf.mxu1  ;;  %v13689_v23 = vadd.f32 %v10250_v60, %v6895_v4 }
 0x6ae   : > { %v7273_v19 = vpop.f32.mrf.mxu1  ;;  %v13691_v51 = vadd.f32 %v7237_v15, %v6885_v31 }
 0x6af   : > { %v10197_v0 = vpop.f32.mrf.mxu0 }
 0x6b0   : > { %v6915_v13 = vadd.f32 %v10197_v0, %v13647_v41 }
 0x6b1   : > { %v6904_v24 = vpop.f32.mrf.mxu0  ;;  %v10262_v57 = vpop.f32.mrf.mxu1 }
 0x6b2   : > { %v6905_v27 = vadd.f32 %v13647_v41, %v6904_v24  ;;  %v13695_v32 = vadd.f32 %v10253_v2, %v6915_v13 }
 0x6b3   : > { %v10200_v54 = vpop.f32.mrf.mxu0  ;;  %v7285_v17 = vpop.f32.mrf.mxu1 }
 0x6b4   : > { %v6935_v8 = vadd.f32 %v10200_v54, %v13647_v41  ;;  %v13698_v59 = vadd.f32 %v7249_v39, %v6905_v27 }
 0x6b5   : > { %v6924_v14 = vpop.f32.mrf.mxu0  ;;  %v10265_v55 = vpop.f32.mrf.mxu1 }
 0x6b6   : > { %v6925_v61 = vadd.f32 %v13647_v41, %v6924_v14  ;;  %v13701_v30 = vadd.f32 %v10256_v33, %v6935_v8 }
 0x6b7   : > { %v10203_v43 = vpop.f32.mrf.mxu0  ;;  %v7297_v42 = vpop.f32.mrf.mxu1 }
 0x6b8   : > { %v6955_v25 = vadd.f32 %v10203_v43, %v13647_v41  ;;  %v13704_v3 = vadd.f32 %v7261_v29, %v6925_v61 }
 0x6b9   : > { %v6944_v28 = vpop.f32.mrf.mxu0  ;;  %v10268_v34 = vpop.f32.mrf.mxu1 }
 0x6ba   : > { %v6945_v45 = vadd.f32 %v13647_v41, %v6944_v28  ;;  %v13707_v44 = vadd.f32 %v10259_v22, %v6955_v25 }
 0x6bb   : > { %v10206_v52 = vpop.f32.mrf.mxu0  ;;  %v7309_v6 = vpop.f32.mrf.mxu1 }
 0x6bc   : > { %14644 = vst [vmem:[#allocation37_spill] sm:$0xff] %v13707_v44  ;;  %v6975_v18 = vadd.f32 %v10206_v52, %v13647_v41  ;;  %v13710_v1 = vadd.f32 %v7273_v19, %v6945_v45 }
 0x6bd   : > { %v6964_v20 = vpop.f32.mrf.mxu0  ;;  %v10271_v5 = vpop.f32.mrf.mxu1 }
 0x6be   : > { %14645 = vst [vmem:[#allocation8_spill] sm:$0xff] %v13710_v1  ;;  %v6965_v53 = vadd.f32 %v13647_v41, %v6964_v20  ;;  %v13713_v60 = vadd.f32 %v10262_v57, %v6975_v18 }
 0x6bf   : > { %v10209_v35 = vpop.f32.mrf.mxu0  ;;  %v7321_v15 = vpop.f32.mrf.mxu1 }
 0x6c0   : > { %14646 = vst [vmem:[#allocation24_spill] sm:$0xff] %v13713_v60  ;;  %v6995_v46 = vadd.f32 %v10209_v35, %v13647_v41  ;;  %v13716_v49 = vadd.f32 %v7285_v17, %v6965_v53 }
 0x6c1   : > { %v6984_v26 = vpop.f32.mrf.mxu0  ;;  %v10274_v2 = vpop.f32.mrf.mxu1 }
 0x6c2   : > { %14647 = vst [vmem:[#allocation9_spill] sm:$0xff] %v13716_v49  ;;  %v6985_v11 = vadd.f32 %v13647_v41, %v6984_v26  ;;  %v13719_v50 = vadd.f32 %v10265_v55, %v6995_v46 }
 0x6c3   : > { %v10212_v39 = vpop.f32.mrf.mxu0  ;;  %v7333_v7 = vpop.f32.mrf.mxu1 }
 0x6c4   : > { %14648 = vst [vmem:[#allocation17_spill] sm:$0xff] %v13719_v50  ;;  %v7015_v37 = vadd.f32 %v10212_v39, %v13647_v41  ;;  %v13722_v33 = vadd.f32 %v7297_v42, %v6985_v11 }
 0x6c5   : > { %v7004_v58 = vpop.f32.mrf.mxu0  ;;  %v10277_v4 = vpop.f32.mrf.mxu1 }
 0x6c6   : > { %14649 = vst [vmem:[#allocation19_spill] sm:$0xff] %v13722_v33  ;;  %v7005_v29 = vadd.f32 %v13647_v41, %v7004_v58  ;;  %v13725_v9 = vadd.f32 %v10268_v34, %v7015_v37 }
 0x6c7   : > { %v10215_v31 = vpop.f32.mrf.mxu0  ;;  %v7345_v22 = vpop.f32.mrf.mxu1 }
 0x6c8   : > { %14650 = vst [vmem:[#allocation11_spill] sm:$0xff] %v13725_v9  ;;  %v7035_v19 = vadd.f32 %v10215_v31, %v13647_v41  ;;  %v13728_v0 = vadd.f32 %v7309_v6, %v7005_v29 }
 0x6c9   : > { %v7024_v13 = vpop.f32.mrf.mxu0  ;;  %v13730_v24 = vpop.f32.mrf.mxu1 }
 0x6ca   : > { %14651 = vst [vmem:[#allocation20_spill] sm:$0xff] %v13728_v0  ;;  %v7025_v57 = vadd.f32 %v13647_v41, %v7024_v13  ;;  %v13733_v27 = vadd.f32 %v10271_v5, %v7035_v19 }
 0x6cb   : > { %v10218_v54 = vpop.f32.mrf.mxu0  ;;  %v13735_v17 = vpop.f32.mrf.mxu1 }
 0x6cc   : > { %14652 = vst [vmem:[#allocation27_spill] sm:$0xff] %v13733_v27  ;;  %v7055_v8 = vadd.f32 %v10218_v54, %v13647_v41  ;;  %v13738_v14 = vadd.f32 %v7321_v15, %v7025_v57 }
 0x6cd   : > { %v7044_v55 = vpop.f32.mrf.mxu0  ;;  %v13740_v61 = vpop.f32.mrf.mxu1 }
 0x6ce   : > { %14653 = vst [vmem:[#allocation21_spill] sm:$0xff] %v13738_v14  ;;  %v7045_v43 = vadd.f32 %v13647_v41, %v7044_v55  ;;  %v13743_v42 = vadd.f32 %v10274_v2, %v7055_v8 }
 0x6cf   : > { %v10221_v25 = vpop.f32.mrf.mxu0  ;;  %v13745_v28 = vpop.f32.mrf.mxu1 }
 0x6d0   : > { %14654 = vst [vmem:[#allocation46_spill] sm:$0xff] %v13743_v42  ;;  %v7075_v34 = vadd.f32 %v10221_v25, %v13647_v41  ;;  %v13748_v45 = vadd.f32 %v7333_v7, %v7045_v43 }
 0x6d1   : > { %v7064_v52 = vpop.f32.mrf.mxu0  ;;  %v13750_v6 = vpop.f32.mrf.mxu1 }
 0x6d2   : > { %14655 = vst [vmem:[#allocation25_spill] sm:$0xff] %v13748_v45  ;;  %v7065_v18 = vadd.f32 %v13647_v41, %v7064_v52  ;;  %v13753_v20 = vadd.f32 %v10277_v4, %v7075_v34 }
 0x6d3   : > { %v13755_v5 = vpop.f32.mrf.mxu0  ;;  %v13757_v53 = vpop.f32.mrf.mxu1 }
 0x6d4   : > { %14656 = vst [vmem:[#allocation48_spill] sm:$0xff] %v13753_v20  ;;  %v13759_v35 = vadd.f32 %v7345_v22, %v7065_v18 }
 0x6d5   : > { %v13761_v15 = vpop.f32.mrf.mxu0  ;;  %v13763_v46 = vpop.f32.mrf.mxu1 }
 0x6d6   : > { %14657 = vst [vmem:[#allocation51_spill] sm:$0xff] %v13759_v35 }
 0x6d7   : > { %v13765_v26 = vpop.f32.mrf.mxu0  ;;  %v13767_v2 = vpop.f32.mrf.mxu1 }
 0x6d9   : > { %v13769_v11 = vpop.f32.mrf.mxu0  ;;  %v13771_v39 = vpop.f32.mrf.mxu1 }
 0x6db   : > { %v13773_v41 = vpop.f32.mrf.mxu0  ;;  %v13775_v7 = vpop.f32.mrf.mxu1 }
 0x6dd   : > { %v13777_v37 = vpop.f32.mrf.mxu0  ;;  %v13779_v58 = vpop.f32.mrf.mxu1 }
 0x6df   : > { %v13781_v4 = vpop.f32.mrf.mxu0  ;;  %v13783_v29 = vpop.f32.mrf.mxu1 }
 0x6e1   : > { %v13785_v31 = vpop.f32.mrf.mxu0  ;;  %v13787_v22 = vpop.f32.mrf.mxu1 }
 0x6e3   : > { %v13789_v19 = vpop.f32.mrf.mxu0  ;;  %v13791_v13 = vpop.f32.mrf.mxu1 }
 0x6e5   : > { %v13793_v57 = vpop.f32.mrf.mxu0  ;;  %v13795_v54 = vpop.f32.mrf.mxu1 }
 0x6e7   : > { %v13797_v8 = vpop.f32.mrf.mxu0  ;;  %v13799_v55 = vpop.f32.mrf.mxu1 }
 0x6e8   : > { %14658 = vst [vmem:[#allocation12_spill] sm:$0xff] %v13799_v55 }
 0x6e9   : > { %v13801_v43 = vpop.f32.mrf.mxu0  ;;  %v13803_v25 = vpop.f32.mrf.mxu1 }
 0x6ea   : > { %14659 = vst [vmem:[#allocation14_spill] sm:$0xff] %v13803_v25 }
 0x6eb   : > { %v13805_v34 = vpop.f32.mrf.mxu0  ;;  %v13807_v52 = vpop.f32.mrf.mxu1 }
 0x6ec   : > { %14660 = vst [vmem:[#allocation23_spill] sm:$0xff] %v13807_v52 }
 0x6ed   : > { %v13809_v18 = vpop.f32.mrf.mxu0  ;;  %v13811_v35 = vpop.f32.mrf.mxu1 }
 0x6ee   : > { %14661 = vst [vmem:[#allocation18_spill] sm:$0xff] %v13811_v35 }
 0x6ef   : > { %v13813_v20 = vpop.f32.mrf.mxu0  ;;  %v13815_v45 = vpop.f32.mrf.mxu1 }
 0x6f0   : > { %14662 = vst [vmem:[#allocation29_spill] sm:$0xff] %v13815_v45 }
 0x6f1   : > { %v13817_v42 = vpop.f32.mrf.mxu0  ;;  %v13819_v14 = vpop.f32.mrf.mxu1 }
 0x6f2   : > { %14663 = vst [vmem:[#allocation34_spill] sm:$0xff] %v13819_v14 }
 0x6f3   : > { %v13821_v27 = vpop.f32.mrf.mxu0  ;;  %v13823_v0 = vpop.f32.mrf.mxu1 }
 0x6f4   : > { %14664 = vst [vmem:[#allocation13_spill] sm:$0xff] %v13823_v0 }
 0x6f5   : > { %v13825_v9 = vpop.f32.mrf.mxu0  ;;  %v13827_v33 = vpop.f32.mrf.mxu1 }
 0x6f6   : > { %14665 = vst [vmem:[#allocation22_spill] sm:$0xff] %v13825_v9  ;;  %14666 = vst [vmem:[#allocation26_spill] sm:$0xff] %v13827_v33 }
 0x6f7   : > { %v13829_v50 = vpop.f32.mrf.mxu0  ;;  %v13831_v49 = vpop.f32.mrf.mxu1 }
 0x6f8   : > { %14667 = vst [vmem:[#allocation45_spill] sm:$0xff] %v13829_v50  ;;  %14668 = vst [vmem:[#allocation32_spill] sm:$0xff] %v13831_v49 }
 0x6f9   : > { %v13833_v35 = vpop.f32.mrf.mxu0  ;;  %v13835_v45 = vpop.f32.mrf.mxu1 }
 0x6fa   : > { %14669 = vst [vmem:[#allocation38_spill] sm:$0xff] %v13833_v35  ;;  %14670 = vst [vmem:[#allocation47_spill] sm:$0xff] %v13835_v45 }
 0x6fb   : > { %v13837_v60 = vpop.f32.mrf.mxu0  ;;  %v13839_v14 = vpop.f32.mrf.mxu1 }
 0x6fc   : > { %14671 = vst [vmem:[#allocation16_spill] sm:$0xff] %v13837_v60  ;;  %14672 = vst [vmem:[#allocation49_spill] sm:$0xff] %v13839_v14 }
 0x6fd   : > { %v13841_v52 = vpop.f32.mrf.mxu0  ;;  %v13843_v0 = vpop.f32.mrf.mxu1 }
 0x6fe   : > { %14673 = vst [vmem:[#allocation50_spill] sm:$0xff] %v13841_v52  ;;  %14674 = vst [vmem:[#allocation28_spill] sm:$0xff] %v13843_v0 }
 0x6ff   : > { %v13845_v1 = vpop.f32.mrf.mxu0  ;;  %v13847_v33 = vpop.f32.mrf.mxu1 }
 0x700   : > { %14675 = vst [vmem:[#allocation36_spill] sm:$0xff] %v13845_v1  ;;  %14676 = vst [vmem:[#allocation40_spill] sm:$0xff] %v13847_v33 }
 0x701   : > { %v13849_v25 = vpop.f32.mrf.mxu0  ;;  %v13851_v49 = vpop.f32.mrf.mxu1 }
 0x702   : > { %14677 = vst [vmem:[#allocation15_spill] sm:$0xff] %v13849_v25  ;;  %14678 = vst [vmem:[#allocation3_spill] sm:$0xff] %v13851_v49 }
 0x703   : > { %v13853_v35 = vpop.f32.mrf.mxu0  ;;  %v13855_v50 = vpop.f32.mrf.mxu1 }
 0x704   : > { %14679 = vst [vmem:[#allocation30_spill] sm:$0xff] %v13853_v35  ;;  %14680 = vst [vmem:[#allocation5_spill] sm:$0xff] %v13855_v50 }
 0x705   : > { %v13857_v45 = vpop.f32.mrf.mxu0  ;;  %v13859_v60 = vpop.f32.mrf.mxu1 }
 0x706   : > { %14681 = vst [vmem:[#allocation31_spill] sm:$0xff] %v13857_v45  ;;  %14682 = vst [vmem:[#allocation44_spill] sm:$0xff] %v13859_v60  ;;  %v7439_v45 = vadd.f32 %v13755_v5, %v13653_v10  ;;  %v7446_v10 = vadd.f32 %v13769_v11, %v13662_v63 }
 0x707   : > { %v13861_v14 = vpop.f32.mrf.mxu0  ;;  %v13863_v52 = vpop.f32.mrf.mxu1 }
 0x708   : > { %14683 = vst [vmem:[#allocation4_spill] sm:$0xff] %v13861_v14  ;;  %14684 = vst [vmem:[#allocation7_spill] sm:$0xff] %v13863_v52  ;;  %v7432_v52 = vadd.f32 %v13761_v15, %v13655_v16 }
 0x709   : > { %v13867_v0 = vpop.f32.mrf.mxu0  ;;  %v10456_v33 = vpop.f32.mrf.mxu1 }
 0x70a   : > { %14685 = vst [vmem:[#allocation10_spill] sm:$0xff] %v13867_v0 }
 0x70b   : > { %v13869_v25 = vpop.f32.mrf.mxu0  ;;  %v8317_v49 = vpop.f32.mrf.mxu1 }
 0x70c   : > { %14686 = vst [vmem:[#allocation33_spill] sm:$0xff] %v13869_v25  ;;  %v7453_v25 = vadd.f32 %v13765_v26, %v13659_v48 }
 0x70d   : > { %v13871_v35 = vpop.f32.mrf.mxu0  ;;  %v10459_v50 = vpop.f32.mrf.mxu1 }
 0x70e   : > { %14687 = vst [vmem:[#allocation2_spill] sm:$0xff] %v13871_v35  ;;  %v7734_v35 = vadd.f32 %v13730_v24, %v7439_v45  ;;  %v7467_v24 = vadd.f32 %v13773_v41, %v13665_v40  ;;  %v7750_v26 = vadd.f32 %v13740_v61, %v7453_v25  ;;  %v7481_v40 = vadd.f32 %v13781_v4, %v13671_v62 }
 0x70f   : > { %v13875_v60 = vpop.f32.mrf.mxu0  ;;  %v8329_v14 = vpop.f32.mrf.mxu1 }
 0x710   : > { %14688 = vst [vmem:[#allocation41_spill] sm:$0xff] %v13875_v60  ;;  %v7726_v60 = vadd.f32 %v13735_v17, %v7432_v52  ;;  %v7460_v17 = vadd.f32 %v13777_v37, %v13667_v21  ;;  %v7742_v52 = vadd.f32 %v13745_v28, %v7446_v10  ;;  %v7766_v61 = vadd.f32 %v13750_v6, %v7467_v24 }
 0x711   : > { %v13879_v1 = vpop.f32.mrf.mxu0  ;;  %v10462_v0 = vpop.f32.mrf.mxu1  ;;  %v7782_v4 = vadd.f32 %v13763_v46, %v7481_v40 }
 0x712   : > { %14689 = vst [vmem:[#allocation39_spill] sm:$0xff] %v13879_v1  ;;  %v7758_v25 = vadd.f32 %v13757_v53, %v7460_v17 }
 0x713   : > { %v10400_v44 = vpop.f32.mrf.mxu0  ;;  %v8341_v55 = vpop.f32.mrf.mxu1 }
 0x714   : > { %v8063_v5 = vadd.f32 %v10400_v44, %v7734_v35 }
 0x715   : > { %v8056_v16 = vpop.f32.mrf.mxu0  ;;  %v10465_v48 = vpop.f32.mrf.mxu1 }
 0x716   : > { %v8324_v45 = vadd.f32 %v10456_v33, %v8063_v5  ;;  %v8057_v15 = vadd.f32 %v8056_v16, %v7726_v60 }
 0x717   : > { %v10403_v63 = vpop.f32.mrf.mxu0  ;;  %v8353_v44 = vpop.f32.mrf.mxu1 }
 0x718   : > { %8508 = vst.msk [vmem:[%s13890_s25 + $0x8] sm:$0xff] %vm484_vm0, %v8324_v45  ;;  %v8318_v35 = vadd.f32 %v8317_v49, %v8057_v15  ;;  %v8075_v11 = vadd.f32 %v10403_v63, %v7750_v26  ;;  %v7474_v49 = vadd.f32 %v13785_v31, %v13673_v38 }
 0x719   : > { %v8068_v1 = vpop.f32.mrf.mxu0  ;;  %v10468_v9 = vpop.f32.mrf.mxu1 }
 0x71a   : > { %8507 = vst.msk [vmem:[%s13890_s25] sm:$0xff] %vm484_vm0, %v8318_v35  ;;  %v8336_v60 = vadd.f32 %v10459_v50, %v8075_v11  ;;  %v8069_v33 = vadd.f32 %v8068_v1, %v7742_v52  ;;  %v7495_v1 = vadd.f32 %v13789_v19, %v13677_v47  ;;  %v7774_v16 = vadd.f32 %v13767_v2, %v7474_v49 }
 0x71b   : > { %v10406_v41 = vpop.f32.mrf.mxu0  ;;  %v8365_v21 = vpop.f32.mrf.mxu1 }
 0x71c   : > { %8510 = vst.msk [vmem:[%s13890_s25 + $0x18] sm:$0xff] %vm484_vm0, %v8336_v60  ;;  %v8330_v28 = vadd.f32 %v8329_v14, %v8069_v33  ;;  %v8087_v37 = vadd.f32 %v10406_v41, %v7766_v61  ;;  %v7488_v14 = vadd.f32 %v13793_v57, %v13680_v36  ;;  %v7798_v45 = vadd.f32 %v13771_v39, %v7495_v1 }
 0x71d   : > { %v8080_v10 = vpop.f32.mrf.mxu0  ;;  %v10471_v62 = vpop.f32.mrf.mxu1  ;;  %v7502_v57 = vadd.f32 %v13801_v43, %v13686_v12  ;;  %v7516_v43 = vadd.f32 %v13809_v18, %v13691_v51  ;;  %v7530_v18 = vadd.f32 %v13817_v42, %v13698_v59  ;;  %v14690_v42 = vld [vmem:[#allocation22_spill] sm:$0xff] }
 0x71e   : > { %8509 = vst.msk [vmem:[%s13890_s25 + $0x10] sm:$0xff] %vm484_vm0, %v8330_v28  ;;  %v8348_v50 = vadd.f32 %v10462_v0, %v8087_v37  ;;  %v8081_v6 = vadd.f32 %v8080_v10, %v7758_v25  ;;  %v7509_v0 = vadd.f32 %v13797_v8, %v13683_v56  ;;  %v7790_v26 = vadd.f32 %v13775_v7, %v7488_v14  ;;  %v14691_v10 = vld [vmem:[#allocation12_spill] sm:$0xff] }
 0x71f   : > { %v10409_v5 = vpop.f32.mrf.mxu0  ;;  %v8377_v38 = vpop.f32.mrf.mxu1  ;;  %v7523_v8 = vadd.f32 %v13805_v34, %v13689_v23  ;;  %v7806_v11 = vadd.f32 %v13783_v29, %v7502_v57  ;;  %v7822_v61 = vadd.f32 %v13791_v13, %v7516_v43  ;;  %v7544_v37 = vadd.f32 %v14690_v42, %v13704_v3  ;;  %v14703_v43 = vld [vmem:[#allocation29_spill] sm:$0xff]  ;;  %v14711_v42 = vld [vmem:[#allocation30_spill] sm:$0xff] }
 0x720   : > { %8512 = vst.msk [vmem:[%s13890_s25 + $0x28] sm:$0xff] %vm484_vm0, %v8348_v50  ;;  %v8342_v53 = vadd.f32 %v8341_v55, %v8081_v6  ;;  %v8099_v31 = vadd.f32 %v10409_v5, %v7782_v4  ;;  %v7814_v17 = vadd.f32 %v13779_v58, %v7509_v0  ;;  %v14693_v50 = vld [vmem:[#allocation45_spill] sm:$0xff]  ;;  %v14694_v5 = vld [vmem:[#allocation14_spill] sm:$0xff]  ;;  %v14697_v0 = vld [vmem:[#allocation23_spill] sm:$0xff] }
 0x721   : > { %v8092_v24 = vpop.f32.mrf.mxu0  ;;  %v10474_v47 = vpop.f32.mrf.mxu1  ;;  %v7830_v40 = vadd.f32 %v13787_v22, %v7523_v8 }
 0x722   : > { %8511 = vst.msk [vmem:[%s13890_s25 + $0x20] sm:$0xff] %vm484_vm0, %v8342_v53  ;;  %v8360_v46 = vadd.f32 %v10465_v48, %v8099_v31  ;;  %v8093_v19 = vadd.f32 %v8092_v24, %v7774_v16  ;;  %v14695_v53 = vld [vmem:[#allocation8_spill] sm:$0xff]  ;;  %v14696_v31 = vld [vmem:[#allocation38_spill] sm:$0xff] }
 0x723   : > { %v10412_v15 = vpop.f32.mrf.mxu0  ;;  %v8389_v36 = vpop.f32.mrf.mxu1  ;;  %v7558_v16 = vadd.f32 %v14696_v31, %v14695_v53  ;;  %v14717_v53 = vld [vmem:[#allocation4_spill] sm:$0xff] }
 0x724   : > { %8514 = vst.msk [vmem:[%s13890_s25 + $0x38] sm:$0xff] %vm484_vm0, %v8360_v46  ;;  %v8354_v2 = vadd.f32 %v8353_v44, %v8093_v19  ;;  %v8111_v55 = vadd.f32 %v10412_v15, %v7798_v45  ;;  %v7854_v46 = vadd.f32 %v14697_v0, %v7544_v37  ;;  %v14698_v15 = vld [vmem:[#allocation24_spill] sm:$0xff] }
 0x725   : > { %v8104_v63 = vpop.f32.mrf.mxu0  ;;  %v10477_v56 = vpop.f32.mrf.mxu1 }
 0x726   : > { %8513 = vst.msk [vmem:[%s13890_s25 + $0x30] sm:$0xff] %vm484_vm0, %v8354_v2  ;;  %v8372_v39 = vadd.f32 %v10468_v9, %v8111_v55  ;;  %v8105_v48 = vadd.f32 %v8104_v63, %v7790_v26  ;;  %v7537_v9 = vadd.f32 %v13813_v20, %v13695_v32  ;;  %v7551_v20 = vadd.f32 %v13821_v27, %v13701_v30  ;;  %v14692_v27 = vld [vmem:[#allocation37_spill] sm:$0xff]  ;;  %v14700_v26 = vld [vmem:[#allocation18_spill] sm:$0xff] }
 0x727   : > { %v10415_v35 = vpop.f32.mrf.mxu0  ;;  %v8401_v12 = vpop.f32.mrf.mxu1  ;;  %v7565_v6 = vadd.f32 %v14693_v50, %v14692_v27  ;;  %v14713_v27 = vld [vmem:[#allocation20_spill] sm:$0xff]  ;;  %v14714_v50 = vld [vmem:[#allocation31_spill] sm:$0xff] }
 0x728   : > { %8516 = vst.msk [vmem:[%s13890_s25 + $0x48] sm:$0xff] %vm484_vm0, %v8372_v39  ;;  %v8366_v7 = vadd.f32 %v8365_v21, %v8105_v48  ;;  %v8123_v44 = vadd.f32 %v10415_v35, %v7814_v17  ;;  %v7846_v49 = vadd.f32 %v13795_v54, %v7537_v9  ;;  %v14701_v39 = vld [vmem:[#allocation9_spill] sm:$0xff]  ;;  %v14702_v48 = vld [vmem:[#allocation50_spill] sm:$0xff] }
 0x729   : > { %v8116_v52 = vpop.f32.mrf.mxu0  ;;  %v10480_v23 = vpop.f32.mrf.mxu1  ;;  %v7878_v63 = vadd.f32 %v14700_v26, %v7565_v6  ;;  %v7572_v17 = vadd.f32 %v14702_v48, %v14701_v39 }
 0x72a   : > { %8515 = vst.msk [vmem:[%s13890_s25 + $0x40] sm:$0xff] %vm484_vm0, %v8366_v7  ;;  %v8384_v58 = vadd.f32 %v10471_v62, %v8123_v44  ;;  %v8117_v34 = vadd.f32 %v8116_v52, %v7806_v11  ;;  %v7838_v62 = vadd.f32 %v14691_v10, %v7530_v18  ;;  %v7870_v7 = vadd.f32 %v14703_v43, %v7558_v16  ;;  %v14704_v52 = vld [vmem:[#allocation17_spill] sm:$0xff] }
 0x72b   : > { %v10418_v60 = vpop.f32.mrf.mxu0  ;;  %v8413_v51 = vpop.f32.mrf.mxu1 }
 0x72c   : > { %8518 = vst.msk [vmem:[%s13890_s25 + $0x58] sm:$0xff] %vm484_vm0, %v8384_v58  ;;  %v8378_v29 = vadd.f32 %v8377_v38, %v8117_v34  ;;  %v8135_v33 = vadd.f32 %v10418_v60, %v7830_v40  ;;  %v7862_v38 = vadd.f32 %v14694_v5, %v7551_v20  ;;  %v14706_v40 = vld [vmem:[#allocation34_spill] sm:$0xff] }
 0x72d   : > { %v8128_v41 = vpop.f32.mrf.mxu0  ;;  %v10483_v32 = vpop.f32.mrf.mxu1 }
 0x72e   : > { %8517 = vst.msk [vmem:[%s13890_s25 + $0x50] sm:$0xff] %vm484_vm0, %v8378_v29  ;;  %v8396_v22 = vadd.f32 %v10474_v47, %v8135_v33  ;;  %v8129_v21 = vadd.f32 %v8128_v41, %v7822_v61  ;;  %v14707_v33 = vld [vmem:[#allocation19_spill] sm:$0xff] }
 0x72f   : > { %v10421_v28 = vpop.f32.mrf.mxu0  ;;  %v8425_v59 = vpop.f32.mrf.mxu1 }
 0x730   : > { %8520 = vst.msk [vmem:[%s13890_s25 + $0x68] sm:$0xff] %vm484_vm0, %v8396_v22  ;;  %v8390_v13 = vadd.f32 %v8389_v36, %v8129_v21  ;;  %v8147_v25 = vadd.f32 %v10421_v28, %v7846_v49  ;;  %v14699_v36 = vld [vmem:[#allocation16_spill] sm:$0xff]  ;;  %v14709_v22 = vld [vmem:[#allocation13_spill] sm:$0xff]  ;;  %v14710_v28 = vld [vmem:[#allocation11_spill] sm:$0xff] }
 0x731   : > { %v8140_v1 = vpop.f32.mrf.mxu0  ;;  %v10486_v30 = vpop.f32.mrf.mxu1  ;;  %v7579_v57 = vadd.f32 %v14699_v36, %v14698_v15  ;;  %v7886_v21 = vadd.f32 %v14709_v22, %v7572_v17  ;;  %v14720_v15 = vld [vmem:[#allocation10_spill] sm:$0xff]  ;;  %v14724_v17 = vld [vmem:[#allocation28_spill] sm:$0xff]  ;;  %v14731_v22 = vld [vmem:[#allocation51_spill] sm:$0xff] }
 0x732   : > { %8519 = vst.msk [vmem:[%s13890_s25 + $0x60] sm:$0xff] %vm484_vm0, %v8390_v13  ;;  %v8408_v54 = vadd.f32 %v10477_v56, %v8147_v25  ;;  %v8141_v4 = vadd.f32 %v8140_v1, %v7838_v62  ;;  %v14712_v25 = vld [vmem:[#allocation26_spill] sm:$0xff] }
 0x733   : > { %v10424_v14 = vpop.f32.mrf.mxu0  ;;  %v8437_v3 = vpop.f32.mrf.mxu1  ;;  %v7894_v60 = vadd.f32 %v14706_v40, %v7579_v57  ;;  %v14728_v40 = vld [vmem:[#allocation48_spill] sm:$0xff] }
 0x734   : > { %8522 = vst.msk [vmem:[%s13890_s25 + $0x78] sm:$0xff] %vm484_vm0, %v8408_v54  ;;  %v8402_v24 = vadd.f32 %v8401_v12, %v8141_v4  ;;  %v8159_v47 = vadd.f32 %v10424_v14, %v7862_v38  ;;  %v14715_v4 = vld [vmem:[#allocation32_spill] sm:$0xff]  ;;  %v14716_v14 = vld [vmem:[#allocation27_spill] sm:$0xff] }
 0x735   : > { %v8152_v19 = vpop.f32.mrf.mxu0  ;;  %v10489_v45 = vpop.f32.mrf.mxu1 }
 0x736   : > { %8521 = vst.msk [vmem:[%s13890_s25 + $0x70] sm:$0xff] %vm484_vm0, %v8402_v24  ;;  %v8420_v2 = vadd.f32 %v10480_v23, %v8159_v47  ;;  %v8153_v55 = vadd.f32 %v8152_v19, %v7854_v46  ;;  %v14705_v23 = vld [vmem:[#allocation36_spill] sm:$0xff]  ;;  %v14718_v24 = vld [vmem:[#allocation47_spill] sm:$0xff]  ;;  %v14719_v19 = vld [vmem:[#allocation21_spill] sm:$0xff] }
 0x737   : > { %v10427_v56 = vpop.f32.mrf.mxu0  ;;  %v8449_v8 = vpop.f32.mrf.mxu1  ;;  %v7593_v9 = vadd.f32 %v14705_v23, %v14704_v52 }
 0x738   : > { %8524 = vst.msk [vmem:[%s13890_s25 + $0x88] sm:$0xff] %vm484_vm0, %v8420_v2  ;;  %v8414_v35 = vadd.f32 %v8413_v51, %v8153_v55  ;;  %v8171_v12 = vadd.f32 %v10427_v56, %v7878_v63  ;;  %v14708_v51 = vld [vmem:[#allocation15_spill] sm:$0xff]  ;;  %v14721_v2 = vld [vmem:[#allocation49_spill] sm:$0xff]  ;;  %v14722_v63 = vld [vmem:[#allocation46_spill] sm:$0xff] }
 0x739   : > { %v8164_v44 = vpop.f32.mrf.mxu0  ;;  %v10492_v11 = vpop.f32.mrf.mxu1  ;;  %v7586_v61 = vadd.f32 %v14708_v51, %v14707_v33  ;;  %v7910_v10 = vadd.f32 %v14712_v25, %v7593_v9  ;;  %v14723_v56 = vld [vmem:[#allocation33_spill] sm:$0xff]  ;;  %v14727_v9 = vld [vmem:[#allocation40_spill] sm:$0xff]  ;;  %v14730_v51 = vld [vmem:[#allocation3_spill] sm:$0xff] }
 0x73a   : > { %8523 = vst.msk [vmem:[%s13890_s25 + $0x80] sm:$0xff] %vm484_vm0, %v8414_v35  ;;  %v8432_v58 = vadd.f32 %v10483_v32, %v8171_v12  ;;  %v8165_v34 = vadd.f32 %v8164_v44, %v7870_v7  ;;  %v7607_v32 = vadd.f32 %v14711_v42, %v14710_v28  ;;  %v14725_v7 = vld [vmem:[#allocation25_spill] sm:$0xff]  ;;  %v14726_v44 = vld [vmem:[#allocation2_spill] sm:$0xff] }
 0x73b   : > { %v10430_v18 = vpop.f32.mrf.mxu0  ;;  %v8461_v29 = vpop.f32.mrf.mxu1  ;;  %v7902_v5 = vadd.f32 %v14715_v4, %v7586_v61  ;;  %v14733_v42 = vld [vmem:[#allocation5_spill] sm:$0xff] }
 0x73c   : > { %8526 = vst.msk [vmem:[%s13890_s25 + $0x98] sm:$0xff] %vm484_vm0, %v8432_v58  ;;  %v8426_v41 = vadd.f32 %v8425_v59, %v8165_v34  ;;  %v8183_v20 = vadd.f32 %v10430_v18, %v7894_v60  ;;  %v7600_v59 = vadd.f32 %v14714_v50, %v14713_v27  ;;  %v7926_v47 = vadd.f32 %v14718_v24, %v7607_v32  ;;  %v14729_v60 = vld [vmem:[#allocation41_spill] sm:$0xff] }
 0x73d   : > { %v8176_v49 = vpop.f32.mrf.mxu0  ;;  %v10495_v1 = vpop.f32.mrf.mxu1 }
 0x73e   : > { %8525 = vst.msk [vmem:[%s13890_s25 + $0x90] sm:$0xff] %vm484_vm0, %v8426_v41  ;;  %v8444_v37 = vadd.f32 %v10486_v30, %v8183_v20  ;;  %v8177_v13 = vadd.f32 %v8176_v49, %v7886_v21  ;;  %v7621_v30 = vadd.f32 %v14717_v53, %v14716_v14  ;;  %v7918_v55 = vadd.f32 %v14721_v2, %v7600_v59  ;;  %v14732_v21 = vld [vmem:[#allocation39_spill] sm:$0xff] }
 0x73f   : > { %v10433_v62 = vpop.f32.mrf.mxu0  ;;  %v8473_v0 = vpop.f32.mrf.mxu1 }
 0x740   : > { %8528 = vst.msk [vmem:[%s13890_s25 + $0xa8] sm:$0xff] %vm484_vm0, %v8444_v37  ;;  %v8438_v6 = vadd.f32 %v8437_v3, %v8177_v13  ;;  %v8195_v54 = vadd.f32 %v10433_v62, %v7910_v10  ;;  %v7614_v3 = vadd.f32 %v14720_v15, %v14719_v19  ;;  %v7942_v35 = vadd.f32 %v14724_v17, %v7621_v30  ;;  %v14734_v10 = vld [vmem:[#allocation44_spill] sm:$0xff] }
 0x741   : > { %v8188_v38 = vpop.f32.mrf.mxu0  ;;  %v10498_v12 = vpop.f32.mrf.mxu1 }
 0x742   : > { %8527 = vst.msk [vmem:[%s13890_s25 + $0xa0] sm:$0xff] %vm484_vm0, %v8438_v6  ;;  %v8456_v31 = vadd.f32 %v10489_v45, %v8195_v54  ;;  %v8189_v16 = vadd.f32 %v8188_v38, %v7902_v5  ;;  %v7635_v45 = vadd.f32 %v14723_v56, %v14722_v63  ;;  %v7934_v58 = vadd.f32 %v14727_v9, %v7614_v3  ;;  %v14735_v6 = vld [vmem:[#allocation7_spill] sm:$0xff] }
 0x743   : > { %v10436_v46 = vpop.f32.mrf.mxu0  ;;  %v8485_v41 = vpop.f32.mrf.mxu1 }
 0x744   : > { %8530 = vst.msk [vmem:[%s13890_s25 + $0xb8] sm:$0xff] %vm484_vm0, %v8456_v31  ;;  %v8450_v36 = vadd.f32 %v8449_v8, %v8189_v16  ;;  %v8207_v57 = vadd.f32 %v10436_v46, %v7926_v47  ;;  %v7628_v8 = vadd.f32 %v14726_v44, %v14725_v7  ;;  %v7958_v61 = vadd.f32 %v14730_v51, %v7635_v45 }
 0x745   : > { %v8200_v26 = vpop.f32.mrf.mxu0 }
 0x746   : > { %8529 = vst.msk [vmem:[%s13890_s25 + $0xb0] sm:$0xff] %vm484_vm0, %v8450_v36  ;;  %v8468_v39 = vadd.f32 %v10492_v11, %v8207_v57  ;;  %v8201_v48 = vadd.f32 %v8200_v26, %v7918_v55  ;;  %v7649_v11 = vadd.f32 %v14729_v60, %v14728_v40  ;;  %v7950_v32 = vadd.f32 %v14733_v42, %v7628_v8 }
 0x747   : > { %v10439_v43 = vpop.f32.mrf.mxu0 }
 0x748   : > { %8532 = vst.msk [vmem:[%s13890_s25 + $0xc8] sm:$0xff] %vm484_vm0, %v8468_v39  ;;  %v8462_v52 = vadd.f32 %v8461_v29, %v8201_v48  ;;  %v8219_v23 = vadd.f32 %v10439_v43, %v7942_v35  ;;  %v7642_v29 = vadd.f32 %v14732_v21, %v14731_v22  ;;  %v7974_v62 = vadd.f32 %v14734_v10, %v7649_v11 }
 0x749   : > { %v8212_v34 = vpop.f32.mrf.mxu0 }
 0x74a   : > { %8531 = vst.msk [vmem:[%s13890_s25 + $0xc0] sm:$0xff] %vm484_vm0, %v8462_v52  ;;  %v8480_v18 = vadd.f32 %v10495_v1, %v8219_v23  ;;  %v8213_v33 = vadd.f32 %v8212_v34, %v7934_v58  ;;  %v10501_v1 = vpop.f32.mrf.mxu1  ;;  %v7966_v54 = vadd.f32 %v14735_v6, %v7642_v29 }
 0x74b   : > { %v10442_v20 = vpop.f32.mrf.mxu0 }
 0x74c   : > { %8534 = vst.msk [vmem:[%s13890_s25 + $0xd8] sm:$0xff] %vm484_vm0, %v8480_v18  ;;  %v8474_v49 = vadd.f32 %v8473_v0, %v8213_v33  ;;  %v8231_v28 = vadd.f32 %v10442_v20, %v7958_v61  ;;  %v8497_v14 = vpop.f32.mrf.mxu1 }
 0x74d   : > { %v8224_v37 = vpop.f32.mrf.mxu0 }
 0x74e   : > { %8533 = vst.msk [vmem:[%s13890_s25 + $0xd0] sm:$0xff] %vm484_vm0, %v8474_v49  ;;  %v8492_v13 = vadd.f32 %v10498_v12, %v8231_v28  ;;  %v8225_v25 = vadd.f32 %v8224_v37, %v7950_v32 }
 0x74f   : > { %v10445_v27 = vpop.f32.mrf.mxu0 }
 0x750   : > { %8536 = vst.msk [vmem:[%s13890_s25 + $0xe8] sm:$0xff] %vm484_vm0, %v8492_v13  ;;  %v8486_v50 = vadd.f32 %v8485_v41, %v8225_v25  ;;  %v8243_v59 = vadd.f32 %v10445_v27, %v7974_v62 }
 0x751   : > { %v8236_v4 = vpop.f32.mrf.mxu0 }
 0x752   : > { %8535 = vst.msk [vmem:[%s13890_s25 + $0xe0] sm:$0xff] %vm484_vm0, %v8486_v50  ;;  %v8504_v5 = vadd.f32 %v10501_v1, %v8243_v59  ;;  %v8237_v38 = vadd.f32 %v8236_v4, %v7966_v54 }
 0x754   : > { %8538 = vst.msk [vmem:[%s13890_s25 + $0xf8] sm:$0xff] %vm484_vm0, %v8504_v5  ;;  %v8498_v53 = vadd.f32 %v8497_v14, %v8237_v38 }
 0x756   : > { %8537 = vst.msk [vmem:[%s13890_s25 + $0xf0] sm:$0xff] %vm484_vm0, %v8498_v53 }
 0x757 PF: > { %s24_s29 = sadd.s32 1, %s10669_s29  }
 0x758   : > { %p21_p5 = scmp.ge.s32.totalorder %s24_s29, 4  }
 0x75a   :  { %23 = sbr.rel (!%p21_p5) target bundleno = 1 (0x1), region = 106 }

</bundles_post_ra>
